<compile_context>
chip_gen: v7x
topology: tpu7x:2x2x1
jax: 0.10.0
libtpu: 0.0.40
codegen_flags: <defaults>
</compile_context>

<pallas_src>
import jax
import jax.numpy as jnp
from jax.experimental import pallas as pl
from jax.experimental.pallas import tpu as pltpu

# (fan_in, fan_out) for hidden_1 .. hidden_6 (PyTorch module spec).
LAYER_DIMS = [(1, 20), (20, 10), (10, 10), (10, 250), (250, 500), (500, 28 * 28)]

OUT_DIM = 28 * 28        # 784
OUT_PAD = 896            # 7 * 128  (lane-dense output width)
H4_PAD = 256             # 250 real cols + col 250 == constant 1 (carries b5)
H5_PAD = 512             # 500 real cols + col 500 == constant 1 (carries b6)
PACK_ROWS = 40           # 35 used rows, padded to a multiple of 8


def mlp_kernel(x_ref, pack_ref, w5_ref, w6_ref, out_ref):
    f32 = jnp.float32
    x = x_ref[...].astype(f32)                      # [bm, 1]

    # --- unpack the small-parameter buffer (static slices, all in VMEM) ---
    w1 = pack_ref[0:1, 0:20]                        # [1, 20]
    b1 = pack_ref[1:2, 0:20]                        # [1, 20]
    w2t = pack_ref[2:12, 0:20]                      # [10, 20]  == W2^T
    b2 = pack_ref[12:13, 0:10]                      # [1, 10]
    w3t = pack_ref[13:23, 0:10]                     # [10, 10]  == W3^T
    b3 = pack_ref[23:24, 0:10]                      # [1, 10]
    w4 = pack_ref[24:34, 0:H4_PAD]                  # [10, 256] (zero-padded cols)
    b4 = pack_ref[34:35, 0:H4_PAD]                  # [1, 256]  (b4[250] == 1.0)

    # L1 (1 -> 20): K == 1, pure VPU broadcast FMA (no MXU round-trip).
    h = jnp.maximum(x * w1 + b1, 0.0)               # [bm, 20]

    # L2 (20 -> 10), L3 (10 -> 10): broadcast-mul + last-axis reduce on the
    # VPU/XLU, avoiding MXU push/pop latency for these tiny matmuls.
    h = jnp.maximum(jnp.sum(h[:, None, :] * w2t[None, :, :], axis=-1) + b2, 0.0)
    h = jnp.maximum(jnp.sum(h[:, None, :] * w3t[None, :, :], axis=-1) + b3, 0.0)

    # L4 (10 -> 256 padded): MXU. Column 250 becomes the constant-1 feature
    # that carries the layer-5 bias (folded into W5 row 250).
    h = jnp.maximum(jnp.dot(h, w4, preferred_element_type=f32) + b4, 0.0)

    # L5 (256 -> 512 padded): bf16 weights promoted to f32, f32 accumulate.
    # Column 500 becomes the constant-1 feature carrying the layer-6 bias.
    h = jnp.maximum(
        jnp.dot(h, w5_ref[...].astype(f32), preferred_element_type=f32), 0.0)

    # L6 (512 -> 896 padded) + sigmoid. Columns >= 784 are padding.
    logits = jnp.dot(h, w6_ref[...].astype(f32), preferred_element_type=f32)
    out_ref[...] = jax.nn.sigmoid(logits).astype(out_ref.dtype)


def label_to_image_net(x, pack, w5p, w6p):
    """Batch-tiled fused forward. Returns [B, 784] float32."""
    B = x.shape[0]
    block_m = B if B <= 256 else 256                # full-batch block for small B
    grid = (pl.cdiv(B, block_m),)

    out_padded = pl.pallas_call(
        mlp_kernel,
        out_shape=jax.ShapeDtypeStruct((B, OUT_PAD), jnp.float32),
        grid=grid,
        in_specs=[
            pl.BlockSpec((block_m, 1), lambda i: (i, 0)),
            pl.BlockSpec(pack.shape, lambda i: (0, 0)),   # grid-invariant
            pl.BlockSpec(w5p.shape, lambda i: (0, 0)),    # grid-invariant
            pl.BlockSpec(w6p.shape, lambda i: (0, 0)),    # grid-invariant
        ],
        out_specs=pl.BlockSpec((block_m, OUT_PAD), lambda i: (i, 0)),
        compiler_params=pltpu.CompilerParams(
            dimension_semantics=("parallel",)),
    )(x, pack, w5p, w6p)
    return out_padded[:, :OUT_DIM]


forward = jax.jit(label_to_image_net)


def init_params(key):
    """PyTorch-style Linear init: U(-1/sqrt(fan_in), +1/sqrt(fan_in)).

    Weights stored as [in, out] (transpose of PyTorch), biases as [1, out].
    """
    params = []
    for (fan_in, fan_out) in LAYER_DIMS:
        key, kw, kb = jax.random.split(key, 3)
        bound = 1.0 / (fan_in ** 0.5)
        w = jax.random.uniform(kw, (fan_in, fan_out), jnp.float32, -bound, bound)
        b = jax.random.uniform(kb, (1, fan_out), jnp.float32, -bound, bound)
        params += [w, b]
    return params


def pack_params(params):
    """Host-side repack: one f32 pack for layers 1-4, bf16 padded W5/W6 with
    biases folded in as an extra row (driven by a constant-1 activation)."""
    w1, b1, w2, b2, w3, b3, w4, b4, w5, b5, w6, b6 = params

    pack = jnp.zeros((PACK_ROWS, 256), jnp.float32)
    pack = pack.at[0, 0:20].set(w1[0])
    pack = pack.at[1, 0:20].set(b1[0])
    pack = pack.at[2:12, 0:20].set(w2.T)            # W2^T  [10, 20]
    pack = pack.at[12, 0:10].set(b2[0])
    pack = pack.at[13:23, 0:10].set(w3.T)           # W3^T  [10, 10]
    pack = pack.at[23, 0:10].set(b3[0])
    pack = pack.at[24:34, 0:250].set(w4)            # W4    [10, 250]
    pack = pack.at[34, 0:250].set(b4[0])
    pack = pack.at[34, 250].set(1.0)                # constant-1 feature (carries b5)

    w5p = jnp.zeros((H4_PAD, H5_PAD), jnp.float32)  # [256, 512]
    w5p = w5p.at[0:250, 0:500].set(w5)
    w5p = w5p.at[250, 0:500].set(b5[0])             # bias row
    w5p = w5p.at[250, 500].set(1.0)                 # constant-1 feature (carries b6)

    w6p = jnp.zeros((H5_PAD, OUT_PAD), jnp.float32)  # [512, 896]
    w6p = w6p.at[0:500, 0:OUT_DIM].set(w6)
    w6p = w6p.at[500, 0:OUT_DIM].set(b6[0])          # bias row

    return pack, w5p.astype(jnp.bfloat16), w6p.astype(jnp.bfloat16)


def reference_forward(x, params, quantize_big=False):
    """Pure-JAX reference. quantize_big=True rounds W5/b5/W6/b6 to bf16 (to
    mirror the kernel's bf16 weight storage with f32 accumulation)."""
    w1, b1, w2, b2, w3, b3, w4, b4, w5, b5, w6, b6 = params
    q = ((lambda a: a.astype(jnp.bfloat16).astype(jnp.float32))
         if quantize_big else (lambda a: a))
    h = jnp.maximum(x @ w1 + b1, 0.0)
    h = jnp.maximum(h @ w2 + b2, 0.0)
    h = jnp.maximum(h @ w3 + b3, 0.0)
    h = jnp.maximum(h @ w4 + b4, 0.0)
    h = jnp.maximum(h @ q(w5) + q(b5), 0.0)
    return jax.nn.sigmoid(h @ q(w6) + q(b6))


if __name__ == "__main__":
    key = jax.random.PRNGKey(0)
    key, kx = jax.random.split(key)

    # Input "labels" as floats, shape [B, 1] (input_size = 1), batch = 8.
    B = 8
    x = jax.random.uniform(kx, (B, 1), jnp.float32, 0.0, 9.0)

    params = init_params(key)
    pack, w5p, w6p = pack_params(params)

    out = forward(x, pack, w5p, w6p)
    out = jax.block_until_ready(out)

    assert out.shape == (B, OUT_DIM), out.shape

    # Tight check vs. a reference using the same bf16-rounded big weights.
    ref_q = reference_forward(x, params, quantize_big=True)
    assert jnp.allclose(out, ref_q, atol=2e-3, rtol=2e-3), "mismatch vs bf16 reference"

    # Loose sanity check vs. the full-f32 PyTorch-equivalent forward.
    ref_f = reference_forward(x, params, quantize_big=False)
    assert jnp.allclose(out, ref_f, atol=5e-2, rtol=5e-2), "mismatch vs f32 reference"

    print("KERNEL_OK")
</pallas_src>

<mosaic_0001>
module attributes {stable_mosaic.version = 11 : i64} {
  func.func @mlp_kernel(%arg0: i32, %arg1: memref<8x1xf32, #tpu.memory_space<vmem>>, %arg2: memref<40x256xf32, #tpu.memory_space<vmem>>, %arg3: memref<256x512xbf16, #tpu.memory_space<vmem>>, %arg4: memref<512x896xbf16, #tpu.memory_space<vmem>>, %arg5: memref<8x896xf32, #tpu.memory_space<vmem>>) attributes {dimension_semantics = [#tpu.dimension_semantics<parallel>], iteration_bounds = array<i64: 1>, scalar_prefetch = 0 : i64, scratch_operands = 0 : i64, tpu.core_type = #tpu.core_type<tc>, window_params = [{transform_indices = @transform_0, window_bounds = array<i64: 8, 1>}, {pipeline_mode = #tpu.pipeline_mode<synchronous>, transform_indices = @transform_1, window_bounds = array<i64: 40, 256>}, {pipeline_mode = #tpu.pipeline_mode<synchronous>, transform_indices = @transform_2, window_bounds = array<i64: 256, 512>}, {pipeline_mode = #tpu.pipeline_mode<synchronous>, transform_indices = @transform_3, window_bounds = array<i64: 512, 896>}, {transform_indices = @transform_4, window_bounds = array<i64: 8, 896>}]} {
    %c0 = arith.constant 0 : index
    %c0_0 = arith.constant 0 : index
    %0 = vector.load %arg1[%c0, %c0_0] : memref<8x1xf32, #tpu.memory_space<vmem>>, vector<8x1xf32>
    %c0_1 = arith.constant 0 : index
    %c0_2 = arith.constant 0 : index
    %1 = vector.load %arg2[%c0_1, %c0_2] : memref<40x256xf32, #tpu.memory_space<vmem>>, vector<1x20xf32>
    %c1 = arith.constant 1 : index
    %c0_3 = arith.constant 0 : index
    %2 = vector.load %arg2[%c1, %c0_3] : memref<40x256xf32, #tpu.memory_space<vmem>>, vector<1x20xf32>
    %c2 = arith.constant 2 : index
    %c0_4 = arith.constant 0 : index
    %3 = vector.load %arg2[%c2, %c0_4] : memref<40x256xf32, #tpu.memory_space<vmem>>, vector<10x20xf32>
    %c12 = arith.constant 12 : index
    %c0_5 = arith.constant 0 : index
    %4 = vector.load %arg2[%c12, %c0_5] : memref<40x256xf32, #tpu.memory_space<vmem>>, vector<1x10xf32>
    %c13 = arith.constant 13 : index
    %c0_6 = arith.constant 0 : index
    %5 = vector.load %arg2[%c13, %c0_6] : memref<40x256xf32, #tpu.memory_space<vmem>>, vector<10x10xf32>
    %c23 = arith.constant 23 : index
    %c0_7 = arith.constant 0 : index
    %6 = vector.load %arg2[%c23, %c0_7] : memref<40x256xf32, #tpu.memory_space<vmem>>, vector<1x10xf32>
    %c24 = arith.constant 24 : index
    %c0_8 = arith.constant 0 : index
    %7 = vector.load %arg2[%c24, %c0_8] : memref<40x256xf32, #tpu.memory_space<vmem>>, vector<10x256xf32>
    %c34 = arith.constant 34 : index
    %c0_9 = arith.constant 0 : index
    %8 = vector.load %arg2[%c34, %c0_9] : memref<40x256xf32, #tpu.memory_space<vmem>>, vector<1x256xf32>
    %9 = vector.broadcast %0 : vector<8x1xf32> to vector<8x20xf32>
    %10 = vector.broadcast %1 : vector<1x20xf32> to vector<8x20xf32>
    %11 = arith.mulf %9, %10 : vector<8x20xf32>
    %12 = vector.broadcast %2 : vector<1x20xf32> to vector<8x20xf32>
    %13 = arith.addf %11, %12 : vector<8x20xf32>
    %cst = arith.constant 0.000000e+00 : f32
    %14 = vector.broadcast %cst : f32 to vector<8x20xf32>
    %15 = arith.maximumf %13, %14 : vector<8x20xf32>
    %16 = vector.shape_cast %15 : vector<8x20xf32> to vector<8x1x20xf32>
    %17 = vector.shape_cast %3 : vector<10x20xf32> to vector<1x10x20xf32>
    %18 = vector.broadcast %16 : vector<8x1x20xf32> to vector<8x10x20xf32>
    %19 = vector.broadcast %17 : vector<1x10x20xf32> to vector<8x10x20xf32>
    %20 = arith.mulf %18, %19 : vector<8x10x20xf32>
    %cst_10 = arith.constant dense<0.000000e+00> : vector<8x10xf32>
    %21 = vector.multi_reduction <add>, %20, %cst_10 [2] : vector<8x10x20xf32> to vector<8x10xf32>
    %22 = vector.broadcast %4 : vector<1x10xf32> to vector<8x10xf32>
    %23 = arith.addf %21, %22 : vector<8x10xf32>
    %cst_11 = arith.constant 0.000000e+00 : f32
    %24 = vector.broadcast %cst_11 : f32 to vector<8x10xf32>
    %25 = arith.maximumf %23, %24 : vector<8x10xf32>
    %26 = vector.shape_cast %25 : vector<8x10xf32> to vector<8x1x10xf32>
    %27 = vector.shape_cast %5 : vector<10x10xf32> to vector<1x10x10xf32>
    %28 = vector.broadcast %26 : vector<8x1x10xf32> to vector<8x10x10xf32>
    %29 = vector.broadcast %27 : vector<1x10x10xf32> to vector<8x10x10xf32>
    %30 = arith.mulf %28, %29 : vector<8x10x10xf32>
    %cst_12 = arith.constant dense<0.000000e+00> : vector<8x10xf32>
    %31 = vector.multi_reduction <add>, %30, %cst_12 [2] : vector<8x10x10xf32> to vector<8x10xf32>
    %32 = vector.broadcast %6 : vector<1x10xf32> to vector<8x10xf32>
    %33 = arith.addf %31, %32 : vector<8x10xf32>
    %cst_13 = arith.constant 0.000000e+00 : f32
    %34 = vector.broadcast %cst_13 : f32 to vector<8x10xf32>
    %35 = arith.maximumf %33, %34 : vector<8x10xf32>
    %cst_14 = arith.constant dense<0.000000e+00> : vector<8x256xf32>
    %36 = tpu.matmul %35, %7, %cst_14 {dimension_numbers = #tpu.dot_dimension_numbers<[1], [0], [0], [1], [0, 0, 1, 1], [], []>} : vector<8x10xf32>, vector<10x256xf32>, vector<8x256xf32> -> vector<8x256xf32>
    %37 = vector.broadcast %8 : vector<1x256xf32> to vector<8x256xf32>
    %38 = arith.addf %36, %37 : vector<8x256xf32>
    %cst_15 = arith.constant 0.000000e+00 : f32
    %39 = vector.broadcast %cst_15 : f32 to vector<8x256xf32>
    %40 = arith.maximumf %38, %39 : vector<8x256xf32>
    %c0_16 = arith.constant 0 : index
    %c0_17 = arith.constant 0 : index
    %41 = vector.load %arg3[%c0_16, %c0_17] : memref<256x512xbf16, #tpu.memory_space<vmem>>, vector<256x512xbf16>
    %42 = arith.extf %41 : vector<256x512xbf16> to vector<256x512xf32>
    %cst_18 = arith.constant dense<0.000000e+00> : vector<8x512xf32>
    %43 = tpu.matmul %40, %42, %cst_18 {dimension_numbers = #tpu.dot_dimension_numbers<[1], [0], [0], [1], [0, 0, 1, 1], [], []>} : vector<8x256xf32>, vector<256x512xf32>, vector<8x512xf32> -> vector<8x512xf32>
    %cst_19 = arith.constant 0.000000e+00 : f32
    %44 = vector.broadcast %cst_19 : f32 to vector<8x512xf32>
    %45 = arith.maximumf %43, %44 : vector<8x512xf32>
    %c0_20 = arith.constant 0 : index
    %c0_21 = arith.constant 0 : index
    %46 = vector.load %arg4[%c0_20, %c0_21] : memref<512x896xbf16, #tpu.memory_space<vmem>>, vector<512x896xbf16>
    %47 = arith.extf %46 : vector<512x896xbf16> to vector<512x896xf32>
    %cst_22 = arith.constant dense<0.000000e+00> : vector<8x896xf32>
    %48 = tpu.matmul %45, %47, %cst_22 {dimension_numbers = #tpu.dot_dimension_numbers<[1], [0], [0], [1], [0, 0, 1, 1], [], []>} : vector<8x512xf32>, vector<512x896xf32>, vector<8x896xf32> -> vector<8x896xf32>
    %49 = arith.negf %48 : vector<8x896xf32>
    %50 = math.exp %49 : vector<8x896xf32>
    %cst_23 = arith.constant 1.000000e+00 : f32
    %51 = vector.broadcast %cst_23 : f32 to vector<8x896xf32>
    %52 = arith.addf %51, %50 : vector<8x896xf32>
    %53 = arith.divf %51, %52 : vector<8x896xf32>
    %c0_24 = arith.constant 0 : index
    %c0_25 = arith.constant 0 : index
    %54 = vector.load %arg5[%c0_24, %c0_25] : memref<8x896xf32, #tpu.memory_space<vmem>>, vector<8x896xf32>
    tpu.vector_store %arg5[%c0_24, %c0_25], %53 {strides = array<i32>} : memref<8x896xf32, #tpu.memory_space<vmem>>, vector<8x896xf32>,
    return
  }
  func.func @transform_0(%arg0: i32) -> (i32, i32) {
    %c0_i32 = arith.constant 0 : i32
    %c0_i32_0 = arith.constant 0 : i32
    return %arg0, %c0_i32 : i32, i32
  }
  func.func @transform_1(%arg0: i32) -> (i32, i32) {
    %c0_i32 = arith.constant 0 : i32
    %c0_i32_0 = arith.constant 0 : i32
    %c0_i32_1 = arith.constant 0 : i32
    return %c0_i32, %c0_i32_0 : i32, i32
  }
  func.func @transform_2(%arg0: i32) -> (i32, i32) {
    %c0_i32 = arith.constant 0 : i32
    %c0_i32_0 = arith.constant 0 : i32
    %c0_i32_1 = arith.constant 0 : i32
    return %c0_i32, %c0_i32_0 : i32, i32
  }
  func.func @transform_3(%arg0: i32) -> (i32, i32) {
    %c0_i32 = arith.constant 0 : i32
    %c0_i32_0 = arith.constant 0 : i32
    %c0_i32_1 = arith.constant 0 : i32
    return %c0_i32, %c0_i32_0 : i32, i32
  }
  func.func @transform_4(%arg0: i32) -> (i32, i32) {
    %c0_i32 = arith.constant 0 : i32
    %c0_i32_0 = arith.constant 0 : i32
    return %arg0, %c0_i32 : i32, i32
  }
}

</mosaic_0001>

<bundles_post_ra>
// kernel: label_to_image_net.1
= control target key start
LH: loop header
LB: loop body
LE: loop exit
PB: predicated region body
PF: predicated region fallthrough
CT: control target
= control target key end

     0   :  { %9 = vsyncpa [#allocation3], 0  ;;  %s6818_s0 = inlined_call_operand.vmem [shape: f32[8,1], index: 0, kind: input, shape index: {}]   ;;  %s6819_s1 = inlined_call_operand.hbm [shape: f32[40,256], index: 1, kind: input, shape index: {}]   ;;  %s6820_s2 = inlined_call_operand.hbm [shape: bf16[256,512], index: 2, kind: input, shape index: {}]   ;;  %s6821_s3 = inlined_call_operand.hbm [shape: bf16[512,896], index: 3, kind: input, shape index: {}]   ;;  %s6822_s4 = inlined_call_operand.hbm [shape: f32[8,896], index: 4, kind: output, shape index: {}]  }
   0x1   :  { %10 = vsyncpa [#allocation6], 0 }
   0x2   :  { %11 = vsyncpa [#allocation4], 0  ;;  %s5546_s15 = smov [#allocation5]   ;;  %s5547_s17 = smov [#allocation2]  }
   0x3   :  { %s31_s16 = sshll.u32 %s5546_s15, 4  ;;  %s19_s18 = sshll.u32 %s5547_s17, 4  ;;  %s32_s16 = int_to_ptr.vmem [resolvable:$true] %s31_s16  ;;  %s5583_s18 = int_to_ptr.vmem [resolvable:$true] %s19_s18 }
   0x4   :  { %s5452_s21 = scalar_lea.hbm %s6820_s2, 8192 }
   0x5   :  { %p5453_p0 = scmp.ne.s32.totalorder %s6820_s2, %s5452_s21  ;;  %p5456_p1 = scmp.lt.u32.totalorder %s5452_s21, %s6820_s2 }
   0x7   :  { %p5458_p2 = pnand %p5456_p1, %p5453_p0 }
   0x9   :  { %5461 = shalt.err (!%p5458_p2)
}
   0xa   :  { %s5462_s26 = scalar_lea.vmem %s32_s16, 8192  ;;  %p5467_p4 = scmp.lt.s32.totalorder %s32_s16, %s32_s16 }
   0xb   :  { %p5463_p3 = scmp.ne.s32.totalorder %s32_s16, %s5462_s26  ;;  %p5468_p5 = scmp.lt.s32.totalorder %s5462_s26, %s5462_s26 }
   0xd   :  { %p5469_p6 = por %p5468_p5, %p5467_p4 }
   0xf   :  { %p5470_p7 = pnand %p5469_p6, %p5463_p3 }
  0x11   :  { %5473 = shalt.err (!%p5470_p7)
}
  0x12   :  { %s5548_s27 = smov 256   ;;  %s5549_s28 = smov 16  }
  0x13   :  { %37 = dma.hbm_to_vmem [thread:$0]  %s6820_s2, 8192, %s32_s16, [#allocation6], %s5548_s27, %s5548_s27, %s5549_s28  }
  0x14   :  { %s5474_s7 = scalar_lea.hbm %s6819_s1, 1280 }
  0x15   :  { %p5475_p8 = scmp.ne.s32.totalorder %s6819_s1, %s5474_s7  ;;  %p5478_p9 = scmp.lt.u32.totalorder %s5474_s7, %s6819_s1 }
  0x17   :  { %p5480_p10 = pnand %p5478_p9, %p5475_p8 }
  0x19   :  { %5483 = shalt.err (!%p5480_p10)
}
  0x1a   :  { %s5484_s12 = scalar_lea.vmem %s5583_s18, 1280  ;;  %p5489_p12 = scmp.lt.s32.totalorder %s5583_s18, %s5583_s18 }
  0x1b   :  { %p5485_p11 = scmp.ne.s32.totalorder %s5583_s18, %s5484_s12  ;;  %p5490_p13 = scmp.lt.s32.totalorder %s5484_s12, %s5484_s12 }
  0x1d   :  { %p5491_p0 = por %p5490_p13, %p5489_p12 }
  0x1f   :  { %p5492_p1 = pnand %p5491_p0, %p5485_p11 }
  0x21   :  { %5495 = shalt.err (!%p5492_p1)
}
  0x22   :  { %25 = dma.hbm_to_vmem [thread:$0]  %s6819_s1, 1280, %s5583_s18, [#allocation3], %s5548_s27, %s5548_s27, %s5549_s28  }
  0x23   :  { %s5550_s14 = smov [#allocation7]   ;;  %s5496_s19 = scalar_lea.hbm %s6821_s3, 28672 }
  0x24   :  { %s43_s15 = sshll.u32 %s5550_s14, 4  ;;  %p5497_p2 = scmp.ne.s32.totalorder %s6821_s3, %s5496_s19  ;;  %s44_s15 = int_to_ptr.vmem [resolvable:$true] %s43_s15 }
  0x25   :  { %p5500_p3 = scmp.lt.u32.totalorder %s5496_s19, %s6821_s3 }
  0x27   :  { %p5502_p4 = pnand %p5500_p3, %p5497_p2 }
  0x29   :  { %5505 = shalt.err (!%p5502_p4)
}
  0x2a   :  { %s5506_s24 = scalar_lea.vmem %s44_s15, 28672  ;;  %p5511_p6 = scmp.lt.s32.totalorder %s44_s15, %s44_s15 }
  0x2b   :  { %p5507_p5 = scmp.ne.s32.totalorder %s44_s15, %s5506_s24  ;;  %p5512_p7 = scmp.lt.s32.totalorder %s5506_s24, %s5506_s24 }
  0x2d   :  { %p5513_p8 = por %p5512_p7, %p5511_p6 }
  0x2f   :  { %p5514_p9 = pnand %p5513_p8, %p5507_p5 }
  0x31   :  { %5517 = shalt.err (!%p5514_p9)
}
  0x32   :  { %s5551_s1 = smov 448   ;;  %s5552_s18 = smov 28  }
  0x33   :  { %49 = dma.hbm_to_vmem [thread:$0]  %s6821_s3, 28672, %s44_s15, [#allocation6], %s5551_s1, %s5551_s1, %s5552_s18  }
  0x34   :  { %5540 = dma.done.wait [#allocation3], 1280  }
  0x35   :  { %5541 = vsyncadd [#allocation3], 4294966016 }
  0x36   :  { %5542 = dma.done.wait [#allocation6], 36864  }
  0x37   :  { %5543 = vsyncadd [#allocation6], 4294930432  ;;  %v6824_v0 = vlaneseq  ;;  %v5553_v1 = vmov 0   ;;  %v59_v4 = vld [vmem:[%s6818_s0] sm:$0xff]  ;;  %v64_v5 = vld [vmem:[#allocation2 + $0x14] ss:$0 sm:$0xff] }
  0x38   :  { %5006 = vset.pattern.permute.xlu0 %v5553_v1  ;;  %5007 = vset.pattern.permute.xlu1 %v5553_v1  ;;  %v65_v6 = vld [vmem:[#allocation2 + $0x10] sm:$0xe0]  ;;  %v66_v13 = vld [vmem:[#allocation2 + $0x20] sm:$0x7f]  ;;  %v5554_v25 = vmov 1966171168  }
  0x39   :  { %v5627_v2 = vshrl.u32 %v6824_v0, 7  ;;  %76 = vperm.xlu0 %5006, %v59_v4   ;;  %245 = vbcast.lane.b32.xlu1 %v64_v5, 262  ;;  %v85_v26 = vunpack.c.l.s4 %v5554_v25  ;;  %v60_v27 = vld [vmem:[#allocation2] ss:$0 sm:$0xff]  ;;  %v61_v29 = vld [vmem:[#allocation2 + $0x1] ss:$0 sm:$0xff] }
  0x3a   :  { %v5646_v40 = vld [vmem:[#allocation2 + $0x10] sm:$0xf]  ;;  %v62_v41 = vld [vmem:[#allocation2] sm:$0xfc]  ;;  %vm192_vm0 = vcmask 158720   ;;  %vm188_vm1 = vcmask 162818  }
  0x3b   :  { %v285_v3 = vsub.s32 5, %v5627_v2  ;;  %v297_v8 = vsub.s32 6, %v5627_v2  ;;  %v309_v10 = vsub.s32 7, %v5627_v2  ;;  %v5636_v11 = vsub.s32 0, %v5627_v2  ;;  %s5557_s0 = smov [#allocation8]  }
  0x3c   :  { %v6823_v15 = vsub.s32 1, %v5627_v2  ;;  %v345_v17 = vsub.s32 2, %v5627_v2  ;;  %v357_v19 = vsub.s32 3, %v5627_v2  ;;  %v369_v21 = vsub.s32 4, %v5627_v2  ;;  %s4028_s3 = sshll.u32 %s5557_s0, 4  ;;  %s4029_s3 = int_to_ptr.vmem [resolvable:$true] %s4028_s3 }
  0x3d   :  { %v286_v7 = vrot.slane %v65_v6, %v285_v3  ;;  %241 = vbcast.lane.b32.xlu0 %v64_v5, 510  ;;  %v298_v9 = vrot.slane %v65_v6, %v297_v8  ;;  %6828 = vst [vmem:[#allocation12_spill] sm:$0xff] %v5636_v11  ;;  %v310_v12 = vrot.slane %v65_v6, %v309_v10  ;;  %v86_v28 = vunpack.c.0.s8 %v85_v26  ;;  %s5518_s29 = scalar_lea.vmem %s4029_s3, 896  ;;  %p5523_p11 = scmp.lt.s32.totalorder %s4029_s3, %s4029_s3 }
  0x3e   :  { %v322_v14 = vrot.slane %v66_v13, %v5636_v11  ;;  %v334_v16 = vrot.slane %v66_v13, %v6823_v15  ;;  %v346_v18 = vrot.slane %v66_v13, %v345_v17  ;;  %v358_v20 = vrot.slane %v66_v13, %v357_v19  ;;  %p5519_p10 = scmp.ne.s32.totalorder %s4029_s3, %s5518_s29  ;;  %p5524_p12 = scmp.lt.s32.totalorder %s5518_s29, %s5518_s29 }
  0x3f   :  { %289 = vbcast.lane.b32.xlu1 %v286_v7, 510  ;;  %v370_v22 = vrot.slane %v66_v13, %v369_v21  ;;  %v382_v23 = vrot.slane %v66_v13, %v285_v3  ;;  %v394_v24 = vrot.slane %v66_v13, %v297_v8  ;;  %v89_v32 = vsub.s32 %v86_v28, %v5627_v2 }
  0x40   :  { %vm1235_vm2 = vcmask 113712   ;;  %vm1948_vm3 = vcmask 1041409   ;;  %vm1950_vm4 = vcmask 1042434   ;;  %vm1952_vm5 = vcmask 1043459   ;;  %p5525_p13 = por %p5524_p12, %p5523_p11 }
  0x41   :  { %293 = vbcast.lane.b32.xlu0 %v286_v7, 262  ;;  %vm1954_vm6 = vcmask 1044484   ;;  %vm1956_vm7 = vcmask 1045509   ;;  %vm1958_vm8 = vcmask 1046534   ;;  %vm1960_vm9 = vcmask 1047559  }
  0x42   :  { %vm2039_vm10 = vcmask 74752   ;;  %vm2035_vm11 = vcmask 80896   ;;  %vm2285_vm12 = vcmask 1041408   ;;  %vm5555_vm13 = vmmov 1   ;;  %p5526_p0 = pnand %p5525_p13, %p5519_p10 }
  0x43   :  { %301 = vbcast.lane.b32.xlu1 %v298_v9, 510  ;;  %vm4119_vm14 = vmpackc.low %vm2285_vm12, %vm5555_vm13  ;;  %vm2211_vm15 = vcmask 130112  }
  0x45   :  { %305 = vbcast.lane.b32.xlu0 %v298_v9, 262 }
  0x47   :  { %313 = vbcast.lane.b32.xlu1 %v310_v12, 510 }
  0x49   :  { %317 = vbcast.lane.b32.xlu0 %v310_v12, 262 }
  0x4b   :  { %325 = vbcast.lane.b32.xlu1 %v322_v14, 510 }
  0x4d   :  { %329 = vbcast.lane.b32.xlu0 %v322_v14, 262 }
  0x4f   :  { %337 = vbcast.lane.b32.xlu1 %v334_v16, 510 }
  0x51   :  { %341 = vbcast.lane.b32.xlu0 %v334_v16, 262 }
  0x53   :  { %349 = vbcast.lane.b32.xlu1 %v346_v18, 510 }
  0x55   :  { %353 = vbcast.lane.b32.xlu0 %v346_v18, 262 }
  0x57   :  { %361 = vbcast.lane.b32.xlu1 %v358_v20, 510 }
  0x59   :  { %365 = vbcast.lane.b32.xlu0 %v358_v20, 262 }
  0x5b   :  { %373 = vbcast.lane.b32.xlu1 %v370_v22, 510 }
  0x5d   :  { %377 = vbcast.lane.b32.xlu0 %v370_v22, 262 }
  0x5f   :  { %385 = vbcast.lane.b32.xlu1 %v382_v23, 510 }
  0x61   :  { %389 = vbcast.lane.b32.xlu0 %v382_v23, 262 }
  0x63   :  { %397 = vbcast.lane.b32.xlu1 %v394_v24, 510 }
  0x65   :  { %401 = vbcast.lane.b32.xlu0 %v394_v24, 262 }
  0xb8   :  { %v77_v30 = vpop.permute.xlu0 %76 }
  0xb9   :  { %v79_v31 = vmul.f32 %v77_v30, %v60_v27  ;;  %v5680_v30 = vpop.permute.xlu1 %245 }
  0xbb   :  { %v80_v33 = vadd.f32 %v79_v31, %v61_v29 }
  0xbc   :  { %v5682_v31 = vpop.permute.xlu0 %241 }
  0xbd   :  { %v81_v34 = vmax.f32 %v80_v33, 0.0 }
  0xbf   :  { %v83_v35 = vcombine.high %v81_v34, %v81_v34  ;;  %v90_v36 = vrot.slane %v81_v34, %v89_v32 }
  0xc0   :  { %v5686_v33 = vpop.permute.xlu0 %293 }
  0xc1   :  { %v97_v37 = vrot.slane %v83_v35, %v89_v32  ;;  %v98_v38 = vcombine.high %v90_v36, %v90_v36  ;;  %v106_v39 = vrot.slane %v90_v36, %v89_v32 }
  0xc3   :  { %v135_v42 = vrot.slane %v106_v39, %v5636_v11  ;;  %v120_v43 = vrot.slane %v98_v38, %v89_v32  ;;  %v99_v44 = vcombine.high %v97_v37, %v97_v37  ;;  %v113_v45 = vrot.slane %v97_v37, %v89_v32 }
  0xc4   :  { %v128_v51 = vcombine.high %v106_v39, %v106_v39  ;;  %v5690_v35 = vpop.permute.xlu0 %305 }
  0xc5   :  { %v173_v46 = vmul.f32 %v135_v42, %v5646_v40  ;;  %v172_v47 = vmul.f32 %v135_v42, %v62_v41  ;;  %v139_v48 = vrot.slane %v120_v43, %v5636_v11  ;;  %v127_v49 = vrot.slane %v99_v44, %v89_v32  ;;  %v5684_v32 = vpop.permute.xlu1 %289 }
  0xc6   :  { %v129_v50 = vcombine.high %v113_v45, %v113_v45  ;;  %v143_v60 = vrot.slane %v128_v51, %v5636_v11  ;;  %v151_v10 = vrot.slane %v113_v45, %v5636_v11  ;;  %v130_v14 = vcombine.high %v120_v43, %v120_v43 }
  0xc7   :  { %v193_v52 = vsel %vm192_vm0, %v173_v46, 0.0  ;;  %v189_v53 = vsel %vm188_vm1, %v172_v47, 0.0  ;;  %v174_v54 = vmul.f32 %v139_v48, %v62_v41  ;;  %v155_v55 = vrot.slane %v127_v49, %v5636_v11 }
  0xc8   :  { %194 = vadd.xlane.f32.xlu1 %v193_v52  ;;  %190 = vadd.xlane.f32.xlu0 %v189_v53  ;;  %v159_v56 = vrot.slane %v129_v50, %v5636_v11  ;;  %v131_v58 = vcombine.high %v127_v49, %v127_v49  ;;  %v175_v59 = vmul.f32 %v139_v48, %v5646_v40  ;;  %v5694_v37 = vpop.permute.xlu0 %317 }
  0xc9   :  { %v182_v57 = vmul.f32 %v155_v55, %v62_v41  ;;  %v196_v61 = vsel %vm188_vm1, %v174_v54, 0.0  ;;  %v176_v5 = vmul.f32 %v143_v60, %v62_v41  ;;  %v177_v9 = vmul.f32 %v143_v60, %v5646_v40  ;;  %v5688_v34 = vpop.permute.xlu1 %301 }
  0xca   :  { %v184_v63 = vmul.f32 %v159_v56, %v62_v41  ;;  %v163_v1 = vrot.slane %v131_v58, %v5636_v11  ;;  %v199_v3 = vsel %vm192_vm0, %v175_v59, 0.0  ;;  %v180_v13 = vmul.f32 %v151_v10, %v62_v41 }
  0xcb   :  { %v220_v62 = vsel %vm188_vm1, %v182_v57, 0.0  ;;  %v202_v7 = vsel %vm188_vm1, %v176_v5, 0.0  ;;  %v205_v12 = vsel %vm192_vm0, %v177_v9, 0.0  ;;  %v181_v17 = vmul.f32 %v151_v10, %v5646_v40 }
  0xcc   :  { %197 = vadd.xlane.f32.xlu1 %v196_v61  ;;  %221 = vadd.xlane.f32.xlu0 %v220_v62  ;;  %v226_v4 = vsel %vm188_vm1, %v184_v63, 0.0  ;;  %v186_v6 = vmul.f32 %v163_v1, %v62_v41  ;;  %v214_v16 = vsel %vm188_vm1, %v180_v13, 0.0  ;;  %v147_v18 = vrot.slane %v130_v14, %v5636_v11  ;;  %v5698_v39 = vpop.permute.xlu0 %329 }
  0xcd   :  { %v217_v19 = vsel %vm192_vm0, %v181_v17, 0.0  ;;  %v183_v24 = vmul.f32 %v155_v55, %v5646_v40  ;;  %v185_v26 = vmul.f32 %v159_v56, %v5646_v40  ;;  %v187_v28 = vmul.f32 %v163_v1, %v5646_v40  ;;  %v5692_v36 = vpop.permute.xlu1 %313 }
  0xce   :  { %v232_v8 = vsel %vm188_vm1, %v186_v6, 0.0  ;;  %v178_v20 = vmul.f32 %v147_v18, %v62_v41  ;;  %v179_v22 = vmul.f32 %v147_v18, %v5646_v40 }
  0xcf   :  { %v223_v25 = vsel %vm192_vm0, %v183_v24, 0.0  ;;  %v229_v27 = vsel %vm192_vm0, %v185_v26, 0.0  ;;  %v235_v29 = vsel %vm192_vm0, %v187_v28, 0.0 }
  0xd0   :  { %200 = vadd.xlane.f32.xlu1 %v199_v3  ;;  %227 = vadd.xlane.f32.xlu0 %v226_v4  ;;  %v208_v21 = vsel %vm188_vm1, %v178_v20, 0.0  ;;  %v211_v23 = vsel %vm192_vm0, %v179_v22, 0.0  ;;  %v5702_v41 = vpop.permute.xlu0 %341 }
  0xd1   :  { %v5696_v38 = vpop.permute.xlu1 %325 }
  0xd4   :  { %203 = vadd.xlane.f32.xlu1 %v202_v7  ;;  %233 = vadd.xlane.f32.xlu0 %v232_v8  ;;  %v5706_v43 = vpop.permute.xlu0 %353 }
  0xd5   :  { %v5700_v40 = vpop.permute.xlu1 %337 }
  0xd8   :  { %206 = vadd.xlane.f32.xlu1 %v205_v12  ;;  %v5710_v45 = vpop.permute.xlu0 %365 }
  0xd9   :  { %v5704_v42 = vpop.permute.xlu1 %349 }
  0xdc   :  { %215 = vadd.xlane.f32.xlu1 %v214_v16  ;;  %v5714_v47 = vpop.permute.xlu0 %377 }
  0xdd   :  { %v5708_v44 = vpop.permute.xlu1 %361 }
  0xe0   :  { %218 = vadd.xlane.f32.xlu1 %v217_v19  ;;  %v5718_v49 = vpop.permute.xlu0 %389 }
  0xe1   :  { %v5712_v46 = vpop.permute.xlu1 %373 }
  0xe4   :  { %209 = vadd.xlane.f32.xlu1 %v208_v21  ;;  %v5722_v51 = vpop.permute.xlu0 %401 }
  0xe5   :  { %v5716_v48 = vpop.permute.xlu1 %385 }
  0xe8   :  { %212 = vadd.xlane.f32.xlu1 %v211_v23 }
  0xe9   :  { %v5720_v50 = vpop.permute.xlu1 %397 }
  0xec   :  { %224 = vadd.xlane.f32.xlu1 %v223_v25 }
  0xf0   :  { %230 = vadd.xlane.f32.xlu1 %v229_v27 }
  0xf4   :  { %236 = vadd.xlane.f32.xlu1 %v235_v29 }
 0x155   :  { %v195_v52 = vpop.xlane.xlu1 %194  ;;  %v191_v53 = vpop.xlane.xlu0 %190 }
 0x156   :  { %v250_v54 = vadd.f32 %v5680_v30, %v195_v52  ;;  %v249_v55 = vadd.f32 %v5682_v31, %v191_v53 }
 0x158   :  { %v266_v56 = vmax.f32 %v250_v54, 0.0  ;;  %v265_v57 = vmax.f32 %v249_v55, 0.0 }
 0x159   :  { %v198_v8 = vpop.xlane.xlu1 %197 }
 0x15a   :  { %v424_v58 = vmul.f32 %v5686_v33, %v266_v56  ;;  %v423_v59 = vmul.f32 %v5684_v32, %v265_v57  ;;  %v426_v60 = vmul.f32 %v5690_v35, %v266_v56  ;;  %v425_v61 = vmul.f32 %v5688_v34, %v265_v57 }
 0x15b   :  { %v428_v62 = vmul.f32 %v5694_v37, %v266_v56  ;;  %v427_v63 = vmul.f32 %v5692_v36, %v265_v57  ;;  %v430_v1 = vmul.f32 %v5698_v39, %v266_v56  ;;  %v429_v3 = vmul.f32 %v5696_v38, %v265_v57 }
 0x15c   :  { %747 = vperm.xlu0 %5006, %v424_v58   ;;  %744 = vperm.xlu1 %5007, %v423_v59   ;;  %v432_v4 = vmul.f32 %v5702_v41, %v266_v56  ;;  %v431_v5 = vmul.f32 %v5700_v40, %v265_v57  ;;  %v434_v6 = vmul.f32 %v5706_v43, %v266_v56 }
 0x15d   :  { %v433_v7 = vmul.f32 %v5704_v42, %v265_v57  ;;  %v436_v9 = vmul.f32 %v5710_v45, %v266_v56  ;;  %v435_v10 = vmul.f32 %v5708_v44, %v265_v57  ;;  %v438_v12 = vmul.f32 %v5714_v47, %v266_v56  ;;  %v201_v14 = vpop.xlane.xlu1 %200 }
 0x15e   :  { %v437_v13 = vmul.f32 %v5712_v46, %v265_v57  ;;  %v251_v16 = vadd.f32 %v5682_v31, %v198_v8  ;;  %v252_v17 = vadd.f32 %v5680_v30, %v201_v14  ;;  %v440_v18 = vmul.f32 %v5718_v49, %v266_v56 }
 0x15f   :  { %v439_v19 = vmul.f32 %v5716_v48, %v265_v57  ;;  %v442_v23 = vmul.f32 %v5722_v51, %v266_v56  ;;  %v441_v24 = vmul.f32 %v5720_v50, %v265_v57 }
 0x160   :  { %753 = vperm.xlu0 %5006, %v426_v60   ;;  %750 = vperm.xlu1 %5007, %v425_v61   ;;  %v5746_v21 = vmax.f32 %v251_v16, 0.0  ;;  %v5748_v22 = vmax.f32 %v252_v17, 0.0 }
 0x161   :  { %v204_v20 = vpop.xlane.xlu1 %203 }
 0x162   :  { %v444_v25 = vmul.f32 %v5686_v33, %v5748_v22  ;;  %v443_v26 = vmul.f32 %v5684_v32, %v5746_v21  ;;  %v253_v28 = vadd.f32 %v5682_v31, %v204_v20  ;;  %v446_v52 = vmul.f32 %v5690_v35, %v5748_v22 }
 0x163   :  { %v445_v53 = vmul.f32 %v5688_v34, %v5746_v21  ;;  %v448_v56 = vmul.f32 %v5694_v37, %v5748_v22  ;;  %v447_v57 = vmul.f32 %v5692_v36, %v5746_v21  ;;  %v452_v8 = vmul.f32 %v5702_v41, %v5748_v22 }
 0x164   :  { %759 = vperm.xlu0 %5006, %v428_v62   ;;  %756 = vperm.xlu1 %5007, %v427_v63   ;;  %v5762_v54 = vmax.f32 %v253_v28, 0.0  ;;  %v450_v63 = vmul.f32 %v5698_v39, %v5748_v22  ;;  %v454_v20 = vmul.f32 %v5706_v43, %v5748_v22  ;;  %v456_v28 = vmul.f32 %v5710_v45, %v5748_v22 }
 0x165   :  { %v207_v27 = vpop.xlane.xlu1 %206 }
 0x166   :  { %v254_v29 = vadd.f32 %v5680_v30, %v207_v27  ;;  %v463_v59 = vmul.f32 %v5684_v32, %v5762_v54  ;;  %v465_v61 = vmul.f32 %v5688_v34, %v5762_v54  ;;  %v469_v14 = vmul.f32 %v5696_v38, %v5762_v54 }
 0x168   :  { %765 = vperm.xlu0 %5006, %v430_v1   ;;  %762 = vperm.xlu1 %5007, %v429_v3   ;;  %v5764_v55 = vmax.f32 %v254_v29, 0.0  ;;  %v449_v1 = vmul.f32 %v5696_v38, %v5746_v21  ;;  %v455_v29 = vmul.f32 %v5708_v44, %v5746_v21 }
 0x169   :  { %v216_v62 = vpop.xlane.xlu1 %215 }
 0x16a   :  { %v464_v58 = vmul.f32 %v5686_v33, %v5764_v55  ;;  %v466_v60 = vmul.f32 %v5690_v35, %v5764_v55  ;;  %v468_v3 = vmul.f32 %v5694_v37, %v5764_v55 }
 0x16c   :  { %771 = vperm.xlu0 %5006, %v432_v4   ;;  %768 = vperm.xlu1 %5007, %v431_v5   ;;  %v467_v4 = vmul.f32 %v5692_v36, %v5762_v54 }
 0x16d   :  { %v219_v5 = vpop.xlane.xlu1 %218 }
 0x170   :  { %777 = vperm.xlu0 %5006, %v434_v6   ;;  %774 = vperm.xlu1 %5007, %v433_v7   ;;  %v257_v6 = vadd.f32 %v5682_v31, %v216_v62  ;;  %v258_v7 = vadd.f32 %v5680_v30, %v219_v5  ;;  %v460_v62 = vmul.f32 %v5718_v49, %v5748_v22 }
 0x171   :  { %v461_v5 = vmul.f32 %v5720_v50, %v5746_v21 }
 0x174   :  { %783 = vperm.xlu0 %5006, %v436_v9   ;;  %780 = vperm.xlu1 %5007, %v435_v10   ;;  %v451_v9 = vmul.f32 %v5700_v40, %v5746_v21  ;;  %v5792_v10 = vmax.f32 %v257_v6, 0.0 }
 0x176   :  { %v503_v17 = vmul.f32 %v5684_v32, %v5792_v10  ;;  %v507_v27 = vmul.f32 %v5692_v36, %v5792_v10 }
 0x178   :  { %789 = vperm.xlu0 %5006, %v438_v12   ;;  %786 = vperm.xlu1 %5007, %v437_v13   ;;  %v5794_v12 = vmax.f32 %v258_v7, 0.0  ;;  %v470_v13 = vmul.f32 %v5698_v39, %v5764_v55 }
 0x17a   :  { %v504_v16 = vmul.f32 %v5686_v33, %v5794_v12 }
 0x17c   :  { %795 = vperm.xlu0 %5006, %v440_v18   ;;  %792 = vperm.xlu1 %5007, %v439_v19   ;;  %v506_v18 = vmul.f32 %v5690_v35, %v5794_v12  ;;  %v505_v19 = vmul.f32 %v5688_v34, %v5792_v10 }
 0x180   :  { %801 = vperm.xlu0 %5006, %v442_v23   ;;  %798 = vperm.xlu1 %5007, %v441_v24   ;;  %v453_v23 = vmul.f32 %v5704_v42, %v5746_v21  ;;  %v472_v24 = vmul.f32 %v5702_v41, %v5764_v55 }
 0x184   :  { %807 = vperm.xlu0 %5006, %v444_v25   ;;  %804 = vperm.xlu1 %5007, %v443_v26   ;;  %v471_v25 = vmul.f32 %v5700_v40, %v5762_v54  ;;  %v508_v26 = vmul.f32 %v5694_v37, %v5794_v12 }
 0x188   :  { %813 = vperm.xlu0 %5006, %v446_v52   ;;  %810 = vperm.xlu1 %5007, %v445_v53   ;;  %v474_v52 = vmul.f32 %v5706_v43, %v5764_v55  ;;  %v473_v53 = vmul.f32 %v5704_v42, %v5762_v54 }
 0x18c   :  { %819 = vperm.xlu0 %5006, %v448_v56   ;;  %816 = vperm.xlu1 %5007, %v447_v57   ;;  %v210_v56 = vpop.xlane.xlu1 %209  ;;  %v510_v57 = vmul.f32 %v5698_v39, %v5794_v12 }
 0x190   :  { %867 = vperm.xlu0 %5006, %v464_v58   ;;  %864 = vperm.xlu1 %5007, %v463_v59   ;;  %v509_v58 = vmul.f32 %v5696_v38, %v5792_v10  ;;  %v213_v59 = vpop.xlane.xlu1 %212 }
 0x194   :  { %873 = vperm.xlu0 %5006, %v466_v60   ;;  %870 = vperm.xlu1 %5007, %v465_v61   ;;  %v458_v60 = vmul.f32 %v5714_v47, %v5748_v22  ;;  %v457_v61 = vmul.f32 %v5712_v46, %v5746_v21 }
 0x198   :  { %825 = vperm.xlu0 %5006, %v450_v63   ;;  %822 = vperm.xlu1 %5007, %v449_v1   ;;  %v459_v63 = vmul.f32 %v5716_v48, %v5746_v21  ;;  %v222_v1 = vpop.xlane.xlu0 %221  ;;  %v511_v21 = vmul.f32 %v5700_v40, %v5792_v10 }
 0x19c   :  { %879 = vperm.xlu0 %5006, %v468_v3   ;;  %876 = vperm.xlu1 %5007, %v467_v4   ;;  %v225_v3 = vpop.xlane.xlu1 %224  ;;  %v462_v4 = vmul.f32 %v5722_v51, %v5748_v22  ;;  %v5844_v6 = vpop.xlane.xlu0 %227  ;;  %v512_v22 = vmul.f32 %v5702_v41, %v5794_v12 }
 0x1a0   :  { %831 = vperm.xlu0 %5006, %v452_v8   ;;  %828 = vperm.xlu1 %5007, %v451_v9   ;;  %v5846_v7 = vpop.xlane.xlu1 %230  ;;  %v476_v8 = vmul.f32 %v5710_v45, %v5764_v55  ;;  %v475_v9 = vmul.f32 %v5708_v44, %v5762_v54 }
 0x1a4   :  { %885 = vperm.xlu0 %5006, %v470_v13   ;;  %882 = vperm.xlu1 %5007, %v469_v14   ;;  %v5856_v13 = vpop.xlane.xlu0 %233  ;;  %v5858_v14 = vpop.xlane.xlu1 %236 }
 0x1a8   :  { %987 = vperm.xlu0 %5006, %v504_v16   ;;  %984 = vperm.xlu1 %5007, %v503_v17   ;;  %v478_v16 = vmul.f32 %v5714_v47, %v5764_v55  ;;  %v477_v17 = vmul.f32 %v5712_v46, %v5762_v54 }
 0x1ac   :  { %993 = vperm.xlu0 %5006, %v506_v18   ;;  %990 = vperm.xlu1 %5007, %v505_v19  }
 0x1b0   :  { %837 = vperm.xlu0 %5006, %v454_v20   ;;  %834 = vperm.xlu1 %5007, %v453_v23   ;;  %v255_v20 = vadd.f32 %v5682_v31, %v210_v56  ;;  %v256_v23 = vadd.f32 %v5680_v30, %v213_v59 }
 0x1b4   :  { %891 = vperm.xlu0 %5006, %v472_v24   ;;  %888 = vperm.xlu1 %5007, %v471_v25   ;;  %v480_v24 = vmul.f32 %v5718_v49, %v5764_v55  ;;  %v479_v25 = vmul.f32 %v5716_v48, %v5762_v54 }
 0x1b8   :  { %999 = vperm.xlu0 %5006, %v508_v26   ;;  %996 = vperm.xlu1 %5007, %v507_v27  }
 0x1bc   :  { %843 = vperm.xlu0 %5006, %v456_v28   ;;  %840 = vperm.xlu1 %5007, %v455_v29   ;;  %v5878_v28 = vmax.f32 %v255_v20, 0.0  ;;  %v5880_v29 = vmax.f32 %v256_v23, 0.0 }
 0x1be   :  { %v483_v59 = vmul.f32 %v5684_v32, %v5878_v28  ;;  %v494_v11 = vmul.f32 %v5706_v43, %v5880_v29 }
 0x1c0   :  { %897 = vperm.xlu0 %5006, %v474_v52   ;;  %894 = vperm.xlu1 %5007, %v473_v53   ;;  %v482_v52 = vmul.f32 %v5722_v51, %v5764_v55  ;;  %v481_v53 = vmul.f32 %v5720_v50, %v5762_v54  ;;  %v486_v54 = vmul.f32 %v5690_v35, %v5880_v29 }
 0x1c1   :  { %v485_v55 = vmul.f32 %v5688_v34, %v5878_v28 }
 0x1c4   :  { %1005 = vperm.xlu0 %5006, %v510_v57   ;;  %1002 = vperm.xlu1 %5007, %v509_v58   ;;  %v484_v58 = vmul.f32 %v5686_v33, %v5880_v29 }
 0x1c8   :  { %849 = vperm.xlu0 %5006, %v458_v60   ;;  %846 = vperm.xlu1 %5007, %v457_v61  }
 0x1cc   :  { %855 = vperm.xlu0 %5006, %v460_v62   ;;  %852 = vperm.xlu1 %5007, %v459_v63  }
 0x1d0   :  { %861 = vperm.xlu0 %5006, %v462_v4   ;;  %858 = vperm.xlu1 %5007, %v461_v5   ;;  %v259_v4 = vadd.f32 %v5682_v31, %v222_v1  ;;  %v260_v5 = vadd.f32 %v5680_v30, %v225_v3  ;;  %v490_v1 = vmul.f32 %v5698_v39, %v5880_v29 }
 0x1d1   :  { %v489_v3 = vmul.f32 %v5696_v38, %v5878_v28 }
 0x1d4   :  { %903 = vperm.xlu0 %5006, %v476_v8   ;;  %900 = vperm.xlu1 %5007, %v475_v9   ;;  %v488_v8 = vmul.f32 %v5694_v37, %v5880_v29  ;;  %v487_v9 = vmul.f32 %v5692_v36, %v5878_v28 }
 0x1d8   :  { %1011 = vperm.xlu0 %5006, %v512_v22   ;;  %1008 = vperm.xlu1 %5007, %v511_v21  }
 0x1db   :  { %v5864_v18 = vpop.permute.xlu1 %744  ;;  %v5866_v19 = vpop.permute.xlu0 %747 }
 0x1dc   :  { %909 = vperm.xlu0 %5006, %v478_v16   ;;  %906 = vperm.xlu1 %5007, %v477_v17   ;;  %v5916_v16 = vmax.f32 %v259_v4, 0.0  ;;  %v5918_v17 = vmax.f32 %v260_v5, 0.0  ;;  %v261_v4 = vadd.f32 %v5682_v31, %v5844_v6  ;;  %v262_v5 = vadd.f32 %v5680_v30, %v5846_v7 }
 0x1de   :  { %v528_v6 = vmul.f32 %v5694_v37, %v5918_v17  ;;  %v527_v7 = vmul.f32 %v5692_v36, %v5916_v16 }
 0x1df   :  { %v5874_v26 = vpop.permute.xlu1 %750  ;;  %v5876_v27 = vpop.permute.xlu0 %753 }
 0x1e0   :  { %915 = vperm.xlu0 %5006, %v480_v24   ;;  %912 = vperm.xlu1 %5007, %v479_v25   ;;  %v524_v24 = vmul.f32 %v5686_v33, %v5918_v17  ;;  %v523_v25 = vmul.f32 %v5684_v32, %v5916_v16 }
 0x1e3   :  { %v5886_v56 = vpop.permute.xlu1 %756  ;;  %v5888_v57 = vpop.permute.xlu0 %759 }
 0x1e4   :  { %921 = vperm.xlu0 %5006, %v482_v52   ;;  %918 = vperm.xlu1 %5007, %v481_v53  }
 0x1e7   :  { %v5894_v60 = vpop.permute.xlu1 %762  ;;  %v5896_v61 = vpop.permute.xlu0 %765 }
 0x1e8   :  { %927 = vperm.xlu0 %5006, %v484_v58   ;;  %924 = vperm.xlu1 %5007, %v483_v59   ;;  %v526_v58 = vmul.f32 %v5690_v35, %v5918_v17  ;;  %v525_v59 = vmul.f32 %v5688_v34, %v5916_v16 }
 0x1eb   :  { %v5902_v62 = vpop.permute.xlu1 %768  ;;  %v5904_v63 = vpop.permute.xlu0 %771 }
 0x1ec   :  { %933 = vperm.xlu0 %5006, %v486_v54   ;;  %930 = vperm.xlu1 %5007, %v485_v55  }
 0x1ef   :  { %v5912_v22 = vpop.permute.xlu1 %774  ;;  %v5914_v21 = vpop.permute.xlu0 %777 }
 0x1f0   :  { %939 = vperm.xlu0 %5006, %v488_v8   ;;  %936 = vperm.xlu1 %5007, %v487_v9   ;;  %v492_v8 = vmul.f32 %v5702_v41, %v5880_v29  ;;  %v491_v9 = vmul.f32 %v5700_v40, %v5878_v28 }
 0x1f3   :  { %v5924_v20 = vpop.permute.xlu1 %780  ;;  %v5926_v23 = vpop.permute.xlu0 %783 }
 0x1f4   :  { %945 = vperm.xlu0 %5006, %v490_v1   ;;  %942 = vperm.xlu1 %5007, %v489_v3  }
 0x1f7   :  { %v5932_v52 = vpop.permute.xlu1 %786  ;;  %v5934_v53 = vpop.permute.xlu0 %789 }
 0x1f8   :  { %1047 = vperm.xlu0 %5006, %v524_v24   ;;  %1044 = vperm.xlu1 %5007, %v523_v25   ;;  %v5956_v24 = vmax.f32 %v261_v4, 0.0  ;;  %v5958_v25 = vmax.f32 %v262_v5, 0.0 }
 0x1fa   :  { %v543_v4 = vmul.f32 %v5684_v32, %v5956_v24  ;;  %v546_v15 = vmul.f32 %v5690_v35, %v5958_v25  ;;  %v545_v0 = vmul.f32 %v5688_v34, %v5956_v24 }
 0x1fb   :  { %v5940_v54 = vpop.permute.xlu1 %792  ;;  %v5942_v55 = vpop.permute.xlu0 %795 }
 0x1fc   :  { %6829 = vst [vmem:[#allocation13_spill] sm:$0xff] %v5940_v54  ;;  %6830 = vst [vmem:[#allocation14_spill] sm:$0xff] %v5942_v55  ;;  %1053 = vperm.xlu0 %5006, %v526_v58   ;;  %1050 = vperm.xlu1 %5007, %v525_v59   ;;  %v493_v55 = vmul.f32 %v5704_v42, %v5878_v28  ;;  %v264_v54 = vadd.f32 %v5680_v30, %v5858_v14 }
 0x1fd   :  { %v547_v30 = vmul.f32 %v5692_v36, %v5956_v24  ;;  %v548_v14 = vmul.f32 %v5694_v37, %v5958_v25 }
 0x1ff   :  { %v5952_v1 = vpop.permute.xlu1 %798  ;;  %v5954_v3 = vpop.permute.xlu0 %801 }
 0x200   :  { %6831 = vst [vmem:[#allocation15_spill] sm:$0xff] %v5952_v1  ;;  %6832 = vst [vmem:[#allocation16_spill] sm:$0xff] %v5954_v3  ;;  %951 = vperm.xlu0 %5006, %v492_v8   ;;  %948 = vperm.xlu1 %5007, %v491_v9   ;;  %v544_v8 = vmul.f32 %v5686_v33, %v5958_v25  ;;  %v530_v3 = vmul.f32 %v5698_v39, %v5918_v17 }
 0x203   :  { %v5964_v58 = vpop.permute.xlu1 %804  ;;  %v5966_v59 = vpop.permute.xlu0 %807 }
 0x204   :  { %1059 = vperm.xlu0 %5006, %v528_v6   ;;  %1056 = vperm.xlu1 %5007, %v527_v7  }
 0x207   :  { %v5972_v5 = vpop.permute.xlu1 %810  ;;  %v5974_v9 = vpop.permute.xlu0 %813 }
 0x208   :  { %1107 = vperm.xlu0 %5006, %v544_v8   ;;  %1104 = vperm.xlu1 %5007, %v543_v4  }
 0x20b   :  { %v5980_v6 = vpop.permute.xlu1 %816  ;;  %v5982_v7 = vpop.permute.xlu0 %819 }
 0x20c   :  { %1113 = vperm.xlu0 %5006, %v546_v15   ;;  %1110 = vperm.xlu1 %5007, %v545_v0   ;;  %v529_v0 = vmul.f32 %v5696_v38, %v5916_v16 }
 0x20f   :  { %v5988_v8 = vpop.permute.xlu1 %864  ;;  %v5990_v4 = vpop.permute.xlu0 %867 }
 0x210   :  { %6833 = vst [vmem:[#allocation17_spill] sm:$0xff] %v5988_v8  ;;  %6834 = vst [vmem:[#allocation18_spill] sm:$0xff] %v5990_v4  ;;  %957 = vperm.xlu0 %5006, %v494_v11   ;;  %954 = vperm.xlu1 %5007, %v493_v55   ;;  %v263_v4 = vadd.f32 %v5682_v31, %v5856_v13  ;;  %v6004_v11 = vmax.f32 %v264_v54, 0.0 }
 0x212   :  { %v564_v31 = vmul.f32 %v5686_v33, %v6004_v11 }
 0x213   :  { %v5998_v15 = vpop.permute.xlu1 %870  ;;  %v6000_v1 = vpop.permute.xlu0 %873 }
 0x214   :  { %6835 = vst [vmem:[#allocation19_spill] sm:$0xff] %v6000_v1  ;;  %1065 = vperm.xlu0 %5006, %v530_v3   ;;  %1062 = vperm.xlu1 %5007, %v529_v0   ;;  %v6014_v1 = vmax.f32 %v263_v4, 0.0  ;;  %v495_v3 = vmul.f32 %v5708_v44, %v5878_v28 }
 0x216   :  { %v563_v0 = vmul.f32 %v5684_v32, %v6014_v1  ;;  %v565_v33 = vmul.f32 %v5688_v34, %v6014_v1  ;;  %v513_v32 = vmul.f32 %v5704_v42, %v5792_v10  ;;  %v531_v34 = vmul.f32 %v5700_v40, %v5916_v16 }
 0x217   :  { %v6010_v55 = vpop.permute.xlu1 %822  ;;  %v6012_v8 = vpop.permute.xlu0 %825 }
 0x218   :  { %1116 = vperm.xlu1 %5007, %v547_v30   ;;  %1119 = vperm.xlu0 %5006, %v548_v14   ;;  %v566_v30 = vmul.f32 %v5690_v35, %v6004_v11  ;;  %v514_v35 = vmul.f32 %v5706_v43, %v5794_v12 }
 0x21b   :  { %v6020_v13 = vpop.permute.xlu1 %876  ;;  %v6022_v54 = vpop.permute.xlu0 %879 }
 0x21c   :  { %6836 = vst [vmem:[#allocation20_spill] sm:$0xff] %v6020_v13  ;;  %6837 = vst [vmem:[#allocation21_spill] sm:$0xff] %v6022_v54  ;;  %960 = vperm.xlu1 %5007, %v495_v3   ;;  %1167 = vperm.xlu0 %5006, %v564_v31   ;;  %v496_v54 = vmul.f32 %v5710_v45, %v5880_v29  ;;  %v498_v13 = vmul.f32 %v5714_v47, %v5880_v29 }
 0x21f   :  { %v6028_v4 = vpop.permute.xlu1 %828  ;;  %v6030_v14 = vpop.permute.xlu0 %831 }
 0x220   :  { %1164 = vperm.xlu1 %5007, %v563_v0   ;;  %1173 = vperm.xlu0 %5006, %v566_v30  }
 0x223   :  { %v6036_v3 = vpop.permute.xlu1 %882  ;;  %v6038_v31 = vpop.permute.xlu0 %885 }
 0x224   :  { %6838 = vst [vmem:[#allocation22_spill] sm:$0xff] %v6036_v3  ;;  %6839 = vst [vmem:[#allocation23_spill] sm:$0xff] %v6038_v31  ;;  %1170 = vperm.xlu1 %5007, %v565_v33   ;;  %963 = vperm.xlu0 %5006, %v496_v54   ;;  %v532_v31 = vmul.f32 %v5702_v41, %v5918_v17  ;;  %v549_v3 = vmul.f32 %v5696_v38, %v5956_v24 }
 0x227   :  { %v6044_v0 = vpop.permute.xlu1 %984  ;;  %v6046_v30 = vpop.permute.xlu0 %987 }
 0x228   :  { %6840 = vst [vmem:[#allocation24_spill] sm:$0xff] %v6044_v0  ;;  %6841 = vst [vmem:[#allocation25_spill] sm:$0xff] %v6046_v30  ;;  %1014 = vperm.xlu1 %5007, %v513_v32   ;;  %1017 = vperm.xlu0 %5006, %v514_v35   ;;  %v550_v30 = vmul.f32 %v5698_v39, %v5958_v25  ;;  %v567_v0 = vmul.f32 %v5692_v36, %v6014_v1 }
 0x229   :  { %v499_v36 = vmul.f32 %v5716_v48, %v5878_v28 }
 0x22b   :  { %v6052_v33 = vpop.permute.xlu1 %990  ;;  %v6054_v54 = vpop.permute.xlu0 %993 }
 0x22c   :  { %6842 = vst [vmem:[#allocation26_spill] sm:$0xff] %v6052_v33  ;;  %6843 = vst [vmem:[#allocation27_spill] sm:$0xff] %v6054_v54  ;;  %1068 = vperm.xlu1 %5007, %v531_v34   ;;  %1071 = vperm.xlu0 %5006, %v532_v31   ;;  %v568_v54 = vmul.f32 %v5694_v37, %v6004_v11  ;;  %v497_v33 = vmul.f32 %v5712_v46, %v5878_v28 }
 0x22d   :  { %v500_v37 = vmul.f32 %v5718_v49, %v5880_v29 }
 0x22f   :  { %v6060_v32 = vpop.permute.xlu1 %834  ;;  %v6062_v35 = vpop.permute.xlu0 %837 }
 0x230   :  { %1122 = vperm.xlu1 %5007, %v549_v3   ;;  %1125 = vperm.xlu0 %5006, %v550_v30  }
 0x233   :  { %v6068_v34 = vpop.permute.xlu1 %888  ;;  %v6070_v31 = vpop.permute.xlu0 %891 }
 0x234   :  { %6844 = vst [vmem:[#allocation28_spill] sm:$0xff] %v6068_v34  ;;  %6845 = vst [vmem:[#allocation29_spill] sm:$0xff] %v6070_v31  ;;  %1176 = vperm.xlu1 %5007, %v567_v0   ;;  %1179 = vperm.xlu0 %5006, %v568_v54   ;;  %v501_v31 = vmul.f32 %v5720_v50, %v5878_v28  ;;  %v516_v34 = vmul.f32 %v5710_v45, %v5794_v12 }
 0x235   :  { %v533_v28 = vmul.f32 %v5704_v42, %v5916_v16 }
 0x237   :  { %v6076_v3 = vpop.permute.xlu1 %996  ;;  %v6078_v30 = vpop.permute.xlu0 %999 }
 0x238   :  { %6846 = vst [vmem:[#allocation30_spill] sm:$0xff] %v6076_v3  ;;  %6847 = vst [vmem:[#allocation31_spill] sm:$0xff] %v6078_v30  ;;  %966 = vperm.xlu1 %5007, %v497_v33   ;;  %969 = vperm.xlu0 %5006, %v498_v13   ;;  %v502_v30 = vmul.f32 %v5722_v51, %v5880_v29  ;;  %v515_v3 = vmul.f32 %v5708_v44, %v5792_v10 }
 0x239   :  { %v534_v29 = vmul.f32 %v5706_v43, %v5918_v17 }
 0x23b   :  { %v6084_v0 = vpop.permute.xlu1 %840  ;;  %v6086_v54 = vpop.permute.xlu0 %843 }
 0x23c   :  { %972 = vperm.xlu1 %5007, %v499_v36   ;;  %975 = vperm.xlu0 %5006, %v500_v37  }
 0x23f   :  { %v6092_v33 = vpop.permute.xlu1 %894  ;;  %v6094_v13 = vpop.permute.xlu0 %897 }
 0x240   :  { %6848 = vst [vmem:[#allocation32_spill] sm:$0xff] %v6092_v33  ;;  %6849 = vst [vmem:[#allocation33_spill] sm:$0xff] %v6094_v13  ;;  %978 = vperm.xlu1 %5007, %v501_v31   ;;  %981 = vperm.xlu0 %5006, %v502_v30   ;;  %v551_v13 = vmul.f32 %v5700_v40, %v5956_v24  ;;  %v570_v33 = vmul.f32 %v5698_v39, %v6004_v11 }
 0x241   :  { %v520_v39 = vmul.f32 %v5718_v49, %v5794_v12 }
 0x243   :  { %v6100_v36 = vpop.permute.xlu1 %1002  ;;  %v6102_v37 = vpop.permute.xlu0 %1005 }
 0x244   :  { %6850 = vst [vmem:[#allocation34_spill] sm:$0xff] %v6100_v36  ;;  %6851 = vst [vmem:[#allocation35_spill] sm:$0xff] %v6102_v37  ;;  %1020 = vperm.xlu1 %5007, %v515_v3   ;;  %1023 = vperm.xlu0 %5006, %v516_v34   ;;  %v552_v37 = vmul.f32 %v5702_v41, %v5958_v25  ;;  %v569_v36 = vmul.f32 %v5696_v38, %v6014_v1 }
 0x245   :  { %v519_v38 = vmul.f32 %v5716_v48, %v5792_v10 }
 0x247   :  { %v6108_v31 = vpop.permute.xlu1 %846  ;;  %v6110_v30 = vpop.permute.xlu0 %849 }
 0x248   :  { %6852 = vst [vmem:[#allocation36_spill] sm:$0xff] %v6110_v30  ;;  %1074 = vperm.xlu1 %5007, %v533_v28   ;;  %1077 = vperm.xlu0 %5006, %v534_v29   ;;  %v517_v30 = vmul.f32 %v5712_v46, %v5792_v10 }
 0x24b   :  { %v6116_v3 = vpop.permute.xlu1 %852  ;;  %v6118_v34 = vpop.permute.xlu0 %855 }
 0x24c   :  { %6853 = vst [vmem:[#allocation37_spill] sm:$0xff] %v6118_v34  ;;  %1128 = vperm.xlu1 %5007, %v551_v13   ;;  %1131 = vperm.xlu0 %5006, %v552_v37   ;;  %v518_v34 = vmul.f32 %v5714_v47, %v5794_v12 }
 0x24f   :  { %v6124_v28 = vpop.permute.xlu1 %858  ;;  %v6126_v29 = vpop.permute.xlu0 %861 }
 0x250   :  { %6854 = vst [vmem:[#allocation38_spill] sm:$0xff] %v6126_v29  ;;  %1182 = vperm.xlu1 %5007, %v569_v36   ;;  %1185 = vperm.xlu0 %5006, %v570_v33   ;;  %v521_v29 = vmul.f32 %v5720_v50, %v5792_v10  ;;  %v553_v10 = vmul.f32 %v5704_v42, %v5956_v24 }
 0x253   :  { %v6132_v13 = vpop.permute.xlu1 %900  ;;  %v6134_v37 = vpop.permute.xlu0 %903 }
 0x254   :  { %6855 = vst [vmem:[#allocation39_spill] sm:$0xff] %v6132_v13  ;;  %6856 = vst [vmem:[#allocation40_spill] sm:$0xff] %v6134_v37  ;;  %1026 = vperm.xlu1 %5007, %v517_v30   ;;  %1029 = vperm.xlu0 %5006, %v518_v34   ;;  %v522_v37 = vmul.f32 %v5722_v51, %v5794_v12  ;;  %v535_v13 = vmul.f32 %v5708_v44, %v5916_v16 }
 0x255   :  { %v554_v12 = vmul.f32 %v5706_v43, %v5958_v25 }
 0x257   :  { %v6140_v36 = vpop.permute.xlu1 %1008  ;;  %v6142_v33 = vpop.permute.xlu0 %1011 }
 0x258   :  { %6857 = vst [vmem:[#allocation41_spill] sm:$0xff] %v6140_v36  ;;  %6858 = vst [vmem:[#allocation42_spill] sm:$0xff] %v6142_v33  ;;  %1032 = vperm.xlu1 %5007, %v519_v38   ;;  %1035 = vperm.xlu0 %5006, %v520_v39   ;;  %v536_v33 = vmul.f32 %v5710_v45, %v5918_v17  ;;  %v571_v36 = vmul.f32 %v5700_v40, %v6014_v1 }
 0x259   :  { %v539_v40 = vmul.f32 %v5716_v48, %v5916_v16 }
 0x25b   :  { %v6148_v30 = vpop.permute.xlu1 %906  ;;  %v6150_v34 = vpop.permute.xlu0 %909 }
 0x25c   :  { %1038 = vperm.xlu1 %5007, %v521_v29   ;;  %1041 = vperm.xlu0 %5006, %v522_v37  }
 0x25f   :  { %v6156_v38 = vpop.permute.xlu1 %912  ;;  %v6158_v39 = vpop.permute.xlu0 %915 }
 0x260   :  { %6859 = vst [vmem:[#allocation43_spill] sm:$0xff] %v6156_v38  ;;  %6860 = vst [vmem:[#allocation44_spill] sm:$0xff] %v6158_v39  ;;  %1080 = vperm.xlu1 %5007, %v535_v13   ;;  %1083 = vperm.xlu0 %5006, %v536_v33   ;;  %v572_v39 = vmul.f32 %v5702_v41, %v6004_v11  ;;  %v537_v38 = vmul.f32 %v5712_v46, %v5916_v16 }
 0x261   :  { %v540_v41 = vmul.f32 %v5718_v49, %v5918_v17 }
 0x263   :  { %v6164_v29 = vpop.permute.xlu1 %918  ;;  %v6166_v37 = vpop.permute.xlu0 %921 }
 0x264   :  { %6861 = vst [vmem:[#allocation45_spill] sm:$0xff] %v6164_v29  ;;  %6862 = vst [vmem:[#allocation46_spill] sm:$0xff] %v6166_v37  ;;  %1134 = vperm.xlu1 %5007, %v553_v10   ;;  %1137 = vperm.xlu0 %5006, %v554_v12   ;;  %v538_v37 = vmul.f32 %v5714_v47, %v5918_v17  ;;  %v541_v29 = vmul.f32 %v5720_v50, %v5916_v16 }
 0x265   :  { %v573_v16 = vmul.f32 %v5704_v42, %v6014_v1  ;;  %v559_v42 = vmul.f32 %v5716_v48, %v5956_v24 }
 0x267   :  { %v6172_v13 = vpop.permute.xlu1 %924  ;;  %v6174_v33 = vpop.permute.xlu0 %927 }
 0x268   :  { %6863 = vst [vmem:[#allocation47_spill] sm:$0xff] %v6172_v13  ;;  %6864 = vst [vmem:[#allocation48_spill] sm:$0xff] %v6174_v33  ;;  %1188 = vperm.xlu1 %5007, %v571_v36   ;;  %1191 = vperm.xlu0 %5006, %v572_v39   ;;  %v542_v33 = vmul.f32 %v5722_v51, %v5918_v17  ;;  %v555_v13 = vmul.f32 %v5708_v44, %v5956_v24 }
 0x269   :  { %v574_v17 = vmul.f32 %v5706_v43, %v6004_v11  ;;  %v560_v43 = vmul.f32 %v5718_v49, %v5958_v25 }
 0x26b   :  { %v6180_v10 = vpop.permute.xlu1 %930  ;;  %v6182_v12 = vpop.permute.xlu0 %933 }
 0x26c   :  { %1086 = vperm.xlu1 %5007, %v537_v38   ;;  %1089 = vperm.xlu0 %5006, %v538_v37  }
 0x26f   :  { %v6188_v36 = vpop.permute.xlu1 %936  ;;  %v6190_v39 = vpop.permute.xlu0 %939 }
 0x270   :  { %6865 = vst [vmem:[#allocation49_spill] sm:$0xff] %v6190_v39  ;;  %1092 = vperm.xlu1 %5007, %v539_v40   ;;  %1095 = vperm.xlu0 %5006, %v540_v41   ;;  %v556_v39 = vmul.f32 %v5710_v45, %v5958_v25 }
 0x273   :  { %v6196_v38 = vpop.permute.xlu1 %942  ;;  %v6198_v37 = vpop.permute.xlu0 %945 }
 0x274   :  { %6866 = vst [vmem:[#allocation50_spill] sm:$0xff] %v6198_v37  ;;  %1098 = vperm.xlu1 %5007, %v541_v29   ;;  %1101 = vperm.xlu0 %5006, %v542_v33   ;;  %v557_v37 = vmul.f32 %v5712_v46, %v5956_v24 }
 0x277   :  { %v6204_v40 = vpop.permute.xlu1 %1044  ;;  %v6206_v41 = vpop.permute.xlu0 %1047 }
 0x278   :  { %6867 = vst [vmem:[#allocation51_spill] sm:$0xff] %v6204_v40  ;;  %6868 = vst [vmem:[#allocation52_spill] sm:$0xff] %v6206_v41  ;;  %1140 = vperm.xlu1 %5007, %v555_v13   ;;  %1143 = vperm.xlu0 %5006, %v556_v39   ;;  %v558_v41 = vmul.f32 %v5714_v47, %v5958_v25  ;;  %v6874_v40 = vlaneseq }
 0x27b   :  { %v6212_v29 = vpop.permute.xlu1 %1050  ;;  %v6214_v33 = vpop.permute.xlu0 %1053 }
 0x27c   :  { %6869 = vst [vmem:[#allocation53_spill] sm:$0xff] %v6212_v29  ;;  %6870 = vst [vmem:[#allocation54_spill] sm:$0xff] %v6214_v33  ;;  %1194 = vperm.xlu1 %5007, %v573_v16   ;;  %1197 = vperm.xlu0 %5006, %v574_v17   ;;  %v6233_v33 = vand.u32 127, %v6874_v40  ;;  %v561_v29 = vmul.f32 %v5720_v50, %v5956_v24  ;;  %v575_v40 = vmul.f32 %v5708_v44, %v6014_v1 }
 0x27e   :  { %6875 = vst [vmem:[#allocation58_spill] sm:$0xff] %v6233_v33 }
 0x27f   :  { %v6220_v13 = vpop.permute.xlu1 %948  ;;  %v6222_v39 = vpop.permute.xlu0 %951 }
 0x280   :  { %6871 = vst [vmem:[#allocation55_spill] sm:$0xff] %v6220_v13  ;;  %6872 = vst [vmem:[#allocation56_spill] sm:$0xff] %v6222_v39  ;;  %1146 = vperm.xlu1 %5007, %v557_v37   ;;  %1149 = vperm.xlu0 %5006, %v558_v41   ;;  %v562_v37 = vmul.f32 %v5722_v51, %v5958_v25  ;;  %v1225_v13 = vadd.s32 2, %v6233_v33 }
 0x282   :  { %v6254_v25 = vsub.s32 %v1225_v13, %v5627_v2 }
 0x283   :  { %v6228_v16 = vpop.permute.xlu1 %1056  ;;  %v6230_v17 = vpop.permute.xlu0 %1059 }
 0x284   :  { %6873 = vst [vmem:[#allocation57_spill] sm:$0xff] %v6228_v16  ;;  %1152 = vperm.xlu1 %5007, %v559_v42   ;;  %1155 = vperm.xlu0 %5006, %v560_v43   ;;  %v1230_v16 = vadd.s32 4294967290, %v6233_v33  ;;  %v576_v42 = vmul.f32 %v5710_v45, %v6004_v11  ;;  %v577_v45 = vmul.f32 %v5712_v46, %v6014_v1 }
 0x287   :  { %v6239_v41 = vpop.permute.xlu1 %1104  ;;  %v6241_v39 = vpop.permute.xlu0 %1107 }
 0x288   :  { %6876 = vst [vmem:[#allocation59_spill] sm:$0xff] %v6241_v39  ;;  %1158 = vperm.xlu1 %5007, %v561_v29   ;;  %1161 = vperm.xlu0 %5006, %v562_v37   ;;  %v6257_v39 = vsub.s32 %v1230_v16, %v5627_v2  ;;  %v1240_v29 = vrot.slane %v5874_v26, %v6254_v25 }
 0x289   :  { %v578_v37 = vmul.f32 %v5714_v47, %v6004_v11  ;;  %v1249_v16 = vrot.slane %v5886_v56, %v6254_v25  ;;  %v1229_v26 = vrot.slane %v5864_v18, %v6254_v25  ;;  %v580_v56 = vmul.f32 %v5718_v49, %v6004_v11 }
 0x28a   :  { %v1244_v44 = vrot.slane %v5876_v27, %v6257_v39  ;;  %v1234_v46 = vrot.slane %v5866_v19, %v6257_v39  ;;  %v579_v27 = vmul.f32 %v5716_v48, %v6014_v1  ;;  %v1267_v18 = vrot.slane %v5902_v62, %v6254_v25 }
 0x28b   :  { %v6249_v24 = vpop.permute.xlu1 %1110  ;;  %v6251_v43 = vpop.permute.xlu0 %1113  ;;  %v1271_v19 = vrot.slane %v5904_v63, %v6257_v39  ;;  %v1276_v49 = vrot.slane %v5912_v22, %v6254_v25  ;;  %v581_v63 = vmul.f32 %v5720_v50, %v6014_v1  ;;  %v1289_v50 = vrot.slane %v5926_v23, %v6257_v39 }
 0x28c   :  { %1200 = vperm.xlu1 %5007, %v575_v40   ;;  %1203 = vperm.xlu0 %5006, %v576_v42   ;;  %v1253_v40 = vrot.slane %v5888_v57, %v6257_v39  ;;  %v1245_v47 = vsel %vm1235_vm2, %v1244_v44, %v1240_v29  ;;  %v1258_v57 = vrot.slane %v5894_v60, %v6254_v25 }
 0x28d   :  { %v1262_v42 = vrot.slane %v5896_v61, %v6257_v39  ;;  %v1280_v60 = vrot.slane %v5914_v21, %v6257_v39  ;;  %v1236_v61 = vsel %vm1235_vm2, %v1234_v46, %v1229_v26  ;;  %v582_v44 = vmul.f32 %v5722_v51, %v6004_v11 }
 0x28e   :  { %v1254_v48 = vsel %vm1235_vm2, %v1253_v40, %v1249_v16  ;;  %v1949_v62 = vsel %vm1948_vm3, %v1245_v47, %v1236_v61  ;;  %v1272_v21 = vsel %vm1235_vm2, %v1271_v19, %v1267_v18  ;;  %v1285_v46 = vrot.slane %v5924_v20, %v6254_v25  ;;  %v6879_v61 = vld [vmem:[#allocation19_spill] sm:$0xff] }
 0x28f   :  { %v6267_v33 = vpop.permute.xlu1 %954  ;;  %v6269_v13 = vpop.permute.xlu0 %957  ;;  %v1263_v22 = vsel %vm1235_vm2, %v1262_v42, %v1258_v57  ;;  %v1281_v26 = vsel %vm1235_vm2, %v1280_v60, %v1276_v49  ;;  %v1294_v51 = vrot.slane %v5932_v52, %v6254_v25  ;;  %v1298_v1 = vrot.slane %v5934_v53, %v6257_v39 }
 0x290   :  { %1206 = vperm.xlu1 %5007, %v577_v45   ;;  %1209 = vperm.xlu0 %5006, %v578_v37   ;;  %v1951_v37 = vsel %vm1950_vm4, %v1254_v48, %v1949_v62  ;;  %v1330_v11 = vrot.slane %v5972_v5, %v6254_v25  ;;  %v1334_v47 = vrot.slane %v5974_v9, %v6257_v39  ;;  %v6877_v9 = vld [vmem:[#allocation15_spill] sm:$0xff] }
 0x291   :  { %v1321_v20 = vrot.slane %v5964_v58, %v6254_v25  ;;  %v1325_v23 = vrot.slane %v5966_v59, %v6257_v39  ;;  %v1343_v52 = vrot.slane %v5982_v7, %v6257_v39  ;;  %v1953_v53 = vsel %vm1952_vm5, %v1263_v22, %v1951_v37  ;;  %v6878_v58 = vld [vmem:[#allocation16_spill] sm:$0xff] }
 0x292   :  { %v1955_v57 = vsel %vm1954_vm6, %v1272_v21, %v1953_v53  ;;  %v1312_v42 = vrot.slane %v6877_v9, %v6254_v25  ;;  %v1316_v18 = vrot.slane %v6878_v58, %v6257_v39  ;;  %v1335_v59 = vsel %vm1235_vm2, %v1334_v47, %v1330_v11  ;;  %v6880_v21 = vld [vmem:[#allocation13_spill] sm:$0xff] }
 0x293   :  { %v6292_v45 = vpop.permute.xlu1 %1062  ;;  %v6294_v29 = vpop.permute.xlu0 %1065  ;;  %v1290_v19 = vsel %vm1235_vm2, %v1289_v50, %v1285_v46  ;;  %v1326_v7 = vsel %vm1235_vm2, %v1325_v23, %v1321_v20  ;;  %v1299_v49 = vsel %vm1235_vm2, %v1298_v1, %v1294_v51  ;;  %v1420_v60 = vrot.slane %v5998_v15, %v6254_v25  ;;  %v6881_v51 = vld [vmem:[#allocation14_spill] sm:$0xff]  ;;  %v6882_v11 = vld [vmem:[#allocation17_spill] sm:$0xff] }
 0x294   :  { %1212 = vperm.xlu1 %5007, %v579_v27   ;;  %1215 = vperm.xlu0 %5006, %v580_v56   ;;  %v1339_v27 = vrot.slane %v5980_v6, %v6254_v25  ;;  %v1957_v6 = vsel %vm1956_vm7, %v1281_v26, %v1955_v57  ;;  %v1424_v62 = vrot.slane %v6879_v61, %v6257_v39  ;;  %v6883_v20 = vld [vmem:[#allocation18_spill] sm:$0xff] }
 0x295   :  { %v1303_v26 = vrot.slane %v6880_v21, %v6254_v25  ;;  %v1963_v46 = vsel %vm1948_vm3, %v1335_v59, %v1326_v7  ;;  %v1307_v1 = vrot.slane %v6881_v51, %v6257_v39  ;;  %v1317_v47 = vsel %vm1235_vm2, %v1316_v18, %v1312_v42  ;;  %v6888_v21 = vld [vmem:[#allocation23_spill] sm:$0xff] }
 0x296   :  { %v1344_v48 = vsel %vm1235_vm2, %v1343_v52, %v1339_v27  ;;  %v1415_v23 = vrot.slane %v6883_v20, %v6257_v39  ;;  %v1357_v27 = vrot.slane %v6028_v4, %v6254_v25  ;;  %v1361_v52 = vrot.slane %v6030_v14, %v6257_v39  ;;  %v6890_v20 = vld [vmem:[#allocation29_spill] sm:$0xff] }
 0x297   :  { %v6310_v16 = vpop.permute.xlu1 %1116  ;;  %v6312_v40 = vpop.permute.xlu0 %1119  ;;  %v1366_v9 = vrot.slane %v6060_v32, %v6254_v25  ;;  %v1370_v42 = vrot.slane %v6062_v35, %v6257_v39  ;;  %v1375_v4 = vrot.slane %v6084_v0, %v6254_v25  ;;  %v1379_v14 = vrot.slane %v6086_v54, %v6257_v39  ;;  %v6884_v32 = vld [vmem:[#allocation20_spill] sm:$0xff]  ;;  %v6885_v35 = vld [vmem:[#allocation21_spill] sm:$0xff] }
 0x298   :  { %1218 = vperm.xlu1 %5007, %v581_v63   ;;  %1221 = vperm.xlu0 %5006, %v582_v44   ;;  %v1348_v63 = vrot.slane %v6010_v55, %v6254_v25  ;;  %v1352_v44 = vrot.slane %v6012_v8, %v6257_v39  ;;  %v1964_v55 = vsel %vm1950_vm4, %v1344_v48, %v1963_v46  ;;  %v6886_v0 = vld [vmem:[#allocation36_spill] sm:$0xff] }
 0x299   :  { %v1411_v8 = vrot.slane %v6882_v11, %v6254_v25  ;;  %v1429_v48 = vrot.slane %v6884_v32, %v6254_v25  ;;  %v1384_v61 = vrot.slane %v6108_v31, %v6254_v25  ;;  %v1442_v46 = vrot.slane %v6888_v21, %v6257_v39 }
 0x29a   :  { %v1353_v57 = vsel %vm1235_vm2, %v1352_v44, %v1348_v63  ;;  %v1362_v63 = vsel %vm1235_vm2, %v1361_v52, %v1357_v27  ;;  %v6887_v44 = vld [vmem:[#allocation22_spill] sm:$0xff]  ;;  %v1451_v27 = vrot.slane %v6890_v20, %v6257_v39  ;;  %v1380_v52 = vsel %vm1235_vm2, %v1379_v14, %v1375_v4 }
 0x29b   :  { %v6336_v56 = vpop.permute.xlu1 %960  ;;  %v1168_v5 = vpop.permute.xlu0 %1167  ;;  %v1965_v54 = vsel %vm1952_vm5, %v1353_v57, %v1964_v55  ;;  %v6891_v57 = vld [vmem:[#allocation32_spill] sm:$0xff]  ;;  %v1959_v32 = vsel %vm1958_vm8, %v1290_v19, %v1957_v6 }
 0x29c   :  { %v1865_v50 = vrot.slane %v1168_v5, %v6257_v39  ;;  %v1425_v5 = vsel %vm1235_vm2, %v1424_v62, %v1420_v60  ;;  %v1433_v60 = vrot.slane %v6885_v35, %v6257_v39  ;;  %v1388_v62 = vrot.slane %v6886_v0, %v6257_v39 }
 0x29d   :  { %v1416_v35 = vsel %vm1235_vm2, %v1415_v23, %v1411_v8  ;;  %v1308_v0 = vsel %vm1235_vm2, %v1307_v1, %v1303_v26  ;;  %v1961_v14 = vsel %vm1960_vm9, %v1299_v49, %v1959_v32  ;;  %v1393_v8 = vrot.slane %v6116_v3, %v6254_v25  ;;  %v6893_v23 = vld [vmem:[#allocation37_spill] sm:$0xff] }
 0x29e   :  { %v1510_v32 = vrot.slane %v6180_v10, %v6254_v25 }
 0x29f   :  { %v1165_v37 = vpop.permute.xlu1 %1164  ;;  %v1174_v22 = vpop.permute.xlu0 %1173 }
 0x2a0   :  { %v1861_v15 = vrot.slane %v1165_v37, %v6254_v25  ;;  %v1874_v59 = vrot.slane %v1174_v22, %v6257_v39  ;;  %v1438_v37 = vrot.slane %v6887_v44, %v6254_v25  ;;  %v1971_v44 = vsel %vm1948_vm3, %v1425_v5, %v1416_v35 }
 0x2a1   :  { %v1397_v5 = vrot.slane %v6893_v23, %v6257_v39  ;;  %v1514_v35 = vrot.slane %v6182_v12, %v6257_v39  ;;  %v1528_v12 = vrot.slane %v6196_v38, %v6254_v25  ;;  %v1546_v38 = vrot.slane %v6267_v33, %v6254_v25 }
 0x2a2   :  { %v1866_v53 = vsel %vm1235_vm2, %v1865_v50, %v1861_v15  ;;  %v1371_v50 = vsel %vm1235_vm2, %v1370_v42, %v1366_v9  ;;  %v6889_v15 = vld [vmem:[#allocation28_spill] sm:$0xff]  ;;  %v6892_v9 = vld [vmem:[#allocation33_spill] sm:$0xff] }
 0x2a3   :  { %v1171_v58 = vpop.permute.xlu1 %1170  ;;  %v6381_v18 = vpop.permute.xlu0 %963  ;;  %v1447_v31 = vrot.slane %v6889_v15, %v6254_v25  ;;  %v1460_v42 = vrot.slane %v6892_v9, %v6257_v39  ;;  %v1474_v9 = vrot.slane %v6148_v30, %v6254_v25  ;;  %v6897_v30 = vld [vmem:[#allocation47_spill] sm:$0xff] }
 0x2a4   :  { %v1870_v7 = vrot.slane %v1171_v58, %v6254_v25  ;;  %v1456_v58 = vrot.slane %v6891_v57, %v6254_v25 }
 0x2a5   :  { %v1452_v26 = vsel %vm1235_vm2, %v1451_v27, %v1447_v31  ;;  %v2036_v27 = vsel %vm2035_vm11, %v1961_v14, 0.0 }
 0x2a6   :  { %v1875_v22 = vsel %vm1235_vm2, %v1874_v59, %v1870_v7  ;;  %v1434_v59 = vsel %vm1235_vm2, %v1433_v60, %v1429_v48  ;;  %v1389_v7 = vsel %vm1235_vm2, %v1388_v62, %v1384_v61  ;;  %v1962_v60 = vsel %vm1948_vm3, %v1317_v47, %v1308_v0  ;;  %v6894_v47 = vld [vmem:[#allocation38_spill] sm:$0xff] }
 0x2a7   :  { %v6408_v51 = vsel %vm1948_vm3, %v1875_v22, %v1866_v53  ;;  %v6410_v11 = vpop.permute.xlu1 %1014  ;;  %v6412_v55 = vpop.permute.xlu0 %1017  ;;  %v1966_v53 = vsel %vm1954_vm6, %v1362_v63, %v1965_v54  ;;  %v1443_v22 = vsel %vm1235_vm2, %v1442_v46, %v1438_v37  ;;  %v1972_v19 = vsel %vm1950_vm4, %v1434_v59, %v1971_v44  ;;  %v6895_v63 = vld [vmem:[#allocation39_spill] sm:$0xff]  ;;  %v6896_v46 = vld [vmem:[#allocation40_spill] sm:$0xff] }
 0x2a8   :  { %v1967_v4 = vsel %vm1956_vm7, %v1371_v50, %v1966_v53  ;;  %v1461_v1 = vsel %vm1235_vm2, %v1460_v42, %v1456_v58  ;;  %v1402_v61 = vrot.slane %v6124_v28, %v6254_v25  ;;  %v1406_v62 = vrot.slane %v6894_v47, %v6257_v39 }
 0x2a9   :  { %v1968_v6 = vsel %vm1958_vm8, %v1380_v52, %v1967_v4  ;;  %v1973_v54 = vsel %vm1952_vm5, %v1443_v22, %v1972_v19  ;;  %v1465_v37 = vrot.slane %v6895_v63, %v6254_v25  ;;  %v1469_v50 = vrot.slane %v6896_v46, %v6257_v39  ;;  %v6899_v22 = vld [vmem:[#allocation49_spill] sm:$0xff]  ;;  %v6900_v19 = vld [vmem:[#allocation50_spill] sm:$0xff] }
 0x2aa   :  { %v1969_v49 = vsel %vm1960_vm9, %v1389_v7, %v1968_v6  ;;  %v1974_v15 = vsel %vm1954_vm6, %v1452_v26, %v1973_v54  ;;  %v2040_v20 = vsel %vm2039_vm10, %v1962_v60, 0.0  ;;  %v1478_v42 = vrot.slane %v6150_v34, %v6257_v39  ;;  %v6898_v34 = vld [vmem:[#allocation48_spill] sm:$0xff] }
 0x2ab   :  { %v6431_v21 = vpop.permute.xlu1 %1068  ;;  %v6433_v48 = vpop.permute.xlu0 %1071  ;;  %v2043_v57 = vsel %vm2035_vm11, %v1969_v49, 0.0  ;;  %v1975_v58 = vsel %vm1956_vm7, %v1461_v1, %v1974_v15  ;;  %v1398_v59 = vsel %vm1235_vm2, %v1397_v5, %v1393_v8  ;;  %v1407_v53 = vsel %vm1235_vm2, %v1406_v62, %v1402_v61  ;;  %v6901_v8 = vld [vmem:[#allocation55_spill] sm:$0xff] }
 0x2ac   :  { %v1470_v7 = vsel %vm1235_vm2, %v1469_v50, %v1465_v37  ;;  %v1501_v4 = vrot.slane %v6897_v30, %v6254_v25  ;;  %v1505_v14 = vrot.slane %v6898_v34, %v6257_v39  ;;  %v1519_v44 = vrot.slane %v6188_v36, %v6254_v25  ;;  %v6902_v36 = vld [vmem:[#allocation56_spill] sm:$0xff]  ;;  %v6903_v37 = vld [vmem:[#allocation45_spill] sm:$0xff] }
 0x2ad   :  { %v1523_v60 = vrot.slane %v6899_v22, %v6257_v39  ;;  %v1532_v26 = vrot.slane %v6900_v19, %v6257_v39  ;;  %v1537_v23 = vrot.slane %v6901_v8, %v6254_v25  ;;  %v1541_v5 = vrot.slane %v6902_v36, %v6257_v39 }
 0x2ae   :  { %v1479_v61 = vsel %vm1235_vm2, %v1478_v42, %v1474_v9  ;;  %v1976_v47 = vsel %vm1958_vm8, %v1470_v7, %v1975_v58  ;;  %v1515_v62 = vsel %vm1235_vm2, %v1514_v35, %v1510_v32  ;;  %v1550_v54 = vrot.slane %v6269_v13, %v6257_v39  ;;  %v6904_v9 = vld [vmem:[#allocation46_spill] sm:$0xff] }
 0x2af   :  { %v1123_v3 = vpop.permute.xlu1 %1122  ;;  %v1126_v31 = vpop.permute.xlu0 %1125  ;;  %v1492_v46 = vrot.slane %v6903_v37, %v6254_v25  ;;  %v1524_v50 = vsel %vm1235_vm2, %v1523_v60, %v1519_v44  ;;  %v1559_v15 = vrot.slane %v6381_v18, %v6257_v39  ;;  %v1533_v13 = vsel %vm1235_vm2, %v1532_v26, %v1528_v12 }
 0x2b0   :  { %v1798_v28 = vrot.slane %v1123_v3, %v6254_v25  ;;  %v1802_v52 = vrot.slane %v1126_v31, %v6257_v39  ;;  %v1496_v42 = vrot.slane %v6904_v9, %v6257_v39  ;;  %v1542_v7 = vsel %vm1235_vm2, %v1541_v5, %v1537_v23  ;;  %v6909_v9 = vld [vmem:[#allocation30_spill] sm:$0xff] }
 0x2b1   :  { %v1551_v32 = vsel %vm1235_vm2, %v1550_v54, %v1546_v38  ;;  %v1977_v35 = vsel %vm1960_vm9, %v1479_v61, %v1976_v47  ;;  %v1970_v30 = vsel %vm1948_vm3, %v1407_v53, %v1398_v59 }
 0x2b2   :  { %v6473_v0 = vsel %vm1235_vm2, %v1802_v52, %v1798_v28  ;;  %v1506_v28 = vsel %vm1235_vm2, %v1505_v14, %v1501_v4  ;;  %v6905_v4 = vld [vmem:[#allocation43_spill] sm:$0xff]  ;;  %v6906_v14 = vld [vmem:[#allocation44_spill] sm:$0xff]  ;;  %v1497_v53 = vsel %vm1235_vm2, %v1496_v42, %v1492_v46  ;;  %v2049_v19 = vsel %vm2035_vm11, %v1977_v35, 0.0 }
 0x2b3   :  { %v1177_v6 = vpop.permute.xlu1 %1176  ;;  %v1180_v10 = vpop.permute.xlu0 %1179  ;;  %v1979_v18 = vsel %vm1948_vm3, %v1515_v62, %v1506_v28  ;;  %v1483_v34 = vrot.slane %v6905_v4, %v6254_v25  ;;  %v1487_v44 = vrot.slane %v6906_v14, %v6257_v39  ;;  %v2046_v26 = vsel %vm2039_vm10, %v1970_v30, 0.0  ;;  %v6907_v28 = vld [vmem:[#allocation26_spill] sm:$0xff]  ;;  %v6912_v30 = vld [vmem:[#allocation25_spill] sm:$0xff] }
 0x2b4   :  { %v1879_v1 = vrot.slane %v1177_v6, %v6254_v25  ;;  %v1883_v49 = vrot.slane %v1180_v10, %v6257_v39  ;;  %v1609_v42 = vrot.slane %v6909_v9, %v6254_v25  ;;  %v1595_v4 = vrot.slane %v6912_v30, %v6257_v39 }
 0x2b5   :  { %v1488_v36 = vsel %vm1235_vm2, %v1487_v44, %v1483_v34  ;;  %v6913_v34 = vld [vmem:[#allocation34_spill] sm:$0xff]  ;;  %v6914_v44 = vld [vmem:[#allocation35_spill] sm:$0xff] }
 0x2b6   :  { %v1884_v63 = vsel %vm1235_vm2, %v1883_v49, %v1879_v1  ;;  %v1978_v47 = vsel %vm1948_vm3, %v1497_v53, %v1488_v36  ;;  %v1618_v14 = vrot.slane %v6913_v34, %v6254_v25  ;;  %v1640_v53 = vrot.slane %v6412_v55, %v6257_v39 }
 0x2b7   :  { %v6508_v3 = vsel %vm1950_vm4, %v1884_v63, %v6408_v51  ;;  %v967_v31 = vpop.permute.xlu1 %966  ;;  %2041 = vadd.xlane.f32.xlu0 %v2040_v20  ;;  %v970_v33 = vpop.permute.xlu0 %969  ;;  %v1555_v51 = vrot.slane %v6336_v56, %v6254_v25  ;;  %v1980_v20 = vsel %vm1950_vm4, %v1524_v50, %v1979_v18  ;;  %v2052_v37 = vsel %vm2039_vm10, %v1978_v47, 0.0  ;;  %v6910_v18 = vld [vmem:[#allocation31_spill] sm:$0xff] }
 0x2b8   :  { %v1564_v52 = vrot.slane %v967_v31, %v6254_v25  ;;  %v1568_v58 = vrot.slane %v970_v33, %v6257_v39  ;;  %v1981_v22 = vsel %vm1952_vm5, %v1533_v13, %v1980_v20  ;;  %v1600_v13 = vrot.slane %v6907_v28, %v6254_v25 }
 0x2b9   :  { %v1560_v60 = vsel %vm1235_vm2, %v1559_v15, %v1555_v51  ;;  %v1982_v10 = vsel %vm1954_vm6, %v1542_v7, %v1981_v22  ;;  %v1613_v7 = vrot.slane %v6910_v18, %v6257_v39  ;;  %v1622_v22 = vrot.slane %v6914_v44, %v6257_v39 }
 0x2ba   :  { %v1569_v12 = vsel %vm1235_vm2, %v1568_v58, %v1564_v52  ;;  %v1983_v59 = vsel %vm1956_vm7, %v1551_v32, %v1982_v10  ;;  %v6908_v52 = vld [vmem:[#allocation27_spill] sm:$0xff]  ;;  %v6911_v32 = vld [vmem:[#allocation24_spill] sm:$0xff] }
 0x2bb   :  { %v973_v6 = vpop.permute.xlu1 %972  ;;  %2044 = vadd.xlane.f32.xlu0 %v2043_v57  ;;  %v976_v56 = vpop.permute.xlu0 %975  ;;  %v1984_v1 = vsel %vm1958_vm8, %v1560_v60, %v1983_v59  ;;  %v1604_v58 = vrot.slane %v6908_v52, %v6257_v39  ;;  %v1591_v35 = vrot.slane %v6911_v32, %v6254_v25  ;;  %v6915_v60 = vld [vmem:[#allocation41_spill] sm:$0xff]  ;;  %v1636_v59 = vrot.slane %v6410_v11, %v6254_v25 }
 0x2bc   :  { %2037 = vadd.xlane.f32.xlu1 %v2036_v27  ;;  %v1573_v49 = vrot.slane %v973_v6, %v6254_v25  ;;  %v1577_v57 = vrot.slane %v976_v56, %v6257_v39  ;;  %v1985_v27 = vsel %vm1960_vm9, %v1569_v12, %v1984_v1  ;;  %v1627_v6 = vrot.slane %v6915_v60, %v6254_v25  ;;  %v6916_v56 = vld [vmem:[#allocation42_spill] sm:$0xff] }
 0x2bd   :  { %v2055_v62 = vsel %vm2035_vm11, %v1985_v27, 0.0  ;;  %v1631_v10 = vrot.slane %v6916_v56, %v6257_v39  ;;  %v1605_v12 = vsel %vm1235_vm2, %v1604_v58, %v1600_v13  ;;  %v1641_v36 = vsel %vm1235_vm2, %v1640_v53, %v1636_v59 }
 0x2be   :  { %v1578_v46 = vsel %vm1235_vm2, %v1577_v57, %v1573_v49  ;;  %v1703_v59 = vrot.slane %v6230_v17, %v6257_v39  ;;  %v1721_v17 = vrot.slane %v6433_v48, %v6257_v39 }
 0x2bf   :  { %v979_v8 = vpop.permute.xlu1 %978  ;;  %2050 = vadd.xlane.f32.xlu0 %v2049_v19  ;;  %v982_v23 = vpop.permute.xlu0 %981  ;;  %v1614_v19 = vsel %vm1235_vm2, %v1613_v7, %v1609_v42  ;;  %v1632_v11 = vsel %vm1235_vm2, %v1631_v10, %v1627_v6  ;;  %v6918_v6 = vld [vmem:[#allocation54_spill] sm:$0xff]  ;;  %v6919_v10 = vld [vmem:[#allocation57_spill] sm:$0xff] }
 0x2c0   :  { %v1582_v5 = vrot.slane %v979_v8, %v6254_v25  ;;  %v1586_v61 = vrot.slane %v982_v23, %v6257_v39  ;;  %2047 = vadd.xlane.f32.xlu1 %v2046_v26  ;;  %v1596_v8 = vsel %vm1235_vm2, %v1595_v4, %v1591_v35  ;;  %v1623_v23 = vsel %vm1235_vm2, %v1622_v22, %v1618_v14  ;;  %v6917_v22 = vld [vmem:[#allocation53_spill] sm:$0xff] }
 0x2c1   :  { %v1987_v27 = vsel %vm1948_vm3, %v1605_v12, %v1596_v8  ;;  %v1690_v60 = vrot.slane %v6917_v22, %v6254_v25  ;;  %v1694_v56 = vrot.slane %v6918_v6, %v6257_v39  ;;  %v1699_v12 = vrot.slane %v6919_v10, %v6254_v25  ;;  %v6921_v8 = vld [vmem:[#allocation52_spill] sm:$0xff] }
 0x2c2   :  { %v1587_v38 = vsel %vm1235_vm2, %v1586_v61, %v1582_v5  ;;  %v1988_v55 = vsel %vm1950_vm4, %v1614_v19, %v1987_v27  ;;  %v1708_v27 = vrot.slane %v6292_v45, %v6254_v25  ;;  %v1784_v6 = vrot.slane %v6251_v43, %v6257_v39 }
 0x2c3   :  { %v1021_v54 = vpop.permute.xlu1 %1020  ;;  %2056 = vadd.xlane.f32.xlu0 %v2055_v62  ;;  %v1024_v63 = vpop.permute.xlu0 %1023  ;;  %v1986_v50 = vsel %vm1948_vm3, %v1587_v38, %v1578_v46  ;;  %v1989_v5 = vsel %vm1952_vm5, %v1623_v23, %v1988_v55  ;;  %v1685_v23 = vrot.slane %v6921_v8, %v6257_v39  ;;  %v1717_v55 = vrot.slane %v6431_v21, %v6254_v25 }
 0x2c4   :  { %2053 = vadd.xlane.f32.xlu1 %v2052_v37  ;;  %v2058_v33 = vsel %vm2039_vm10, %v1986_v50, 0.0  ;;  %v1645_v26 = vrot.slane %v1021_v54, %v6254_v25  ;;  %v1649_v1 = vrot.slane %v1024_v63, %v6257_v39  ;;  %v1990_v38 = vsel %vm1954_vm6, %v1632_v11, %v1989_v5 }
 0x2c5   :  { %v1991_v37 = vsel %vm1956_vm7, %v1641_v36, %v1990_v38  ;;  %v1712_v11 = vrot.slane %v6294_v29, %v6257_v39  ;;  %v1695_v36 = vsel %vm1235_vm2, %v1694_v56, %v1690_v60  ;;  %v1780_v60 = vrot.slane %v6249_v24, %v6254_v25 }
 0x2c6   :  { %v1650_v61 = vsel %vm1235_vm2, %v1649_v1, %v1645_v26  ;;  %v6920_v26 = vld [vmem:[#allocation51_spill] sm:$0xff]  ;;  %v1771_v24 = vrot.slane %v6239_v41, %v6254_v25 }
 0x2c7   :  { %v6549_v15 = vpop.permute.xlu1 %1074  ;;  %v6551_v31 = vpop.permute.xlu0 %1077  ;;  %v1992_v50 = vsel %vm1958_vm8, %v1650_v61, %v1991_v37  ;;  %v1681_v1 = vrot.slane %v6920_v26, %v6254_v25  ;;  %v1713_v38 = vsel %vm1235_vm2, %v1712_v11, %v1708_v27 }
 0x2c8   :  { %2059 = vadd.xlane.f32.xlu1 %v2058_v33  ;;  %v1726_v5 = vrot.slane %v6549_v15, %v6254_v25  ;;  %v1730_v61 = vrot.slane %v6551_v31, %v6257_v39  ;;  %v1722_v15 = vsel %vm1235_vm2, %v1721_v17, %v1717_v55 }
 0x2c9   :  { %v1686_v48 = vsel %vm1235_vm2, %v1685_v23, %v1681_v1  ;;  %v6922_v23 = vld [vmem:[#allocation59_spill] sm:$0xff] }
 0x2ca   :  { %v1775_v43 = vrot.slane %v6922_v23, %v6257_v39 }
 0x2cb   :  { %v6562_v51 = vpop.permute.xlu1 %1128  ;;  %v6564_v20 = vpop.permute.xlu0 %1131 }
 0x2cc   :  { %v1807_v11 = vrot.slane %v6562_v51, %v6254_v25 }
 0x2cf   :  { %v6586_v49 = vpop.permute.xlu1 %1182  ;;  %v6588_v57 = vpop.permute.xlu0 %1185 }
 0x2d3   :  { %v1027_v47 = vpop.permute.xlu1 %1026  ;;  %v1030_v62 = vpop.permute.xlu0 %1029 }
 0x2d4   :  { %v1654_v54 = vrot.slane %v1027_v47, %v6254_v25  ;;  %v1658_v63 = vrot.slane %v1030_v62, %v6257_v39  ;;  %v1704_v47 = vsel %vm1235_vm2, %v1703_v59, %v1699_v12  ;;  %v1789_v12 = vrot.slane %v6310_v16, %v6254_v25 }
 0x2d5   :  { %v1793_v59 = vrot.slane %v6312_v40, %v6257_v39  ;;  %v1811_v16 = vrot.slane %v6564_v20, %v6257_v39  ;;  %v1785_v40 = vsel %vm1235_vm2, %v1784_v6, %v1780_v60 }
 0x2d6   :  { %v1659_v46 = vsel %vm1235_vm2, %v1658_v63, %v1654_v54  ;;  %v1995_v54 = vsel %vm1948_vm3, %v1695_v36, %v1686_v48  ;;  %v1731_v63 = vsel %vm1235_vm2, %v1730_v61, %v1726_v5 }
 0x2d7   :  { %v1033_v33 = vpop.permute.xlu1 %1032  ;;  %v1036_v28 = vpop.permute.xlu0 %1035  ;;  %v1993_v13 = vsel %vm1960_vm9, %v1659_v46, %v1992_v50  ;;  %v1996_v31 = vsel %vm1950_vm4, %v1704_v47, %v1995_v54  ;;  %v1794_v17 = vsel %vm1235_vm2, %v1793_v59, %v1789_v12  ;;  %v1776_v47 = vsel %vm1235_vm2, %v1775_v43, %v1771_v24 }
 0x2d8   :  { %v2061_v52 = vsel %vm2035_vm11, %v1993_v13, 0.0  ;;  %v1663_v58 = vrot.slane %v1033_v33, %v6254_v25  ;;  %v1667_v9 = vrot.slane %v1036_v28, %v6257_v39  ;;  %v1997_v37 = vsel %vm1952_vm5, %v1713_v38, %v1996_v31 }
 0x2d9   :  { %2062 = vadd.xlane.f32.xlu0 %v2061_v52  ;;  %v1998_v28 = vsel %vm1954_vm6, %v1722_v15, %v1997_v37  ;;  %v2003_v20 = vsel %vm1948_vm3, %v1785_v40, %v1776_v47 }
 0x2da   :  { %v1668_v35 = vsel %vm1235_vm2, %v1667_v9, %v1663_v58  ;;  %v1999_v58 = vsel %vm1956_vm7, %v1731_v63, %v1998_v28 }
 0x2db   :  { %v1039_v42 = vpop.permute.xlu1 %1038  ;;  %v1042_v18 = vpop.permute.xlu0 %1041 }
 0x2dc   :  { %v1672_v7 = vrot.slane %v1039_v42, %v6254_v25  ;;  %v1676_v32 = vrot.slane %v1042_v18, %v6257_v39 }
 0x2de   :  { %v1677_v30 = vsel %vm1235_vm2, %v1676_v32, %v1672_v7 }
 0x2df   :  { %v1081_v4 = vpop.permute.xlu1 %1080  ;;  %v1084_v34 = vpop.permute.xlu0 %1083  ;;  %v1994_v14 = vsel %vm1948_vm3, %v1677_v30, %v1668_v35 }
 0x2e0   :  { %v2064_v44 = vsel %vm2039_vm10, %v1994_v14, 0.0  ;;  %v1735_v45 = vrot.slane %v1081_v4, %v6254_v25  ;;  %v1739_v29 = vrot.slane %v1084_v34, %v6257_v39 }
 0x2e1   :  { %2065 = vadd.xlane.f32.xlu1 %v2064_v44 }
 0x2e2   :  { %v1740_v46 = vsel %vm1235_vm2, %v1739_v29, %v1735_v45  ;;  %v1812_v45 = vsel %vm1235_vm2, %v1811_v16, %v1807_v11  ;;  %v2004_v29 = vsel %vm1950_vm4, %v1794_v17, %v2003_v20 }
 0x2e3   :  { %v6622_v53 = vpop.permute.xlu1 %1134  ;;  %v6624_v19 = vpop.permute.xlu0 %1137  ;;  %v2000_v42 = vsel %vm1958_vm8, %v1740_v46, %v1999_v58 }
 0x2e4   :  { %v1816_v55 = vrot.slane %v6622_v53, %v6254_v25  ;;  %v1820_v41 = vrot.slane %v6624_v19, %v6257_v39  ;;  %v2005_v19 = vsel %vm1952_vm5, %v6473_v0, %v2004_v29 }
 0x2e5   :  { %v2006_v15 = vsel %vm1954_vm6, %v1812_v45, %v2005_v19  ;;  %v67_v19 = vld [vmem:[#allocation2 + $0x27] ss:$0 sm:$0xff] }
 0x2e6   :  { %v1821_v53 = vsel %vm1235_vm2, %v1820_v41, %v1816_v55 }
 0x2e7   :  { %v6646_v62 = vpop.permute.xlu1 %1188  ;;  %v6648_v21 = vpop.permute.xlu0 %1191  ;;  %v2007_v37 = vsel %vm1956_vm7, %v1821_v53, %v2006_v15 }
 0x2eb   :  { %v1087_v50 = vpop.permute.xlu1 %1086  ;;  %v1090_v33 = vpop.permute.xlu0 %1089 }
 0x2ec   :  { %v1744_v13 = vrot.slane %v1087_v50, %v6254_v25  ;;  %v1748_v52 = vrot.slane %v1090_v33, %v6257_v39 }
 0x2ee   :  { %v1749_v9 = vsel %vm1235_vm2, %v1748_v52, %v1744_v13 }
 0x2ef   :  { %v1093_v18 = vpop.permute.xlu1 %1092  ;;  %v1096_v7 = vpop.permute.xlu0 %1095  ;;  %v2001_v32 = vsel %vm1960_vm9, %v1749_v9, %v2000_v42 }
 0x2f0   :  { %v2067_v35 = vsel %vm2035_vm11, %v2001_v32, 0.0  ;;  %v1753_v30 = vrot.slane %v1093_v18, %v6254_v25  ;;  %v1757_v4 = vrot.slane %v1096_v7, %v6257_v39  ;;  %v1888_v18 = vrot.slane %v6586_v49, %v6254_v25 }
 0x2f1   :  { %2068 = vadd.xlane.f32.xlu0 %v2067_v35  ;;  %v1892_v7 = vrot.slane %v6588_v57, %v6257_v39 }
 0x2f2   :  { %v1758_v56 = vsel %vm1235_vm2, %v1757_v4, %v1753_v30  ;;  %v1897_v30 = vrot.slane %v6646_v62, %v6254_v25  ;;  %v1901_v4 = vrot.slane %v6648_v21, %v6257_v39 }
 0x2f3   :  { %v1099_v34 = vpop.permute.xlu1 %1098  ;;  %v1102_v14 = vpop.permute.xlu0 %1101  ;;  %v1893_v6 = vsel %vm1235_vm2, %v1892_v7, %v1888_v18 }
 0x2f4   :  { %v1762_v44 = vrot.slane %v1099_v34, %v6254_v25  ;;  %v1766_v22 = vrot.slane %v1102_v14, %v6257_v39  ;;  %v2013_v59 = vsel %vm1952_vm5, %v1893_v6, %v6508_v3 }
 0x2f6   :  { %v1767_v10 = vsel %vm1235_vm2, %v1766_v22, %v1762_v44 }
 0x2f7   :  { %v1141_v26 = vpop.permute.xlu1 %1140  ;;  %v1144_v1 = vpop.permute.xlu0 %1143  ;;  %v2002_v8 = vsel %vm1948_vm3, %v1767_v10, %v1758_v56  ;;  %v1902_v10 = vsel %vm1235_vm2, %v1901_v4, %v1897_v30 }
 0x2f8   :  { %v2070_v27 = vsel %vm2039_vm10, %v2002_v8, 0.0  ;;  %v1825_v36 = vrot.slane %v1141_v26, %v6254_v25  ;;  %v1829_v5 = vrot.slane %v1144_v1, %v6257_v39  ;;  %v2014_v24 = vsel %vm1954_vm6, %v1902_v10, %v2013_v59 }
 0x2f9   :  { %2071 = vadd.xlane.f32.xlu1 %v2070_v27 }
 0x2fa   :  { %v1830_v48 = vsel %vm1235_vm2, %v1829_v5, %v1825_v36 }
 0x2fb   :  { %v1195_v61 = vpop.permute.xlu1 %1194  ;;  %v1198_v51 = vpop.permute.xlu0 %1197  ;;  %v2008_v50 = vsel %vm1958_vm8, %v1830_v48, %v2007_v37 }
 0x2fc   :  { %v1906_v34 = vrot.slane %v1195_v61, %v6254_v25  ;;  %v1910_v14 = vrot.slane %v1198_v51, %v6257_v39 }
 0x2fe   :  { %v1911_v12 = vsel %vm1235_vm2, %v1910_v14, %v1906_v34 }
 0x2ff   :  { %v1147_v38 = vpop.permute.xlu1 %1146  ;;  %v1150_v54 = vpop.permute.xlu0 %1149  ;;  %v2015_v27 = vsel %vm1956_vm7, %v1911_v12, %v2014_v24 }
 0x300   :  { %v1834_v31 = vrot.slane %v1147_v38, %v6254_v25  ;;  %v1838_v63 = vrot.slane %v1150_v54, %v6257_v39 }
 0x302   :  { %v1839_v46 = vsel %vm1235_vm2, %v1838_v63, %v1834_v31 }
 0x303   :  { %v1153_v33 = vpop.permute.xlu1 %1152  ;;  %v1156_v28 = vpop.permute.xlu0 %1155  ;;  %v2009_v0 = vsel %vm1960_vm9, %v1839_v46, %v2008_v50 }
 0x304   :  { %v2073_v13 = vsel %vm2035_vm11, %v2009_v0, 0.0  ;;  %v1843_v52 = vrot.slane %v1153_v33, %v6254_v25  ;;  %v1847_v58 = vrot.slane %v1156_v28, %v6257_v39 }
 0x305   :  { %2074 = vadd.xlane.f32.xlu0 %v2073_v13 }
 0x306   :  { %v1848_v44 = vsel %vm1235_vm2, %v1847_v58, %v1843_v52 }
 0x307   :  { %v1159_v9 = vpop.permute.xlu1 %1158  ;;  %v1162_v42 = vpop.permute.xlu0 %1161 }
 0x308   :  { %v1852_v32 = vrot.slane %v1159_v9, %v6254_v25  ;;  %v1856_v35 = vrot.slane %v1162_v42, %v6257_v39 }
 0x30a   :  { %v1857_v49 = vsel %vm1235_vm2, %v1856_v35, %v1852_v32 }
 0x30b   :  { %v1201_v22 = vpop.permute.xlu1 %1200  ;;  %v1204_v57 = vpop.permute.xlu0 %1203  ;;  %v2010_v60 = vsel %vm1948_vm3, %v1857_v49, %v1848_v44 }
 0x30c   :  { %v1915_v56 = vrot.slane %v1201_v22, %v6254_v25  ;;  %v1919_v62 = vrot.slane %v1204_v57, %v6257_v39  ;;  %v2076_v21 = vsel %vm2039_vm10, %v2010_v60, 0.0 }
 0x30d   :  { %2077 = vadd.xlane.f32.xlu1 %v2076_v21 }
 0x30e   :  { %v1920_v26 = vsel %vm1235_vm2, %v1919_v62, %v1915_v56 }
 0x30f   :  { %v1207_v1 = vpop.permute.xlu1 %1206  ;;  %v1210_v8 = vpop.permute.xlu0 %1209  ;;  %v2016_v16 = vsel %vm1958_vm8, %v1920_v26, %v2015_v27 }
 0x310   :  { %v1924_v23 = vrot.slane %v1207_v1, %v6254_v25  ;;  %v1928_v43 = vrot.slane %v1210_v8, %v6257_v39 }
 0x312   :  { %v1929_v11 = vsel %vm1235_vm2, %v1928_v43, %v1924_v23 }
 0x313   :  { %v1213_v40 = vpop.permute.xlu1 %1212  ;;  %v1216_v55 = vpop.permute.xlu0 %1215  ;;  %v2017_v3 = vsel %vm1960_vm9, %v1929_v11, %v2016_v16 }
 0x314   :  { %v2079_v41 = vsel %vm2035_vm11, %v2017_v3, 0.0  ;;  %v1933_v17 = vrot.slane %v1213_v40, %v6254_v25  ;;  %v1937_v36 = vrot.slane %v1216_v55, %v6257_v39  ;;  %v69_v3 = vld [vmem:[#allocation2 + $0x38] sm:$0xff] }
 0x315   :  { %2080 = vadd.xlane.f32.xlu0 %v2079_v41  ;;  %v71_v41 = vld [vmem:[#allocation2 + $0x48] sm:$0x3] }
 0x316   :  { %v1938_v20 = vsel %vm1235_vm2, %v1937_v36, %v1933_v17  ;;  %v68_v17 = vld [vmem:[#allocation2 + $0x30] sm:$0xff]  ;;  %v4118_v36 = vpack.c.bf16 %v71_v41, %v69_v3 }
 0x317   :  { %v1219_v5 = vpop.permute.xlu1 %1218  ;;  %v1222_v61 = vpop.permute.xlu0 %1221 }
 0x318   :  { %v1942_v51 = vrot.slane %v1219_v5, %v6254_v25  ;;  %v1946_v47 = vrot.slane %v1222_v61, %v6257_v39  ;;  %v70_v5 = vld [vmem:[#allocation2 + $0x40] sm:$0x3]  ;;  %4120 = vmatprep.subr.msk.bf16.mxu0 %vm4119_vm14, %v4118_v36 }
 0x319   :  { %v4121_v61 = vpack.c.bf16 %v70_v5, %v68_v17 }
 0x31a   :  { %v1947_v45 = vsel %vm1235_vm2, %v1946_v47, %v1942_v51  ;;  %v5556_v51 = vmov 0.0   ;;  %v5008_v47 = vld [vmem:[#allocation5 + $0x4] ss:$16 sps:$4 sm:$0xff]  }
 0x31b   :  { %v2018_v29 = vsel %vm1948_vm3, %v1947_v45, %v1938_v20  ;;  %2356 = vmatprep.mubr.f32.mxu0 %v5556_v51  ;;  %v5010_v20 = vld [vmem:[#allocation5 + $0xc] ss:$16 sps:$4 sm:$0xff]   ;;  %v5013_v45 = vld [vmem:[#allocation5] ss:$16 sps:$4 sm:$0xff]   ;;  %4123 = vmatpush1.bf16.msk.msra.mxu0 %vm4119_vm14, %v4121_v61 }
 0x31c   :  { %v2082_v53 = vsel %vm2039_vm10, %v2018_v29, 0.0  ;;  %v5014_v29 = vld [vmem:[#allocation5 + $0x24] ss:$16 sps:$4 sm:$0xff]   ;;  %4125 = vmatprep.subr.bf16.mxu1 %v5008_v47  ;;  %4189 = vmatprep.subr.bf16.mxu0 %v5010_v20 }
 0x31d   :  { %2083 = vadd.xlane.f32.xlu1 %v2082_v53  ;;  %4127 = vmatpush1.bf16.msra.mxu1 %v5013_v45  ;;  %v5019_v53 = vld [vmem:[#allocation5 + $0x20] ss:$16 sps:$4 sm:$0xff]  }
 0x31e   :  { %4129 = vmatprep.subr.bf16.mxu1 %v5014_v29 }
 0x321   :  { %4131 = vmatpush1.bf16.msra.mxu1 %v5019_v53 }
 0x32b   :  { %2087 = vbcast.lane.b32.xlu0 %v67_v19, 256 }
 0x32e   :  { %2091 = vbcast.lane.b32.xlu1 %v67_v19, 264  ;;  %v5020_v19 = vld [vmem:[#allocation5 + $0x44] ss:$16 sps:$4 sm:$0xff]  }
 0x32f   :  { %4133 = vmatprep.subr.bf16.mxu1 %v5020_v19 }
 0x344   :  { %v2042_v48 = vpop.xlane.xlu0 %2041 }
 0x348   :  { %v2045_v38 = vpop.xlane.xlu0 %2044 }
 0x349   :  { %v2038_v54 = vpop.xlane.xlu1 %2037 }
 0x34c   :  { %v2051_v15 = vpop.xlane.xlu0 %2050 }
 0x34d   :  { %v2048_v31 = vpop.xlane.xlu1 %2047 }
 0x350   :  { %v2057_v25 = vpop.xlane.xlu0 %2056 }
 0x351   :  { %v2054_v63 = vpop.xlane.xlu1 %2053 }
 0x355   :  { %v2060_v37 = vpop.xlane.xlu1 %2059 }
 0x366   :  { %v2063_v39 = vpop.xlane.xlu0 %2062 }
 0x36e   :  { %v2066_v50 = vpop.xlane.xlu1 %2065 }
 0x37e   :  { %v2069_v46 = vpop.xlane.xlu0 %2068 }
 0x386   :  { %v2072_v28 = vpop.xlane.xlu1 %2071 }
 0x392   :  { %v2075_v33 = vpop.xlane.xlu0 %2074 }
 0x39a   :  { %v2078_v13 = vpop.xlane.xlu1 %2077 }
 0x3a2   :  { %v2081_v0 = vpop.xlane.xlu0 %2080 }
 0x3a6   :  { %v2088_v52 = vpop.permute.xlu0 %2087 }
 0x3a7   :  { %v2095_v58 = vadd.f32 %v2088_v52, %v2038_v54  ;;  %v2097_v42 = vadd.f32 %v2088_v52, %v2045_v38  ;;  %v2099_v32 = vadd.f32 %v2088_v52, %v2051_v15  ;;  %v2103_v44 = vadd.f32 %v2088_v52, %v2063_v39  ;;  %v5026_v38 = vld [vmem:[#allocation5 + $0x64] ss:$16 sps:$4 sm:$0xff]   ;;  %v5031_v54 = vld [vmem:[#allocation5 + $0x60] ss:$16 sps:$4 sm:$0xff]  }
 0x3a8   :  { %v2101_v60 = vadd.f32 %v2088_v52, %v2057_v25  ;;  %v2105_v21 = vadd.f32 %v2088_v52, %v2069_v46  ;;  %v2107_v26 = vadd.f32 %v2088_v52, %v2075_v33  ;;  %v2109_v23 = vadd.f32 %v2088_v52, %v2081_v0  ;;  %v5032_v15 = vld [vmem:[#allocation5 + $0x84] ss:$16 sps:$4 sm:$0xff]  }
 0x3a9   :  { %v2111_v9 = vmax.f32 %v2095_v58, 0.0  ;;  %v2113_v7 = vmax.f32 %v2097_v42, 0.0  ;;  %v2115_v34 = vmax.f32 %v2099_v32, 0.0  ;;  %v2119_v22 = vmax.f32 %v2103_v44, 0.0  ;;  %v5038_v25 = vld [vmem:[#allocation5 + $0xa4] ss:$16 sps:$4 sm:$0xff]  }
 0x3aa   :  { %v2084_v18 = vpop.xlane.xlu1 %2083  ;;  %v2117_v56 = vmax.f32 %v2101_v60, 0.0  ;;  %v2121_v12 = vmax.f32 %v2105_v21, 0.0  ;;  %v2123_v8 = vmax.f32 %v2107_v26, 0.0  ;;  %v2125_v27 = vmax.f32 %v2109_v23, 0.0  ;;  %v5044_v39 = vld [vmem:[#allocation5 + $0xc4] ss:$16 sps:$4 sm:$0xff]  }
 0x3ab   :  { %2155 = vperm.xlu1 %5007, %v2111_v9   ;;  %v5050_v46 = vld [vmem:[#allocation5 + $0xe4] ss:$16 sps:$4 sm:$0xff]   ;;  %v5073_v58 = vld [vmem:[#allocation5 + $0x140] ss:$16 sps:$4 sm:$0xff]  }
 0x3ac   :  { %v5056_v33 = vld [vmem:[#allocation5 + $0x104] ss:$16 sps:$4 sm:$0xff]   ;;  %v5079_v42 = vld [vmem:[#allocation5 + $0x160] ss:$16 sps:$4 sm:$0xff]  }
 0x3ad   :  { %v5062_v0 = vld [vmem:[#allocation5 + $0x124] ss:$16 sps:$4 sm:$0xff]  }
 0x3ae   :  { %v2092_v35 = vpop.permute.xlu1 %2091  ;;  %v5068_v52 = vld [vmem:[#allocation5 + $0x144] ss:$16 sps:$4 sm:$0xff]  }
 0x3af   :  { %2161 = vperm.xlu1 %5007, %v2113_v7   ;;  %v2096_v30 = vadd.f32 %v2092_v35, %v2042_v48  ;;  %v2098_v14 = vadd.f32 %v2092_v35, %v2048_v31  ;;  %v2100_v57 = vadd.f32 %v2092_v35, %v2054_v63  ;;  %v2104_v62 = vadd.f32 %v2092_v35, %v2066_v50  ;;  %v5025_v48 = vld [vmem:[#allocation5 + $0x40] ss:$16 sps:$4 sm:$0xff]   ;;  %v5074_v9 = vld [vmem:[#allocation5 + $0x164] ss:$16 sps:$4 sm:$0xff]  }
 0x3b0   :  { %v2102_v59 = vadd.f32 %v2092_v35, %v2060_v37  ;;  %v2106_v24 = vadd.f32 %v2092_v35, %v2072_v28  ;;  %v2108_v11 = vadd.f32 %v2092_v35, %v2078_v13  ;;  %v2110_v40 = vadd.f32 %v2092_v35, %v2084_v18  ;;  %4135 = vmatpush1.bf16.msra.mxu1 %v5025_v48  ;;  %v5037_v31 = vld [vmem:[#allocation5 + $0x80] ss:$16 sps:$4 sm:$0xff]   ;;  %v5080_v18 = vld [vmem:[#allocation5 + $0x184] ss:$16 sps:$4 sm:$0xff]  }
 0x3b1   :  { %v2112_v4 = vmax.f32 %v2096_v30, 0.0  ;;  %v2114_v49 = vmax.f32 %v2098_v14, 0.0  ;;  %v2116_v6 = vmax.f32 %v2100_v57, 0.0  ;;  %v2120_v10 = vmax.f32 %v2104_v62, 0.0  ;;  %4137 = vmatprep.subr.bf16.mxu1 %v5026_v38  ;;  %v5043_v63 = vld [vmem:[#allocation5 + $0xa0] ss:$16 sps:$4 sm:$0xff]  }
 0x3b2   :  { %v2118_v1 = vmax.f32 %v2102_v59, 0.0  ;;  %v2122_v43 = vmax.f32 %v2106_v24, 0.0  ;;  %v2124_v16 = vmax.f32 %v2108_v11, 0.0  ;;  %v2126_v55 = vmax.f32 %v2110_v40, 0.0  ;;  %v5049_v37 = vld [vmem:[#allocation5 + $0xc0] ss:$16 sps:$4 sm:$0xff]  }
 0x3b3   :  { %2158 = vperm.xlu0 %5006, %v2112_v4   ;;  %2167 = vperm.xlu1 %5007, %v2115_v34   ;;  %v5055_v50 = vld [vmem:[#allocation5 + $0xe0] ss:$16 sps:$4 sm:$0xff]   ;;  %v5086_v32 = vld [vmem:[#allocation5 + $0x1a4] ss:$16 sps:$4 sm:$0xff]  }
 0x3b4   :  { %4139 = vmatpush1.bf16.msra.mxu1 %v5031_v54  ;;  %v5061_v28 = vld [vmem:[#allocation5 + $0x100] ss:$16 sps:$4 sm:$0xff]   ;;  %v5092_v30 = vld [vmem:[#allocation5 + $0x1c4] ss:$16 sps:$4 sm:$0xff]  }
 0x3b5   :  { %4141 = vmatprep.subr.bf16.mxu1 %v5032_v15  ;;  %v5067_v13 = vld [vmem:[#allocation5 + $0x120] ss:$16 sps:$4 sm:$0xff]  }
 0x3b6   :  { %v5085_v7 = vld [vmem:[#allocation5 + $0x180] ss:$16 sps:$4 sm:$0xff]  }
 0x3b7   :  { %2164 = vperm.xlu0 %5006, %v2114_v49   ;;  %2179 = vperm.xlu1 %5007, %v2119_v22   ;;  %v5091_v35 = vld [vmem:[#allocation5 + $0x1a0] ss:$16 sps:$4 sm:$0xff]  }
 0x3b8   :  { %4143 = vmatpush1.bf16.msra.mxu1 %v5037_v31 }
 0x3b9   :  { %4145 = vmatprep.subr.bf16.mxu1 %v5038_v25 }
 0x3bb   :  { %2170 = vperm.xlu0 %5006, %v2116_v6   ;;  %2173 = vperm.xlu1 %5007, %v2117_v56   ;;  %v6923_v6 = vld [vmem:[#allocation58_spill] sm:$0xff] }
 0x3bc   :  { %4147 = vmatpush1.bf16.msra.mxu1 %v5043_v63  ;;  %v2206_v56 = vadd.s32 4294967288, %v6923_v6  ;;  %v2204_v59 = vsub.s32 %v6923_v6, %v5627_v2  ;;  %v5072_v6 = vld [vmem:[#allocation5 + $0x148] ss:$16 sps:$4 sm:$0xff]  }
 0x3bd   :  { %4149 = vmatprep.subr.bf16.mxu1 %v5044_v39 }
 0x3bf   :  { %2182 = vperm.xlu0 %5006, %v2120_v10   ;;  %2185 = vperm.xlu1 %5007, %v2121_v12   ;;  %v2209_v10 = vsub.s32 %v2206_v56, %v5627_v2  ;;  %v5076_v56 = vld [vmem:[#allocation5 + $0x16c] ss:$16 sps:$4 sm:$0xff]  }
 0x3c0   :  { %4151 = vmatpush1.bf16.msra.mxu1 %v5049_v37 }
 0x3c1   :  { %4153 = vmatprep.subr.bf16.mxu1 %v5050_v46  ;;  %v5012_v46 = vld [vmem:[#allocation5 + $0x8] ss:$16 sps:$4 sm:$0xff]  }
 0x3c3   :  { %2176 = vperm.xlu0 %5006, %v2118_v1   ;;  %2191 = vperm.xlu1 %5007, %v2123_v8  }
 0x3c4   :  { %4155 = vmatpush1.bf16.msra.mxu1 %v5055_v50 }
 0x3c5   :  { %4157 = vmatprep.subr.bf16.mxu1 %v5056_v33 }
 0x3c7   :  { %2188 = vperm.xlu0 %5006, %v2122_v43   ;;  %2197 = vperm.xlu1 %5007, %v2125_v27  }
 0x3c8   :  { %4159 = vmatpush1.bf16.msra.mxu1 %v5061_v28  ;;  %v5016_v28 = vld [vmem:[#allocation5 + $0x2c] ss:$16 sps:$4 sm:$0xff]  }
 0x3c9   :  { %4161 = vmatprep.subr.bf16.mxu1 %v5062_v0 }
 0x3cb   :  { %2194 = vperm.xlu0 %5006, %v2124_v16  }
 0x3cc   :  { %4163 = vmatpush1.bf16.msra.mxu1 %v5067_v13  ;;  %v5018_v13 = vld [vmem:[#allocation5 + $0x28] ss:$16 sps:$4 sm:$0xff]  }
 0x3cd   :  { %4165 = vmatprep.subr.bf16.mxu1 %v5068_v52  ;;  %v5022_v52 = vld [vmem:[#allocation5 + $0x4c] ss:$16 sps:$4 sm:$0xff]  }
 0x3cf   :  { %2200 = vperm.xlu0 %5006, %v2126_v55  }
 0x3d0   :  { %4167 = vmatpush1.bf16.msra.mxu1 %v5073_v58  ;;  %v5024_v58 = vld [vmem:[#allocation5 + $0x48] ss:$16 sps:$4 sm:$0xff]  }
 0x3d1   :  { %4169 = vmatprep.subr.bf16.mxu1 %v5074_v9  ;;  %v5028_v9 = vld [vmem:[#allocation5 + $0x6c] ss:$16 sps:$4 sm:$0xff]  }
 0x3d4   :  { %4171 = vmatpush1.bf16.msra.mxu1 %v5079_v42  ;;  %v5030_v42 = vld [vmem:[#allocation5 + $0x68] ss:$16 sps:$4 sm:$0xff]  }
 0x3d5   :  { %4173 = vmatprep.subr.bf16.mxu1 %v5080_v18  ;;  %v5034_v18 = vld [vmem:[#allocation5 + $0x8c] ss:$16 sps:$4 sm:$0xff]  }
 0x3d8   :  { %4175 = vmatpush1.bf16.msra.mxu1 %v5085_v7  ;;  %v5036_v7 = vld [vmem:[#allocation5 + $0x88] ss:$16 sps:$4 sm:$0xff]  }
 0x3d9   :  { %4177 = vmatprep.subr.bf16.mxu1 %v5086_v32  ;;  %v5040_v32 = vld [vmem:[#allocation5 + $0xac] ss:$16 sps:$4 sm:$0xff]  }
 0x3dc   :  { %4179 = vmatpush1.bf16.msra.mxu1 %v5091_v35  ;;  %v5042_v35 = vld [vmem:[#allocation5 + $0xa8] ss:$16 sps:$4 sm:$0xff]  }
 0x3dd   :  { %4181 = vmatprep.subr.bf16.mxu1 %v5092_v30  ;;  %v5046_v30 = vld [vmem:[#allocation5 + $0xcc] ss:$16 sps:$4 sm:$0xff]  }
 0x42a   :  { %v2156_v4 = vpop.permute.xlu1 %2155 }
 0x42b   :  { %v2205_v16 = vrot.slane %v2156_v4, %v2204_v59  ;;  %v5048_v4 = vld [vmem:[#allocation5 + $0xc8] ss:$16 sps:$4 sm:$0xff]  }
 0x42e   :  { %v2162_v34 = vpop.permute.xlu1 %2161 }
 0x42f   :  { %v2216_v8 = vrot.slane %v2162_v34, %v2204_v59  ;;  %v5052_v34 = vld [vmem:[#allocation5 + $0xec] ss:$16 sps:$4 sm:$0xff]  }
 0x432   :  { %v2168_v14 = vpop.permute.xlu1 %2167  ;;  %v2159_v44 = vpop.permute.xlu0 %2158 }
 0x433   :  { %v2210_v24 = vrot.slane %v2159_v44, %v2209_v10  ;;  %v2225_v43 = vrot.slane %v2168_v14, %v2204_v59  ;;  %v5054_v14 = vld [vmem:[#allocation5 + $0xe8] ss:$16 sps:$4 sm:$0xff]   ;;  %v5058_v44 = vld [vmem:[#allocation5 + $0x10c] ss:$16 sps:$4 sm:$0xff]  }
 0x435   :  { %v2212_v41 = vsel %vm2211_vm15, %v2210_v24, %v2205_v16  ;;  %v5098_v24 = vld [vmem:[#allocation5 + $0x1e4] ss:$16 sps:$4 sm:$0xff]   ;;  %v5107_v16 = vld [vmem:[#allocation7 + $0xc] ss:$28 sps:$4 sm:$0xff]  }
 0x436   :  { %v2180_v49 = vpop.permute.xlu1 %2179  ;;  %v2165_v22 = vpop.permute.xlu0 %2164 }
 0x437   :  { %v2220_v26 = vrot.slane %v2165_v22, %v2209_v10  ;;  %v2243_v29 = vrot.slane %v2180_v49, %v2204_v59  ;;  %v5060_v49 = vld [vmem:[#allocation5 + $0x108] ss:$16 sps:$4 sm:$0xff]   ;;  %v5064_v22 = vld [vmem:[#allocation5 + $0x12c] ss:$16 sps:$4 sm:$0xff]  }
 0x439   :  { %v2221_v40 = vsel %vm2211_vm15, %v2220_v26, %v2216_v8  ;;  %v5094_v26 = vld [vmem:[#allocation5 + $0x1cc] ss:$16 sps:$4 sm:$0xff]   ;;  %v5097_v8 = vld [vmem:[#allocation5 + $0x1c0] ss:$16 sps:$4 sm:$0xff]  }
 0x43a   :  { %v2174_v57 = vpop.permute.xlu1 %2173  ;;  %v2171_v60 = vpop.permute.xlu0 %2170  ;;  %v2276_v5 = vsel %vm1948_vm3, %v2221_v40, %v2212_v41  ;;  %4183 = vmatpush1.bf16.msra.mxu1 %v5097_v8  ;;  %v73_v40 = vld [vmem:[#allocation2 + $0x42] ss:$8 sm:$0x3]  ;;  %v6925_v41 = vsub.s32 1, %v5627_v2  ;;  %v5176_v8 = vld [vmem:[#allocation7 + $0x2a4] ss:$28 sps:$4 sm:$0xff]  }
 0x43b   :  { %v2229_v1 = vrot.slane %v2171_v60, %v2209_v10  ;;  %v2234_v55 = vrot.slane %v2174_v57, %v2204_v59  ;;  %v5066_v57 = vld [vmem:[#allocation5 + $0x128] ss:$16 sps:$4 sm:$0xff]   ;;  %v5070_v60 = vld [vmem:[#allocation5 + $0x14c] ss:$16 sps:$4 sm:$0xff]   ;;  %4185 = vmatprep.subr.bf16.mxu1 %v5098_v24  ;;  %v5116_v2 = vld [vmem:[#allocation7 + $0x74] ss:$28 sps:$4 sm:$0xff]  }
 0x43c   :  { %v5179_v24 = vld [vmem:[#allocation7 + $0x2ac] ss:$28 sps:$4 sm:$0xff]  }
 0x43d   :  { %v2230_v3 = vsel %vm2211_vm15, %v2229_v1, %v2225_v43  ;;  %v5096_v1 = vld [vmem:[#allocation5 + $0x1c8] ss:$16 sps:$4 sm:$0xff]  }
 0x43e   :  { %v2183_v62 = vpop.permute.xlu0 %2182  ;;  %v2186_v21 = vpop.permute.xlu1 %2185  ;;  %v2277_v47 = vsel %vm1950_vm4, %v2230_v3, %v2276_v5  ;;  %v5102_v43 = vld [vmem:[#allocation5 + $0x1e8] ss:$16 sps:$4 sm:$0xff]  }
 0x43f   :  { %v2247_v61 = vrot.slane %v2183_v62, %v2209_v10  ;;  %v2252_v20 = vrot.slane %v2186_v21, %v2204_v59  ;;  %v5078_v62 = vld [vmem:[#allocation5 + $0x168] ss:$16 sps:$4 sm:$0xff]   ;;  %v5082_v21 = vld [vmem:[#allocation5 + $0x18c] ss:$16 sps:$4 sm:$0xff]  }
 0x441   :  { %v2248_v54 = vsel %vm2211_vm15, %v2247_v61, %v2243_v29 }
 0x442   :  { %v2177_v12 = vpop.permute.xlu0 %2176  ;;  %v2192_v27 = vpop.permute.xlu1 %2191 }
 0x443   :  { %v2238_v23 = vrot.slane %v2177_v12, %v2209_v10  ;;  %v2261_v53 = vrot.slane %v2192_v27, %v2204_v59  ;;  %v5088_v12 = vld [vmem:[#allocation5 + $0x1ac] ss:$16 sps:$4 sm:$0xff]   ;;  %v5103_v27 = vld [vmem:[#allocation5 + $0x1e0] ss:$16 sps:$4 sm:$0xff]  }
 0x444   :  { %4187 = vmatpush1.bf16.msra.mxu1 %v5103_v27  ;;  %v5182_v27 = vld [vmem:[#allocation7 + $0x2dc] ss:$28 sps:$4 sm:$0xff]  }
 0x445   :  { %v2239_v17 = vsel %vm2211_vm15, %v2238_v23, %v2234_v55  ;;  %v5100_v23 = vld [vmem:[#allocation5 + $0x1ec] ss:$16 sps:$4 sm:$0xff]  }
 0x446   :  { %v2189_v11 = vpop.permute.xlu0 %2188  ;;  %v2278_v19 = vsel %vm1952_vm5, %v2239_v17, %v2277_v47  ;;  %v2198_v48 = vpop.permute.xlu1 %2197  ;;  %v6924_v55 = vld [vmem:[#allocation12_spill] sm:$0xff]  ;;  %v2135_v17 = vrot.slane %v73_v40, %v6925_v41  ;;  %v5190_v41 = vld [vmem:[#allocation7 + $0x310] ss:$28 sps:$4 sm:$0xff]  }
 0x447   :  { %v2256_v36 = vrot.slane %v2189_v11, %v2209_v10  ;;  %v2270_v25 = vrot.slane %v2198_v48, %v2204_v59  ;;  %v2279_v63 = vsel %vm1954_vm6, %v2248_v54, %v2278_v19  ;;  %v5090_v59 = vld [vmem:[#allocation5 + $0x1a8] ss:$16 sps:$4 sm:$0xff]   ;;  %v5104_v11 = vld [vmem:[#allocation7 + $0x4] ss:$28 sps:$4 sm:$0xff]   ;;  %v2131_v3 = vrot.slane %v73_v40, %v6924_v55  ;;  %v5188_v55 = vld [vmem:[#allocation7 + $0x314] ss:$28 sps:$4 sm:$0xff]  }
 0x448   :  { %4253 = vmatprep.subr.bf16.mxu1 %v5104_v11  ;;  %v5113_v19 = vld [vmem:[#allocation7 + $0x44] ss:$28 sps:$4 sm:$0xff]   ;;  %v5112_v48 = vld [vmem:[#allocation7 + $0x38] ss:$28 sps:$4 sm:$0xff]  }
 0x449   :  { %v2257_v38 = vsel %vm2211_vm15, %v2256_v36, %v2252_v20  ;;  %v5106_v20 = vld [vmem:[#allocation7] ss:$28 sps:$4 sm:$0xff]  }
 0x44a   :  { %v2195_v51 = vpop.permute.xlu0 %2194  ;;  %v2280_v37 = vsel %vm1956_vm7, %v2257_v38, %v2279_v63  ;;  %v5115_v38 = vld [vmem:[#allocation7 + $0x40] ss:$28 sps:$4 sm:$0xff]   ;;  %v5125_v63 = vld [vmem:[#allocation7 + $0xb4] ss:$28 sps:$4 sm:$0xff]  }
 0x44b   :  { %v2265_v45 = vrot.slane %v2195_v51, %v2209_v10  ;;  %v5119_v54 = vld [vmem:[#allocation7 + $0x7c] ss:$28 sps:$4 sm:$0xff]   ;;  %v5185_v11 = vld [vmem:[#allocation7 + $0x2e4] ss:$28 sps:$4 sm:$0xff]  }
 0x44c   :  { %v5187_v40 = vld [vmem:[#allocation7 + $0x2e0] ss:$28 sps:$4 sm:$0xff]  }
 0x44d   :  { %v2266_v15 = vsel %vm2211_vm15, %v2265_v45, %v2261_v53  ;;  %v5109_v45 = vld [vmem:[#allocation7 + $0x8] ss:$28 sps:$4 sm:$0xff]   ;;  %v5110_v53 = vld [vmem:[#allocation7 + $0x3c] ss:$28 sps:$4 sm:$0xff]  }
 0x44e   :  { %v2201_v31 = vpop.permute.xlu0 %2200  ;;  %v2281_v33 = vsel %vm1958_vm8, %v2266_v15, %v2280_v37  ;;  %v5118_v15 = vld [vmem:[#allocation7 + $0x70] ss:$28 sps:$4 sm:$0xff]  }
 0x44f   :  { %v2274_v39 = vrot.slane %v2201_v31, %v2209_v10  ;;  %v5084_v10 = vld [vmem:[#allocation5 + $0x188] ss:$16 sps:$4 sm:$0xff]   ;;  %v5127_v37 = vld [vmem:[#allocation7 + $0xb0] ss:$28 sps:$4 sm:$0xff]  }
 0x450   :  { %v5121_v31 = vld [vmem:[#allocation7 + $0x78] ss:$28 sps:$4 sm:$0xff]  }
 0x451   :  { %v2275_v50 = vsel %vm2211_vm15, %v2274_v39, %v2270_v25  ;;  %v5122_v25 = vld [vmem:[#allocation7 + $0xac] ss:$28 sps:$4 sm:$0xff]  }
 0x452   :  { %v2282_v0 = vsel %vm1960_vm9, %v2275_v50, %v2281_v33  ;;  %v5124_v39 = vld [vmem:[#allocation7 + $0xa8] ss:$28 sps:$4 sm:$0xff]   ;;  %v5130_v33 = vld [vmem:[#allocation7 + $0xe0] ss:$28 sps:$4 sm:$0xff]  }
 0x453   :  { %4040 = vmatmul.mubr.msk.f32.vlgmr.msra.gmra.mrb[0].mxu0 %vm2035_vm11, %v2282_v0  ;;  %v5131_v50 = vld [vmem:[#allocation7 + $0xec] ss:$28 sps:$4 sm:$0xff]   ;;  %v5134_v0 = vld [vmem:[#allocation7 + $0x11c] ss:$28 sps:$4 sm:$0xff]  }
 0x454   :  { %4191 = vmatpush1.bf16.msra.mxu0 %v5012_v46  ;;  %v5128_v46 = vld [vmem:[#allocation7 + $0xe4] ss:$28 sps:$4 sm:$0xff]  }
 0x455   :  { %4193 = vmatprep.subr.bf16.mxu0 %v5016_v28  ;;  %v5133_v28 = vld [vmem:[#allocation7 + $0xe8] ss:$28 sps:$4 sm:$0xff]  }
 0x458   :  { %4195 = vmatpush1.bf16.msra.mxu0 %v5018_v13  ;;  %v5137_v13 = vld [vmem:[#allocation7 + $0x124] ss:$28 sps:$4 sm:$0xff]  }
 0x459   :  { %4197 = vmatprep.subr.bf16.mxu0 %v5022_v52  ;;  %v5136_v52 = vld [vmem:[#allocation7 + $0x118] ss:$28 sps:$4 sm:$0xff]  }
 0x45c   :  { %4199 = vmatpush1.bf16.msra.mxu0 %v5024_v58  ;;  %v5139_v58 = vld [vmem:[#allocation7 + $0x120] ss:$28 sps:$4 sm:$0xff]  }
 0x45d   :  { %4201 = vmatprep.subr.bf16.mxu0 %v5028_v9  ;;  %v5140_v9 = vld [vmem:[#allocation7 + $0x154] ss:$28 sps:$4 sm:$0xff]  }
 0x460   :  { %4203 = vmatpush1.bf16.msra.mxu0 %v5030_v42  ;;  %v5143_v42 = vld [vmem:[#allocation7 + $0x15c] ss:$28 sps:$4 sm:$0xff]  }
 0x461   :  { %4205 = vmatprep.subr.bf16.mxu0 %v5034_v18  ;;  %v5142_v18 = vld [vmem:[#allocation7 + $0x150] ss:$28 sps:$4 sm:$0xff]  }
 0x464   :  { %4207 = vmatpush1.bf16.msra.mxu0 %v5036_v7  ;;  %v5145_v7 = vld [vmem:[#allocation7 + $0x158] ss:$28 sps:$4 sm:$0xff]  }
 0x465   :  { %4209 = vmatprep.subr.bf16.mxu0 %v5040_v32  ;;  %v5146_v32 = vld [vmem:[#allocation7 + $0x18c] ss:$28 sps:$4 sm:$0xff]  }
 0x468   :  { %4211 = vmatpush1.bf16.msra.mxu0 %v5042_v35  ;;  %v5149_v35 = vld [vmem:[#allocation7 + $0x194] ss:$28 sps:$4 sm:$0xff]  }
 0x469   :  { %4213 = vmatprep.subr.bf16.mxu0 %v5046_v30  ;;  %v5148_v30 = vld [vmem:[#allocation7 + $0x188] ss:$28 sps:$4 sm:$0xff]  }
 0x46c   :  { %4215 = vmatpush1.bf16.msra.mxu0 %v5048_v4  ;;  %v5151_v4 = vld [vmem:[#allocation7 + $0x190] ss:$28 sps:$4 sm:$0xff]  }
 0x46d   :  { %4217 = vmatprep.subr.bf16.mxu0 %v5052_v34  ;;  %v5152_v34 = vld [vmem:[#allocation7 + $0x1c4] ss:$28 sps:$4 sm:$0xff]  }
 0x470   :  { %4219 = vmatpush1.bf16.msra.mxu0 %v5054_v14  ;;  %v5155_v14 = vld [vmem:[#allocation7 + $0x1cc] ss:$28 sps:$4 sm:$0xff]  }
 0x471   :  { %4221 = vmatprep.subr.bf16.mxu0 %v5058_v44  ;;  %v5154_v44 = vld [vmem:[#allocation7 + $0x1c0] ss:$28 sps:$4 sm:$0xff]  }
 0x474   :  { %4223 = vmatpush1.bf16.msra.mxu0 %v5060_v49  ;;  %v5157_v49 = vld [vmem:[#allocation7 + $0x1c8] ss:$28 sps:$4 sm:$0xff]  }
 0x475   :  { %4225 = vmatprep.subr.bf16.mxu0 %v5064_v22  ;;  %v5158_v22 = vld [vmem:[#allocation7 + $0x1fc] ss:$28 sps:$4 sm:$0xff]  }
 0x478   :  { %4227 = vmatpush1.bf16.msra.mxu0 %v5066_v57  ;;  %v5161_v57 = vld [vmem:[#allocation7 + $0x204] ss:$28 sps:$4 sm:$0xff]  }
 0x479   :  { %4229 = vmatprep.subr.bf16.mxu0 %v5070_v60  ;;  %v5160_v60 = vld [vmem:[#allocation7 + $0x1f8] ss:$28 sps:$4 sm:$0xff]  }
 0x47c   :  { %4231 = vmatpush1.bf16.msra.mxu0 %v5072_v6  ;;  %v5163_v6 = vld [vmem:[#allocation7 + $0x200] ss:$28 sps:$4 sm:$0xff]  }
 0x47d   :  { %4233 = vmatprep.subr.bf16.mxu0 %v5076_v56  ;;  %v5164_v56 = vld [vmem:[#allocation7 + $0x234] ss:$28 sps:$4 sm:$0xff]  }
 0x480   :  { %4235 = vmatpush1.bf16.msra.mxu0 %v5078_v62  ;;  %v5167_v62 = vld [vmem:[#allocation7 + $0x23c] ss:$28 sps:$4 sm:$0xff]  }
 0x481   :  { %4237 = vmatprep.subr.bf16.mxu0 %v5082_v21  ;;  %v5166_v21 = vld [vmem:[#allocation7 + $0x230] ss:$28 sps:$4 sm:$0xff]  }
 0x484   :  { %4239 = vmatpush1.bf16.msra.mxu0 %v5084_v10  ;;  %v5169_v10 = vld [vmem:[#allocation7 + $0x238] ss:$28 sps:$4 sm:$0xff]  }
 0x485   :  { %4241 = vmatprep.subr.bf16.mxu0 %v5088_v12  ;;  %v5170_v12 = vld [vmem:[#allocation7 + $0x26c] ss:$28 sps:$4 sm:$0xff]  }
 0x488   :  { %4243 = vmatpush1.bf16.msra.mxu0 %v5090_v59  ;;  %v5173_v59 = vld [vmem:[#allocation7 + $0x274] ss:$28 sps:$4 sm:$0xff]  }
 0x489   :  { %4245 = vmatprep.subr.bf16.mxu0 %v5094_v26  ;;  %v5172_v26 = vld [vmem:[#allocation7 + $0x268] ss:$28 sps:$4 sm:$0xff]  }
 0x48c   :  { %4247 = vmatpush1.bf16.msra.mxu0 %v5096_v1  ;;  %v5175_v1 = vld [vmem:[#allocation7 + $0x270] ss:$28 sps:$4 sm:$0xff]  }
 0x48d   :  { %4249 = vmatprep.subr.bf16.mxu0 %v5100_v23  ;;  %v5178_v23 = vld [vmem:[#allocation7 + $0x2a0] ss:$28 sps:$4 sm:$0xff]  }
 0x490   :  { %4251 = vmatpush1.bf16.msra.mxu0 %v5102_v43  ;;  %v5181_v43 = vld [vmem:[#allocation7 + $0x2a8] ss:$28 sps:$4 sm:$0xff]  }
 0x491   :  { %4381 = vmatprep.subr.bf16.mxu0 %v5107_v16  ;;  %v5184_v16 = vld [vmem:[#allocation7 + $0x2d8] ss:$28 sps:$4 sm:$0xff]  }
 0x526   :  { %v2358_v36 = vpop.f32.mrb[0].mxu0 }
 0x527   :  { %v2359_v5 = vadd.f32 %v2358_v36, %v2131_v3  ;;  %v2360_v61 = vpop.f32.mrb[1].mxu0  ;;  %v5191_v3 = vld [vmem:[#allocation7 + $0x31c] ss:$28 sps:$4 sm:$0xff]   ;;  %v5194_v36 = vld [vmem:[#allocation7 + $0x34c] ss:$28 sps:$4 sm:$0xff]  }
 0x528   :  { %v2361_v51 = vadd.f32 %v2360_v61, %v2135_v17  ;;  %v5193_v17 = vld [vmem:[#allocation7 + $0x318] ss:$28 sps:$4 sm:$0xff]  }
 0x529   :  { %v2363_v29 = vmax.f32 %v2359_v5, 0.0  ;;  %v5196_v5 = vld [vmem:[#allocation7 + $0x348] ss:$28 sps:$4 sm:$0xff]   ;;  %v5197_v61 = vld [vmem:[#allocation7 + $0x354] ss:$28 sps:$4 sm:$0xff]  }
 0x52a   :  { %v2364_v47 = vmax.f32 %v2361_v51, 0.0  ;;  %v5199_v51 = vld [vmem:[#allocation7 + $0x350] ss:$28 sps:$4 sm:$0xff]  }
 0x52c   :  { %2621 = vmatprep.mubr.f32.mxu1 %v2364_v47  ;;  %2692 = vmatprep.mubr.f32.mxu0 %v2364_v47  ;;  %v5200_v47 = vld [vmem:[#allocation7 + $0x384] ss:$28 sps:$4 sm:$0xff]  }
 0x52d   :  { %2622 = vmatmul.mubr.f32.vlgmr.msra.gmra.mrb[0].mxu1 %v2363_v29  ;;  %2693 = vmatmul.mubr.f32.vlgmr.msra.gmra.mrb[2].mxu0 %v2363_v29 }
 0x52e   :  { %4255 = vmatpush1.bf16.msra.mxu1 %v5106_v20  ;;  %4383 = vmatpush1.bf16.msra.mxu0 %v5109_v45  ;;  %v5203_v20 = vld [vmem:[#allocation7 + $0x38c] ss:$28 sps:$4 sm:$0xff]  }
 0x52f   :  { %4257 = vmatprep.subr.bf16.mxu1 %v5110_v53  ;;  %4385 = vmatprep.subr.bf16.mxu0 %v5113_v19 }
 0x532   :  { %4259 = vmatpush1.bf16.msra.mxu1 %v5112_v48  ;;  %4387 = vmatpush1.bf16.msra.mxu0 %v5115_v38  ;;  %v5202_v38 = vld [vmem:[#allocation7 + $0x380] ss:$28 sps:$4 sm:$0xff]  }
 0x533   :  { %4261 = vmatprep.subr.bf16.mxu1 %v5116_v2  ;;  %4389 = vmatprep.subr.bf16.mxu0 %v5119_v54  ;;  %v5205_v2 = vld [vmem:[#allocation7 + $0x388] ss:$28 sps:$4 sm:$0xff]  }
 0x536   :  { %4263 = vmatpush1.bf16.msra.mxu1 %v5118_v15  ;;  %4391 = vmatpush1.bf16.msra.mxu0 %v5121_v31  ;;  %v5206_v15 = vld [vmem:[#allocation7 + $0x3bc] ss:$28 sps:$4 sm:$0xff]   ;;  %v5209_v31 = vld [vmem:[#allocation7 + $0x3c4] ss:$28 sps:$4 sm:$0xff]  }
 0x537   :  { %4265 = vmatprep.subr.bf16.mxu1 %v5122_v25  ;;  %4393 = vmatprep.subr.bf16.mxu0 %v5125_v63  ;;  %v5208_v63 = vld [vmem:[#allocation7 + $0x3b8] ss:$28 sps:$4 sm:$0xff]  }
 0x53a   :  { %4267 = vmatpush1.bf16.msra.mxu1 %v5124_v39  ;;  %4395 = vmatpush1.bf16.msra.mxu0 %v5127_v37  ;;  %v5211_v39 = vld [vmem:[#allocation7 + $0x3c0] ss:$28 sps:$4 sm:$0xff]   ;;  %v5212_v37 = vld [vmem:[#allocation7 + $0x3f4] ss:$28 sps:$4 sm:$0xff]  }
 0x53b   :  { %4269 = vmatprep.subr.bf16.mxu1 %v5128_v46  ;;  %4397 = vmatprep.subr.bf16.mxu0 %v5131_v50  ;;  %v5215_v46 = vld [vmem:[#allocation7 + $0x3fc] ss:$28 sps:$4 sm:$0xff]   ;;  %v5214_v50 = vld [vmem:[#allocation7 + $0x3f0] ss:$28 sps:$4 sm:$0xff]  }
 0x53e   :  { %4271 = vmatpush1.bf16.msra.mxu1 %v5130_v33  ;;  %4399 = vmatpush1.bf16.msra.mxu0 %v5133_v28  ;;  %v5217_v33 = vld [vmem:[#allocation7 + $0x3f8] ss:$28 sps:$4 sm:$0xff]   ;;  %v5218_v28 = vld [vmem:[#allocation7 + $0x42c] ss:$28 sps:$4 sm:$0xff]  }
 0x53f   :  { %4273 = vmatprep.subr.bf16.mxu1 %v5134_v0  ;;  %4401 = vmatprep.subr.bf16.mxu0 %v5137_v13  ;;  %v5221_v0 = vld [vmem:[#allocation7 + $0x434] ss:$28 sps:$4 sm:$0xff]   ;;  %v5220_v13 = vld [vmem:[#allocation7 + $0x428] ss:$28 sps:$4 sm:$0xff]  }
 0x542   :  { %4275 = vmatpush1.bf16.msra.mxu1 %v5136_v52  ;;  %4403 = vmatpush1.bf16.msra.mxu0 %v5139_v58  ;;  %v5223_v52 = vld [vmem:[#allocation7 + $0x430] ss:$28 sps:$4 sm:$0xff]   ;;  %v5224_v58 = vld [vmem:[#allocation7 + $0x464] ss:$28 sps:$4 sm:$0xff]  }
 0x543   :  { %4277 = vmatprep.subr.bf16.mxu1 %v5140_v9  ;;  %4405 = vmatprep.subr.bf16.mxu0 %v5143_v42  ;;  %v5227_v9 = vld [vmem:[#allocation7 + $0x46c] ss:$28 sps:$4 sm:$0xff]   ;;  %v5226_v42 = vld [vmem:[#allocation7 + $0x460] ss:$28 sps:$4 sm:$0xff]  }
 0x546   :  { %4279 = vmatpush1.bf16.msra.mxu1 %v5142_v18  ;;  %4407 = vmatpush1.bf16.msra.mxu0 %v5145_v7  ;;  %v5229_v18 = vld [vmem:[#allocation7 + $0x468] ss:$28 sps:$4 sm:$0xff]   ;;  %v5230_v7 = vld [vmem:[#allocation7 + $0x49c] ss:$28 sps:$4 sm:$0xff]  }
 0x547   :  { %4281 = vmatprep.subr.bf16.mxu1 %v5146_v32  ;;  %4409 = vmatprep.subr.bf16.mxu0 %v5149_v35  ;;  %v5233_v32 = vld [vmem:[#allocation7 + $0x4a4] ss:$28 sps:$4 sm:$0xff]   ;;  %v5232_v35 = vld [vmem:[#allocation7 + $0x498] ss:$28 sps:$4 sm:$0xff]  }
 0x54a   :  { %4283 = vmatpush1.bf16.msra.mxu1 %v5148_v30  ;;  %4411 = vmatpush1.bf16.msra.mxu0 %v5151_v4  ;;  %v5235_v30 = vld [vmem:[#allocation7 + $0x4a0] ss:$28 sps:$4 sm:$0xff]   ;;  %v5236_v4 = vld [vmem:[#allocation7 + $0x4d4] ss:$28 sps:$4 sm:$0xff]  }
 0x54b   :  { %4285 = vmatprep.subr.bf16.mxu1 %v5152_v34  ;;  %4413 = vmatprep.subr.bf16.mxu0 %v5155_v14  ;;  %v5239_v34 = vld [vmem:[#allocation7 + $0x4dc] ss:$28 sps:$4 sm:$0xff]   ;;  %v5238_v14 = vld [vmem:[#allocation7 + $0x4d0] ss:$28 sps:$4 sm:$0xff]  }
 0x54e   :  { %4287 = vmatpush1.bf16.msra.mxu1 %v5154_v44  ;;  %4415 = vmatpush1.bf16.msra.mxu0 %v5157_v49  ;;  %v5241_v44 = vld [vmem:[#allocation7 + $0x4d8] ss:$28 sps:$4 sm:$0xff]   ;;  %v5242_v49 = vld [vmem:[#allocation7 + $0x50c] ss:$28 sps:$4 sm:$0xff]  }
 0x54f   :  { %4289 = vmatprep.subr.bf16.mxu1 %v5158_v22  ;;  %4417 = vmatprep.subr.bf16.mxu0 %v5161_v57  ;;  %v5245_v22 = vld [vmem:[#allocation7 + $0x514] ss:$28 sps:$4 sm:$0xff]   ;;  %v5244_v57 = vld [vmem:[#allocation7 + $0x508] ss:$28 sps:$4 sm:$0xff]  }
 0x552   :  { %4291 = vmatpush1.bf16.msra.mxu1 %v5160_v60  ;;  %4419 = vmatpush1.bf16.msra.mxu0 %v5163_v6  ;;  %v5247_v60 = vld [vmem:[#allocation7 + $0x510] ss:$28 sps:$4 sm:$0xff]   ;;  %v5248_v6 = vld [vmem:[#allocation7 + $0x544] ss:$28 sps:$4 sm:$0xff]  }
 0x553   :  { %4293 = vmatprep.subr.bf16.mxu1 %v5164_v56  ;;  %4421 = vmatprep.subr.bf16.mxu0 %v5167_v62  ;;  %v5251_v56 = vld [vmem:[#allocation7 + $0x54c] ss:$28 sps:$4 sm:$0xff]   ;;  %v5250_v62 = vld [vmem:[#allocation7 + $0x540] ss:$28 sps:$4 sm:$0xff]  }
 0x556   :  { %4295 = vmatpush1.bf16.msra.mxu1 %v5166_v21  ;;  %4423 = vmatpush1.bf16.msra.mxu0 %v5169_v10  ;;  %v5253_v21 = vld [vmem:[#allocation7 + $0x548] ss:$28 sps:$4 sm:$0xff]   ;;  %v5254_v10 = vld [vmem:[#allocation7 + $0x57c] ss:$28 sps:$4 sm:$0xff]  }
 0x557   :  { %4297 = vmatprep.subr.bf16.mxu1 %v5170_v12  ;;  %4425 = vmatprep.subr.bf16.mxu0 %v5173_v59  ;;  %v5257_v12 = vld [vmem:[#allocation7 + $0x584] ss:$28 sps:$4 sm:$0xff]   ;;  %v5256_v59 = vld [vmem:[#allocation7 + $0x578] ss:$28 sps:$4 sm:$0xff]  }
 0x55a   :  { %4299 = vmatpush1.bf16.msra.mxu1 %v5172_v26  ;;  %4427 = vmatpush1.bf16.msra.mxu0 %v5175_v1  ;;  %v5259_v26 = vld [vmem:[#allocation7 + $0x580] ss:$28 sps:$4 sm:$0xff]   ;;  %v5260_v1 = vld [vmem:[#allocation7 + $0x5b4] ss:$28 sps:$4 sm:$0xff]  }
 0x55b   :  { %4301 = vmatprep.subr.bf16.mxu1 %v5176_v8  ;;  %4429 = vmatprep.subr.bf16.mxu0 %v5179_v24  ;;  %v5263_v8 = vld [vmem:[#allocation7 + $0x5bc] ss:$28 sps:$4 sm:$0xff]   ;;  %v5262_v24 = vld [vmem:[#allocation7 + $0x5b0] ss:$28 sps:$4 sm:$0xff]  }
 0x55e   :  { %4303 = vmatpush1.bf16.msra.mxu1 %v5178_v23  ;;  %4431 = vmatpush1.bf16.msra.mxu0 %v5181_v43  ;;  %v5265_v23 = vld [vmem:[#allocation7 + $0x5b8] ss:$28 sps:$4 sm:$0xff]   ;;  %v5266_v43 = vld [vmem:[#allocation7 + $0x5ec] ss:$28 sps:$4 sm:$0xff]  }
 0x55f   :  { %4305 = vmatprep.subr.bf16.mxu1 %v5182_v27  ;;  %4433 = vmatprep.subr.bf16.mxu0 %v5185_v11  ;;  %v5269_v27 = vld [vmem:[#allocation7 + $0x5f4] ss:$28 sps:$4 sm:$0xff]   ;;  %v5268_v11 = vld [vmem:[#allocation7 + $0x5e8] ss:$28 sps:$4 sm:$0xff]  }
 0x562   :  { %4307 = vmatpush1.bf16.msra.mxu1 %v5184_v16  ;;  %4435 = vmatpush1.bf16.msra.mxu0 %v5187_v40  ;;  %v5271_v16 = vld [vmem:[#allocation7 + $0x5f0] ss:$28 sps:$4 sm:$0xff]   ;;  %v5272_v40 = vld [vmem:[#allocation7 + $0x624] ss:$28 sps:$4 sm:$0xff]  }
 0x563   :  { %4309 = vmatprep.subr.bf16.mxu1 %v5188_v55  ;;  %4437 = vmatprep.subr.bf16.mxu0 %v5191_v3  ;;  %v5275_v55 = vld [vmem:[#allocation7 + $0x62c] ss:$28 sps:$4 sm:$0xff]   ;;  %v5274_v3 = vld [vmem:[#allocation7 + $0x620] ss:$28 sps:$4 sm:$0xff]  }
 0x566   :  { %4311 = vmatpush1.bf16.msra.mxu1 %v5190_v41  ;;  %4439 = vmatpush1.bf16.msra.mxu0 %v5193_v17  ;;  %v5277_v41 = vld [vmem:[#allocation7 + $0x628] ss:$28 sps:$4 sm:$0xff]   ;;  %v5278_v17 = vld [vmem:[#allocation7 + $0x65c] ss:$28 sps:$4 sm:$0xff]  }
 0x567   :  { %4313 = vmatprep.subr.bf16.mxu1 %v5194_v36  ;;  %4441 = vmatprep.subr.bf16.mxu0 %v5197_v61  ;;  %v5281_v36 = vld [vmem:[#allocation7 + $0x664] ss:$28 sps:$4 sm:$0xff]  }
 0x568   :  { %v5283_v61 = vld [vmem:[#allocation7 + $0x660] ss:$28 sps:$4 sm:$0xff]  }
 0x56a   :  { %4315 = vmatpush1.bf16.msra.mxu1 %v5196_v5  ;;  %4443 = vmatpush1.bf16.msra.mxu0 %v5199_v51  ;;  %v5280_v5 = vld [vmem:[#allocation7 + $0x658] ss:$28 sps:$4 sm:$0xff]  }
 0x56b   :  { %4317 = vmatprep.subr.bf16.mxu1 %v5200_v47  ;;  %4445 = vmatprep.subr.bf16.mxu0 %v5203_v20  ;;  %v5284_v51 = vld [vmem:[#allocation7 + $0x694] ss:$28 sps:$4 sm:$0xff]   ;;  %v5287_v47 = vld [vmem:[#allocation7 + $0x69c] ss:$28 sps:$4 sm:$0xff]  }
 0x56c   :  { %v5286_v20 = vld [vmem:[#allocation7 + $0x690] ss:$28 sps:$4 sm:$0xff]  }
 0x600   :  { %v2623_v45 = vpop.f32.mrb[0].mxu1  ;;  %v6779_v29 = vpop.f32.mrb[2].mxu0 }
 0x601   :  { %v2625_v53 = vpop.f32.mrb[1].mxu1  ;;  %v2696_v19 = vpop.f32.mrb[3].mxu0  ;;  %v6783_v54 = vmax.f32 %v2623_v45, 0.0  ;;  %v5289_v45 = vld [vmem:[#allocation7 + $0x698] ss:$28 sps:$4 sm:$0xff]  }
 0x602   :  { %v6781_v48 = vmax.f32 %v2625_v53, 0.0  ;;  %v6787_v25 = vmax.f32 %v2696_v19, 0.0  ;;  %v5290_v53 = vld [vmem:[#allocation7 + $0x6cc] ss:$28 sps:$4 sm:$0xff]   ;;  %v5293_v19 = vld [vmem:[#allocation7 + $0x6d4] ss:$28 sps:$4 sm:$0xff]  }
 0x604   :  { %3471 = vmatprep.mubr.f32.mxu1 %v6781_v48  ;;  %3613 = vmatprep.mubr.f32.mxu0 %v6781_v48 }
 0x605   :  { %3472 = vmatmul.mubr.f32.vlgmr.msra.gmra.mrb[2].mxu1 %v6783_v54  ;;  %3614 = vmatmul.mubr.f32.vlgmr.msra.gmra.mrb[4].mxu0 %v6783_v54 }
 0x606   :  { %4319 = vmatpush1.bf16.msra.mxu1 %v5202_v38  ;;  %4447 = vmatpush1.bf16.msra.mxu0 %v5205_v2  ;;  %v5292_v38 = vld [vmem:[#allocation7 + $0x6c8] ss:$28 sps:$4 sm:$0xff]   ;;  %v5295_v2 = vld [vmem:[#allocation7 + $0x6d0] ss:$28 sps:$4 sm:$0xff]  }
 0x607   :  { %3542 = vmatprep.mubr.f32.mxu1 %v6787_v25  ;;  %3684 = vmatprep.mubr.f32.mxu0 %v6787_v25 }
 0x608   :  { %4321 = vmatprep.subr.bf16.mxu1 %v5206_v15  ;;  %4449 = vmatprep.subr.bf16.mxu0 %v5209_v31  ;;  %v5296_v15 = vld [vmem:[#allocation7 + $0x14] ss:$28 sps:$4 sm:$0xff]  }
 0x609   :  { %v5299_v31 = vld [vmem:[#allocation7 + $0x1d8] ss:$28 sps:$4 sm:$0xff]  }
 0x60a   :  { %4323 = vmatpush1.bf16.msra.mxu1 %v5208_v63  ;;  %4451 = vmatpush1.bf16.msra.mxu0 %v5211_v39  ;;  %v5298_v63 = vld [vmem:[#allocation7 + $0x10] ss:$28 sps:$4 sm:$0xff]   ;;  %v6794_v39 = vmax.f32 %v6779_v29, 0.0  ;;  %v5309_v29 = vld [vmem:[#allocation7 + $0x248] ss:$28 sps:$4 sm:$0xff]  }
 0x60b   :  { %4325 = vmatprep.subr.bf16.mxu1 %v5212_v37  ;;  %4453 = vmatprep.subr.bf16.mxu0 %v5215_v46  ;;  %v5300_v37 = vld [vmem:[#allocation7 + $0x18] ss:$28 sps:$4 sm:$0xff]   ;;  %v5301_v46 = vld [vmem:[#allocation7 + $0x4c] ss:$28 sps:$4 sm:$0xff]  }
 0x60e   :  { %4327 = vmatpush1.bf16.msra.mxu1 %v5214_v50  ;;  %4455 = vmatpush1.bf16.msra.mxu0 %v5217_v33  ;;  %v5304_v50 = vld [vmem:[#allocation7 + $0x210] ss:$28 sps:$4 sm:$0xff]   ;;  %v5303_v33 = vld [vmem:[#allocation7 + $0x48] ss:$28 sps:$4 sm:$0xff]  }
 0x60f   :  { %4329 = vmatprep.subr.bf16.mxu1 %v5218_v28  ;;  %4457 = vmatprep.subr.bf16.mxu0 %v5221_v0  ;;  %v5305_v28 = vld [vmem:[#allocation7 + $0x50] ss:$28 sps:$4 sm:$0xff]   ;;  %v5306_v0 = vld [vmem:[#allocation7 + $0x84] ss:$28 sps:$4 sm:$0xff]  }
 0x612   :  { %4331 = vmatpush1.bf16.msra.mxu1 %v5220_v13  ;;  %4459 = vmatpush1.bf16.msra.mxu0 %v5223_v52  ;;  %v5308_v13 = vld [vmem:[#allocation7 + $0x80] ss:$28 sps:$4 sm:$0xff]   ;;  %v5310_v52 = vld [vmem:[#allocation7 + $0x88] ss:$28 sps:$4 sm:$0xff]  }
 0x613   :  { %4333 = vmatprep.subr.bf16.mxu1 %v5224_v58  ;;  %4461 = vmatprep.subr.bf16.mxu0 %v5227_v9  ;;  %v5311_v58 = vld [vmem:[#allocation7 + $0xbc] ss:$28 sps:$4 sm:$0xff]  }
 0x614   :  { %v5314_v9 = vld [vmem:[#allocation7 + $0x280] ss:$28 sps:$4 sm:$0xff]  }
 0x616   :  { %4335 = vmatpush1.bf16.msra.mxu1 %v5226_v42  ;;  %4463 = vmatpush1.bf16.msra.mxu0 %v5229_v18  ;;  %v5313_v42 = vld [vmem:[#allocation7 + $0xb8] ss:$28 sps:$4 sm:$0xff]   ;;  %v5315_v18 = vld [vmem:[#allocation7 + $0xc0] ss:$28 sps:$4 sm:$0xff]  }
 0x617   :  { %4337 = vmatprep.subr.bf16.mxu1 %v5230_v7  ;;  %4465 = vmatprep.subr.bf16.mxu0 %v5233_v32  ;;  %v5316_v7 = vld [vmem:[#allocation7 + $0xf4] ss:$28 sps:$4 sm:$0xff]  }
 0x618   :  { %v5318_v32 = vld [vmem:[#allocation7 + $0xf0] ss:$28 sps:$4 sm:$0xff]  }
 0x61a   :  { %4339 = vmatpush1.bf16.msra.mxu1 %v5232_v35  ;;  %4467 = vmatpush1.bf16.msra.mxu0 %v5235_v30  ;;  %v5320_v35 = vld [vmem:[#allocation7 + $0xf8] ss:$28 sps:$4 sm:$0xff]   ;;  %v5321_v30 = vld [vmem:[#allocation7 + $0x12c] ss:$28 sps:$4 sm:$0xff]  }
 0x61b   :  { %4341 = vmatprep.subr.bf16.mxu1 %v5236_v4  ;;  %4469 = vmatprep.subr.bf16.mxu0 %v5239_v34  ;;  %v5324_v4 = vld [vmem:[#allocation7 + $0x2f0] ss:$28 sps:$4 sm:$0xff]   ;;  %v5323_v34 = vld [vmem:[#allocation7 + $0x128] ss:$28 sps:$4 sm:$0xff]  }
 0x61e   :  { %4343 = vmatpush1.bf16.msra.mxu1 %v5238_v14  ;;  %4471 = vmatpush1.bf16.msra.mxu0 %v5241_v44  ;;  %v5325_v14 = vld [vmem:[#allocation7 + $0x130] ss:$28 sps:$4 sm:$0xff]   ;;  %v5326_v44 = vld [vmem:[#allocation7 + $0x164] ss:$28 sps:$4 sm:$0xff]  }
 0x61f   :  { %4345 = vmatprep.subr.bf16.mxu1 %v5242_v49  ;;  %4473 = vmatprep.subr.bf16.mxu0 %v5245_v22  ;;  %v5329_v49 = vld [vmem:[#allocation7 + $0x328] ss:$28 sps:$4 sm:$0xff]   ;;  %v5328_v22 = vld [vmem:[#allocation7 + $0x160] ss:$28 sps:$4 sm:$0xff]  }
 0x622   :  { %4347 = vmatpush1.bf16.msra.mxu1 %v5244_v57  ;;  %4475 = vmatpush1.bf16.msra.mxu0 %v5247_v60  ;;  %v5330_v57 = vld [vmem:[#allocation7 + $0x168] ss:$28 sps:$4 sm:$0xff]   ;;  %v5331_v60 = vld [vmem:[#allocation7 + $0x19c] ss:$28 sps:$4 sm:$0xff]  }
 0x623   :  { %4349 = vmatprep.subr.bf16.mxu1 %v5248_v6  ;;  %4477 = vmatprep.subr.bf16.mxu0 %v5251_v56  ;;  %v5334_v6 = vld [vmem:[#allocation7 + $0x360] ss:$28 sps:$4 sm:$0xff]   ;;  %v5333_v56 = vld [vmem:[#allocation7 + $0x198] ss:$28 sps:$4 sm:$0xff]  }
 0x626   :  { %4351 = vmatpush1.bf16.msra.mxu1 %v5250_v62  ;;  %4479 = vmatpush1.bf16.msra.mxu0 %v5253_v21  ;;  %v5335_v62 = vld [vmem:[#allocation7 + $0x1a0] ss:$28 sps:$4 sm:$0xff]   ;;  %v5336_v21 = vld [vmem:[#allocation7 + $0x1d4] ss:$28 sps:$4 sm:$0xff]  }
 0x627   :  { %4353 = vmatprep.subr.bf16.mxu1 %v5254_v10  ;;  %4481 = vmatprep.subr.bf16.mxu0 %v5257_v12  ;;  %v5339_v10 = vld [vmem:[#allocation7 + $0x558] ss:$28 sps:$4 sm:$0xff]   ;;  %v5338_v12 = vld [vmem:[#allocation7 + $0x1d0] ss:$28 sps:$4 sm:$0xff]  }
 0x62a   :  { %4355 = vmatpush1.bf16.msra.mxu1 %v5256_v59  ;;  %4483 = vmatpush1.bf16.msra.mxu0 %v5259_v26  ;;  %v5340_v59 = vld [vmem:[#allocation7 + $0x398] ss:$28 sps:$4 sm:$0xff]   ;;  %v5341_v26 = vld [vmem:[#allocation7 + $0x20c] ss:$28 sps:$4 sm:$0xff]  }
 0x62b   :  { %4357 = vmatprep.subr.bf16.mxu1 %v5260_v1  ;;  %4485 = vmatprep.subr.bf16.mxu0 %v5263_v8  ;;  %v5344_v1 = vld [vmem:[#allocation7 + $0x590] ss:$28 sps:$4 sm:$0xff]   ;;  %v5343_v8 = vld [vmem:[#allocation7 + $0x208] ss:$28 sps:$4 sm:$0xff]  }
 0x62e   :  { %4359 = vmatpush1.bf16.msra.mxu1 %v5262_v24  ;;  %4487 = vmatpush1.bf16.msra.mxu0 %v5265_v23  ;;  %v5345_v24 = vld [vmem:[#allocation7 + $0x3d0] ss:$28 sps:$4 sm:$0xff]   ;;  %v5346_v23 = vld [vmem:[#allocation7 + $0x244] ss:$28 sps:$4 sm:$0xff]  }
 0x62f   :  { %4361 = vmatprep.subr.bf16.mxu1 %v5266_v43  ;;  %4489 = vmatprep.subr.bf16.mxu0 %v5269_v27  ;;  %v5349_v43 = vld [vmem:[#allocation7 + $0x5c8] ss:$28 sps:$4 sm:$0xff]   ;;  %v5348_v27 = vld [vmem:[#allocation7 + $0x240] ss:$28 sps:$4 sm:$0xff]  }
 0x632   :  { %4363 = vmatpush1.bf16.msra.mxu1 %v5268_v11  ;;  %4491 = vmatpush1.bf16.msra.mxu0 %v5271_v16  ;;  %v5350_v11 = vld [vmem:[#allocation7 + $0x408] ss:$28 sps:$4 sm:$0xff]   ;;  %v5351_v16 = vld [vmem:[#allocation7 + $0x27c] ss:$28 sps:$4 sm:$0xff]  }
 0x633   :  { %4365 = vmatprep.subr.bf16.mxu1 %v5272_v40  ;;  %4493 = vmatprep.subr.bf16.mxu0 %v5275_v55  ;;  %v5354_v40 = vld [vmem:[#allocation7 + $0x600] ss:$28 sps:$4 sm:$0xff]   ;;  %v5353_v55 = vld [vmem:[#allocation7 + $0x278] ss:$28 sps:$4 sm:$0xff]  }
 0x636   :  { %4367 = vmatpush1.bf16.msra.mxu1 %v5274_v3  ;;  %4495 = vmatpush1.bf16.msra.mxu0 %v5277_v41  ;;  %v5355_v3 = vld [vmem:[#allocation7 + $0x440] ss:$28 sps:$4 sm:$0xff]   ;;  %v5356_v41 = vld [vmem:[#allocation7 + $0x2b4] ss:$28 sps:$4 sm:$0xff]  }
 0x637   :  { %4369 = vmatprep.subr.bf16.mxu1 %v5278_v17  ;;  %4497 = vmatprep.subr.bf16.mxu0 %v5281_v36  ;;  %v5359_v17 = vld [vmem:[#allocation7 + $0x638] ss:$28 sps:$4 sm:$0xff]   ;;  %v5358_v36 = vld [vmem:[#allocation7 + $0x2b0] ss:$28 sps:$4 sm:$0xff]  }
 0x63a   :  { %4371 = vmatpush1.bf16.msra.mxu1 %v5280_v5  ;;  %4499 = vmatpush1.bf16.msra.mxu0 %v5283_v61  ;;  %v5360_v5 = vld [vmem:[#allocation7 + $0x478] ss:$28 sps:$4 sm:$0xff]   ;;  %v5361_v61 = vld [vmem:[#allocation7 + $0x2ec] ss:$28 sps:$4 sm:$0xff]  }
 0x63b   :  { %4373 = vmatprep.subr.bf16.mxu1 %v5284_v51  ;;  %4501 = vmatprep.subr.bf16.mxu0 %v5287_v47  ;;  %v5364_v51 = vld [vmem:[#allocation7 + $0x670] ss:$28 sps:$4 sm:$0xff]   ;;  %v5363_v47 = vld [vmem:[#allocation7 + $0x2e8] ss:$28 sps:$4 sm:$0xff]  }
 0x63e   :  { %4375 = vmatpush1.bf16.msra.mxu1 %v5286_v20  ;;  %4503 = vmatpush1.bf16.msra.mxu0 %v5289_v45  ;;  %v5365_v20 = vld [vmem:[#allocation7 + $0x4b0] ss:$28 sps:$4 sm:$0xff]   ;;  %v5366_v45 = vld [vmem:[#allocation7 + $0x324] ss:$28 sps:$4 sm:$0xff]  }
 0x63f   :  { %4377 = vmatprep.subr.bf16.mxu1 %v5290_v53  ;;  %4505 = vmatprep.subr.bf16.mxu0 %v5293_v19  ;;  %v5369_v53 = vld [vmem:[#allocation7 + $0x6a8] ss:$28 sps:$4 sm:$0xff]   ;;  %v5368_v19 = vld [vmem:[#allocation7 + $0x320] ss:$28 sps:$4 sm:$0xff]  }
 0x642   :  { %4379 = vmatpush1.bf16.msra.mxu1 %v5292_v38  ;;  %4507 = vmatpush1.bf16.msra.mxu0 %v5295_v2  ;;  %v5370_v38 = vld [vmem:[#allocation7 + $0x4e8] ss:$28 sps:$4 sm:$0xff]   ;;  %v5371_v2 = vld [vmem:[#allocation7 + $0x35c] ss:$28 sps:$4 sm:$0xff]  }
 0x643   :  { %4509 = vmatprep.subr.bf16.mxu1 %v5296_v15  ;;  %4637 = vmatprep.subr.bf16.mxu0 %v5299_v31  ;;  %v5374_v15 = vld [vmem:[#allocation7 + $0x6e0] ss:$28 sps:$4 sm:$0xff]   ;;  %v5373_v31 = vld [vmem:[#allocation7 + $0x358] ss:$28 sps:$4 sm:$0xff]  }
 0x645   :  { %3543 = vmatmul.mubr.f32.vlgmr.msra.gmra.mrb[2].mxu1 %v6794_v39  ;;  %3685 = vmatmul.mubr.f32.vlgmr.msra.gmra.mrb[4].mxu0 %v6794_v39 }
 0x646   :  { %4511 = vmatpush1.bf16.msra.mxu1 %v5298_v63  ;;  %3755 = vmatprep.mubr.f32.mxu1 %v6781_v48  ;;  %v5375_v63 = vld [vmem:[#allocation7 + $0x520] ss:$28 sps:$4 sm:$0xff]  }
 0x647   :  { %4639 = vmatpush3.bf16.msra.mxu0 %v5300_v37  ;;  %3897 = vmatprep.mubr.f32.mxu0 %v6781_v48  ;;  %v5319_v48 = vld [vmem:[#allocation7 + $0x2b8] ss:$28 sps:$4 sm:$0xff]  }
 0x648   :  { %4513 = vmatprep.subr.bf16.mxu1 %v5301_v46  ;;  %4641 = vmatprep.subr.bf16.mxu0 %v5304_v50  ;;  %v5376_v37 = vld [vmem:[#allocation7 + $0x394] ss:$28 sps:$4 sm:$0xff]   ;;  %v5379_v50 = vld [vmem:[#allocation7 + $0x3cc] ss:$28 sps:$4 sm:$0xff]  }
 0x649   :  { %v5378_v46 = vld [vmem:[#allocation7 + $0x390] ss:$28 sps:$4 sm:$0xff]  }
 0x64a   :  { %4515 = vmatpush1.bf16.msra.mxu1 %v5303_v33  ;;  %v5381_v33 = vld [vmem:[#allocation7 + $0x3c8] ss:$28 sps:$4 sm:$0xff]  }
 0x64b   :  { %4643 = vmatpush3.bf16.msra.mxu0 %v5305_v28  ;;  %4517 = vmatprep.subr.bf16.mxu1 %v5306_v0  ;;  %v5382_v28 = vld [vmem:[#allocation7 + $0x404] ss:$28 sps:$4 sm:$0xff]  }
 0x64c   :  { %4645 = vmatprep.subr.bf16.mxu0 %v5309_v29  ;;  %v5384_v0 = vld [vmem:[#allocation7 + $0x400] ss:$28 sps:$4 sm:$0xff]  }
 0x64d   :  { %v5385_v29 = vld [vmem:[#allocation7 + $0x43c] ss:$28 sps:$4 sm:$0xff]  }
 0x64e   :  { %4519 = vmatpush1.bf16.msra.mxu1 %v5308_v13  ;;  %v5387_v13 = vld [vmem:[#allocation7 + $0x438] ss:$28 sps:$4 sm:$0xff]  }
 0x64f   :  { %4647 = vmatpush3.bf16.msra.mxu0 %v5310_v52  ;;  %4521 = vmatprep.subr.bf16.mxu1 %v5311_v58  ;;  %v5388_v52 = vld [vmem:[#allocation7 + $0x474] ss:$28 sps:$4 sm:$0xff]  }
 0x650   :  { %4649 = vmatprep.subr.bf16.mxu0 %v5314_v9  ;;  %v5390_v58 = vld [vmem:[#allocation7 + $0x470] ss:$28 sps:$4 sm:$0xff]   ;;  %v5393_v9 = vld [vmem:[#allocation7 + $0x4a8] ss:$28 sps:$4 sm:$0xff]  }
 0x652   :  { %4523 = vmatpush1.bf16.msra.mxu1 %v5313_v42  ;;  %v5394_v42 = vld [vmem:[#allocation7 + $0x4e4] ss:$28 sps:$4 sm:$0xff]  }
 0x653   :  { %4651 = vmatpush3.bf16.msra.mxu0 %v5315_v18  ;;  %4525 = vmatprep.subr.bf16.mxu1 %v5316_v7  ;;  %v5397_v18 = vld [vmem:[#allocation7 + $0x51c] ss:$28 sps:$4 sm:$0xff]  }
 0x654   :  { %4653 = vmatprep.subr.bf16.mxu0 %v5319_v48  ;;  %v5399_v7 = vld [vmem:[#allocation7 + $0x518] ss:$28 sps:$4 sm:$0xff]  }
 0x655   :  { %v5400_v48 = vld [vmem:[#allocation7 + $0x554] ss:$28 sps:$4 sm:$0xff]  }
 0x656   :  { %4527 = vmatpush1.bf16.msra.mxu1 %v5318_v32  ;;  %v5402_v32 = vld [vmem:[#allocation7 + $0x550] ss:$28 sps:$4 sm:$0xff]  }
 0x657   :  { %4655 = vmatpush3.bf16.msra.mxu0 %v5320_v35  ;;  %4529 = vmatprep.subr.bf16.mxu1 %v5321_v30  ;;  %v5403_v35 = vld [vmem:[#allocation7 + $0x58c] ss:$28 sps:$4 sm:$0xff]  }
 0x658   :  { %4657 = vmatprep.subr.bf16.mxu0 %v5324_v4  ;;  %v5405_v30 = vld [vmem:[#allocation7 + $0x588] ss:$28 sps:$4 sm:$0xff]  }
 0x659   :  { %v5406_v4 = vld [vmem:[#allocation7 + $0x5c4] ss:$28 sps:$4 sm:$0xff]  }
 0x65a   :  { %4531 = vmatpush1.bf16.msra.mxu1 %v5323_v34  ;;  %v5408_v34 = vld [vmem:[#allocation7 + $0x5c0] ss:$28 sps:$4 sm:$0xff]  }
 0x65b   :  { %4659 = vmatpush3.bf16.msra.mxu0 %v5325_v14  ;;  %4533 = vmatprep.subr.bf16.mxu1 %v5326_v44  ;;  %v5409_v14 = vld [vmem:[#allocation7 + $0x5fc] ss:$28 sps:$4 sm:$0xff]  }
 0x65c   :  { %4661 = vmatprep.subr.bf16.mxu0 %v5329_v49  ;;  %v5411_v44 = vld [vmem:[#allocation7 + $0x5f8] ss:$28 sps:$4 sm:$0xff]  }
 0x65d   :  { %v5412_v49 = vld [vmem:[#allocation7 + $0x634] ss:$28 sps:$4 sm:$0xff]  }
 0x65e   :  { %4535 = vmatpush1.bf16.msra.mxu1 %v5328_v22  ;;  %v5414_v22 = vld [vmem:[#allocation7 + $0x630] ss:$28 sps:$4 sm:$0xff]  }
 0x65f   :  { %4663 = vmatpush3.bf16.msra.mxu0 %v5330_v57  ;;  %4537 = vmatprep.subr.bf16.mxu1 %v5331_v60  ;;  %v5415_v57 = vld [vmem:[#allocation7 + $0x66c] ss:$28 sps:$4 sm:$0xff]  }
 0x660   :  { %4665 = vmatprep.subr.bf16.mxu0 %v5334_v6  ;;  %v5417_v60 = vld [vmem:[#allocation7 + $0x668] ss:$28 sps:$4 sm:$0xff]  }
 0x661   :  { %v5418_v6 = vld [vmem:[#allocation7 + $0x6a4] ss:$28 sps:$4 sm:$0xff]  }
 0x662   :  { %4539 = vmatpush1.bf16.msra.mxu1 %v5333_v56  ;;  %v5420_v56 = vld [vmem:[#allocation7 + $0x6a0] ss:$28 sps:$4 sm:$0xff]  }
 0x663   :  { %4667 = vmatpush3.bf16.msra.mxu0 %v5335_v62  ;;  %4541 = vmatprep.subr.bf16.mxu1 %v5336_v21  ;;  %v5421_v62 = vld [vmem:[#allocation7 + $0x6dc] ss:$28 sps:$4 sm:$0xff]  }
 0x664   :  { %4669 = vmatprep.subr.bf16.mxu0 %v5339_v10  ;;  %v5423_v21 = vld [vmem:[#allocation7 + $0x6d8] ss:$28 sps:$4 sm:$0xff]  }
 0x666   :  { %3898 = vmatmul.mubr.f32.vlgmr.msra.gmra.mrb[6].mxu0 %v6783_v54  ;;  %4543 = vmatpush1.bf16.msra.mxu1 %v5338_v12 }
 0x667   :  { %4671 = vmatpush3.bf16.msra.mxu0 %v5340_v59  ;;  %3967 = vmatprep.mubr.f32.mxu0 %v6787_v25 }
 0x668   :  { %4545 = vmatprep.subr.bf16.mxu1 %v5341_v26  ;;  %4673 = vmatprep.subr.bf16.mxu0 %v5344_v1 }
 0x66a   :  { %4547 = vmatpush1.bf16.msra.mxu1 %v5343_v8 }
 0x66b   :  { %4675 = vmatpush3.bf16.msra.mxu0 %v5345_v24  ;;  %4549 = vmatprep.subr.bf16.mxu1 %v5346_v23 }
 0x66c   :  { %4677 = vmatprep.subr.bf16.mxu0 %v5349_v43 }
 0x66e   :  { %4551 = vmatpush1.bf16.msra.mxu1 %v5348_v27 }
 0x66f   :  { %4679 = vmatpush3.bf16.msra.mxu0 %v5350_v11  ;;  %4553 = vmatprep.subr.bf16.mxu1 %v5351_v16 }
 0x670   :  { %4681 = vmatprep.subr.bf16.mxu0 %v5354_v40 }
 0x672   :  { %4555 = vmatpush1.bf16.msra.mxu1 %v5353_v55 }
 0x673   :  { %4683 = vmatpush3.bf16.msra.mxu0 %v5355_v3  ;;  %4557 = vmatprep.subr.bf16.mxu1 %v5356_v41 }
 0x674   :  { %4685 = vmatprep.subr.bf16.mxu0 %v5359_v17 }
 0x676   :  { %4559 = vmatpush1.bf16.msra.mxu1 %v5358_v36 }
 0x677   :  { %4687 = vmatpush3.bf16.msra.mxu0 %v5360_v5  ;;  %4561 = vmatprep.subr.bf16.mxu1 %v5361_v61 }
 0x678   :  { %4689 = vmatprep.subr.bf16.mxu0 %v5364_v51 }
 0x67a   :  { %4563 = vmatpush1.bf16.msra.mxu1 %v5363_v47 }
 0x67b   :  { %4691 = vmatpush3.bf16.msra.mxu0 %v5365_v20  ;;  %4565 = vmatprep.subr.bf16.mxu1 %v5366_v45 }
 0x67c   :  { %4693 = vmatprep.subr.bf16.mxu0 %v5369_v53 }
 0x67e   :  { %4567 = vmatpush1.bf16.msra.mxu1 %v5368_v19 }
 0x67f   :  { %4695 = vmatpush3.bf16.msra.mxu0 %v5370_v38  ;;  %4569 = vmatprep.subr.bf16.mxu1 %v5371_v2 }
 0x680   :  { %4697 = vmatprep.subr.bf16.mxu0 %v5374_v15 }
 0x682   :  { %4571 = vmatpush1.bf16.msra.mxu1 %v5373_v31 }
 0x683   :  { %4699 = vmatpush3.bf16.msra.mxu0 %v5375_v63  ;;  %4573 = vmatprep.subr.bf16.mxu1 %v5376_v37 }
 0x685   :  { %3756 = vmatmul.mubr.f32.vlgmr.msra.gmra.mrb[4].mxu1 %v6783_v54  ;;  %v5391_v54 = vld [vmem:[#allocation7 + $0x4ac] ss:$28 sps:$4 sm:$0xff]  }
 0x686   :  { %3968 = vmatmul.mubr.f32.vlgmr.msra.gmra.mrb[8].mxu0 %v6794_v39  ;;  %4575 = vmatpush1.bf16.msra.mxu1 %v5378_v46 }
 0x687   :  { %3826 = vmatprep.mubr.f32.mxu1 %v6787_v25  ;;  %4577 = vmatprep.subr.bf16.mxu1 %v5379_v50  ;;  %v5396_v25 = vld [vmem:[#allocation7 + $0x4e0] ss:$28 sps:$4 sm:$0xff]  }
 0x68a   :  { %4579 = vmatpush1.bf16.msra.mxu1 %v5381_v33 }
 0x68b   :  { %4581 = vmatprep.subr.bf16.mxu1 %v5382_v28 }
 0x68e   :  { %4583 = vmatpush1.bf16.msra.mxu1 %v5384_v0 }
 0x68f   :  { %4585 = vmatprep.subr.bf16.mxu1 %v5385_v29 }
 0x692   :  { %4587 = vmatpush1.bf16.msra.mxu1 %v5387_v13 }
 0x693   :  { %4589 = vmatprep.subr.bf16.mxu1 %v5388_v52 }
 0x696   :  { %4591 = vmatpush1.bf16.msra.mxu1 %v5390_v58 }
 0x697   :  { %4593 = vmatprep.subr.bf16.mxu1 %v5391_v54 }
 0x69a   :  { %4595 = vmatpush1.bf16.msra.mxu1 %v5393_v9 }
 0x69b   :  { %4597 = vmatprep.subr.bf16.mxu1 %v5394_v42 }
 0x69e   :  { %4599 = vmatpush1.bf16.msra.mxu1 %v5396_v25 }
 0x69f   :  { %4601 = vmatprep.subr.bf16.mxu1 %v5397_v18 }
 0x6a2   :  { %4603 = vmatpush1.bf16.msra.mxu1 %v5399_v7 }
 0x6a3   :  { %4605 = vmatprep.subr.bf16.mxu1 %v5400_v48 }
 0x6a6   :  { %4607 = vmatpush1.bf16.msra.mxu1 %v5402_v32 }
 0x6a7   :  { %4609 = vmatprep.subr.bf16.mxu1 %v5403_v35 }
 0x6aa   :  { %4611 = vmatpush1.bf16.msra.mxu1 %v5405_v30 }
 0x6ab   :  { %4613 = vmatprep.subr.bf16.mxu1 %v5406_v4 }
 0x6ae   :  { %4615 = vmatpush1.bf16.msra.mxu1 %v5408_v34 }
 0x6af   :  { %4617 = vmatprep.subr.bf16.mxu1 %v5409_v14 }
 0x6b2   :  { %4619 = vmatpush1.bf16.msra.mxu1 %v5411_v44 }
 0x6b3   :  { %4621 = vmatprep.subr.bf16.mxu1 %v5412_v49 }
 0x6b6   :  { %4623 = vmatpush1.bf16.msra.mxu1 %v5414_v22 }
 0x6b7   :  { %4625 = vmatprep.subr.bf16.mxu1 %v5415_v57 }
 0x6ba   :  { %4627 = vmatpush1.bf16.msra.mxu1 %v5417_v60 }
 0x6bb   :  { %4629 = vmatprep.subr.bf16.mxu1 %v5418_v6 }
 0x6be   :  { %4631 = vmatpush1.bf16.msra.mxu1 %v5420_v56 }
 0x6bf   :  { %4633 = vmatprep.subr.bf16.mxu1 %v5421_v62 }
 0x6c2   :  { %4635 = vmatpush1.bf16.msra.mxu1 %v5423_v21 }
 0x6c5   :  { %3827 = vmatmul.mubr.f32.vlgmr.msra.gmra.mrb[4].mxu1 %v6794_v39 }
 0x718   :  { %v3544_v10 = vpop.f32.mrb[2].mxu1  ;;  %v3686_v12 = vpop.f32.mrb[4].mxu0 }
 0x719   :  { %v4041_v59 = vmul.f32 -1.442695, %v3544_v10  ;;  %v4043_v26 = vmul.f32 -1.442695, %v3686_v12  ;;  %v3546_v1 = vpop.f32.mrb[3].mxu1  ;;  %v3688_v8 = vpop.f32.mrb[5].mxu0 }
 0x71a   :  { %v4042_v24 = vmul.f32 -1.442695, %v3546_v1  ;;  %v4044_v23 = vmul.f32 -1.442695, %v3688_v8 }
 0x71b   :  { %5424 = vpow2.f32 %v4041_v59 }
 0x71c   :  { %5426 = vpow2.f32 %v4043_v26 }
 0x71d   :  { %5428 = vpow2.f32 %v4042_v24 }
 0x71e   :  { %5430 = vpow2.f32 %v4044_v23 }
 0x725   :  { %v5425_v43 = vpop.eup %5424 }
 0x726   :  { %v5427_v27 = vpop.eup %5426  ;;  %v3994_v11 = vadd.f32 1.0, %v5425_v43 }
 0x727   :  { %v5429_v16 = vpop.eup %5428  ;;  %v3996_v40 = vadd.f32 1.0, %v5427_v27 }
 0x728   :  { %v5431_v55 = vpop.eup %5430  ;;  %5432 = vrcp.f32 %v3994_v11  ;;  %v3995_v39 = vadd.f32 1.0, %v5429_v16 }
 0x729   :  { %5434 = vrcp.f32 %v3996_v40  ;;  %v3997_v3 = vadd.f32 1.0, %v5431_v55 }
 0x72a   :  { %5436 = vrcp.f32 %v3995_v39 }
 0x72b   :  { %5438 = vrcp.f32 %v3997_v3 }
 0x732   :  { %v5433_v41 = vpop.eup %5432 }
 0x733   :  { %v5435_v17 = vpop.eup %5434  ;;  %4015 = vst [vmem:[#allocation8] sm:$0xff] %v5433_v41 }
 0x734   :  { %v5437_v36 = vpop.eup %5436  ;;  %4017 = vst [vmem:[#allocation8 + $0x10] sm:$0xff] %v5435_v17 }
 0x735   :  { %v5439_v5 = vpop.eup %5438  ;;  %4016 = vst [vmem:[#allocation8 + $0x8] sm:$0xff] %v5437_v36 }
 0x736   :  { %4018 = vst [vmem:[#allocation8 + $0x18] sm:$0xff] %v5439_v5 }
 0x739   :  { %v4080_v61 = vpop.f32.mrb[6].mxu0 }
 0x73a   :  { %v4081_v51 = vpop.f32.mrb[7].mxu0 }
 0x73b   :  { %v4082_v47 = vadd.f32 %v4081_v51, %v4080_v61 }
 0x759   :  { %v4115_v20 = vpop.f32.mrb[8].mxu0 }
 0x75a   :  { %v4116_v45 = vpop.f32.mrb[9].mxu0 }
 0x75b   :  { %v4117_v53 = vadd.f32 %v4116_v45, %v4115_v20 }
 0x75d   :  { %v3970_v19 = vadd.f32 %v4117_v53, %v4082_v47 }
 0x75f   :  { %v4047_v38 = vmul.f32 -1.442695, %v3970_v19 }
 0x761   :  { %5440 = vpow2.f32 %v4047_v38 }
 0x76b   :  { %v5441_v2 = vpop.eup %5440 }
 0x76c   :  { %v4000_v15 = vadd.f32 1.0, %v5441_v2 }
 0x76e   :  { %5442 = vrcp.f32 %v4000_v15 }
 0x778   :  { %v5443_v31 = vpop.eup %5442 }
 0x779   :  { %4021 = vst [vmem:[#allocation8 + $0x30] sm:$0xff] %v5443_v31 }
 0x798   :  { %v3828_v63 = vpop.f32.mrb[4].mxu1 }
 0x799   :  { %v4045_v37 = vmul.f32 -1.442695, %v3828_v63  ;;  %v3830_v46 = vpop.f32.mrb[5].mxu1 }
 0x79a   :  { %v4046_v50 = vmul.f32 -1.442695, %v3830_v46 }
 0x79b   :  { %5444 = vpow2.f32 %v4045_v37 }
 0x79c   :  { %5446 = vpow2.f32 %v4046_v50 }
 0x7a5   :  { %v5445_v33 = vpop.eup %5444 }
 0x7a6   :  { %v5447_v28 = vpop.eup %5446  ;;  %v3998_v0 = vadd.f32 1.0, %v5445_v33 }
 0x7a7   :  { %v3999_v29 = vadd.f32 1.0, %v5447_v28 }
 0x7a8   :  { %5448 = vrcp.f32 %v3998_v0 }
 0x7a9   :  { %5450 = vrcp.f32 %v3999_v29 }
 0x7b2   :  { %v5449_v13 = vpop.eup %5448 }
 0x7b3   :  { %v5451_v52 = vpop.eup %5450  ;;  %4019 = vst [vmem:[#allocation8 + $0x20] sm:$0xff] %v5449_v13 }
 0x7b4   :  { %4020 = vst [vmem:[#allocation8 + $0x28] sm:$0xff] %v5451_v52 }
 0x7b5   :  { %5529 = shalt.err (!%p5526_p0)
}
 0x7b6   :  { %s5530_s6 = scalar_lea.hbm %s6822_s4, 896 }
 0x7b7   :  { %p5531_p1 = scmp.ne.s32.totalorder %s6822_s4, %s5530_s6  ;;  %p5534_p2 = scmp.lt.u32.totalorder %s5530_s6, %s6822_s4 }
 0x7b9   :  { %p5536_p3 = pnand %p5534_p2, %p5531_p1 }
 0x7bb   :  { %5539 = shalt.err (!%p5536_p3)
}
 0x7bc   :  { %4031 = dma.vmem_to_hbm [thread:$0]  %s4029_s3, 896, %s6822_s4, [#allocation4]  }
 0x7bd   :  { %5544 = dma.done.wait [#allocation4], 896  }
 0x7be   :  { %5545 = vsyncadd [#allocation4], 4294966400 }
 0x7bf   :  { %4035 = vsyncpa [#allocation3], 1 }
 0x7c0   :  { %4036 = vsyncpa [#allocation6], 1 }
 0x7c1   :  { %4037 = vsyncpa [#allocation4], 1 }

</bundles_post_ra>
